<compile_context>
chip_gen: v7x
topology: tpu7x:2x2x1
jax: 0.10.0
libtpu: 0.0.40
codegen_flags: <defaults>
</compile_context>

<pallas_src>
import functools

import jax
import jax.numpy as jnp
from jax import lax
from jax.experimental import pallas as pl
from jax.experimental.pallas import tpu as pltpu


# ----------------------------------------------------------------------------
# static helpers (pure Python / pure jnp; run once per model instance)
# ----------------------------------------------------------------------------
def build_checkpoints(his_len, snpsts_len):
    mark = snpsts_len
    cps = []
    while mark < his_len:
        cps.append(mark)
        mark += snpsts_len - 1
    if cps[-1] != his_len:
        cps.append(his_len)
    return cps


def combine_graph_forward(adj, snpsts_len):
    n = adj.shape[0]
    rst = jnp.zeros((n * snpsts_len, n * snpsts_len), jnp.float32)
    for v in range(snpsts_len):
        off = v * n
        if v == snpsts_len - 1:
            rst = rst.at[-n:, -n:].set(adj)
        else:
            rst = rst.at[off:off + n, off:off + n].set(adj)
            rst = rst.at[off:off + n, off + n:off + 2 * n].set(
                jnp.eye(n, dtype=jnp.float32))
    return rst


def combine_graph_backward(adj, snpsts_len):
    n = adj.shape[0]
    rst = jnp.zeros((n * snpsts_len, n * snpsts_len), jnp.float32)
    for v in range(snpsts_len):
        off = v * n
        rst = rst.at[off:off + n, off:off + n].set(adj.T)
    return rst


def full_spec(shape):
    nd = len(shape)
    return pl.BlockSpec(tuple(shape), lambda i, nd=nd: (0,) * nd)


# ----------------------------------------------------------------------------
# the single fused kernel: in_linear + checkpoint block-steps + output head
# ----------------------------------------------------------------------------
def _fused_forward_kernel(
        x_ref, win_ref, bin_ref, ab_ref, af_ref, wg_ref, bg_ref,
        wres_ref, bres_ref, wred_ref, bred_ref,
        w1_ref, b1_ref, w2_ref, b2_ref, o_ref,
        *, batch, his_len, num_node, snpsts_len, channels, layers,
        checkpoints, eps):
    B, T, N, S = batch, his_len, num_node, snpsts_len
    SN = S * N

    # ---- in_linear: one (B*T*N, Din) @ (Din, H) matmul ----------------------
    x = (jnp.dot(x_ref[...], win_ref[...], preferred_element_type=jnp.float32)
         + bin_ref[...])                                     # (B*T*N, H)

    a_b = ab_ref[...]       # (B*SN, B*SN) = kron(I_B, combined backward adj)
    a_f = af_ref[...]       # (B*SN, B*SN) = kron(I_B, combined forward adj)
    wres = wres_ref[...]    # (B*N, B*SN)  = kron(I_B, Conv1d(k=1) weight)
    bres = bres_ref[...]    # (B*N, 1)
    wred = wred_ref[...]    # (C*H, H)
    bred = bred_ref[...]    # (1, H)

    last_res = None
    left = 0
    for idx, right in enumerate(checkpoints):
        # build feat (B*SN, H), batch-major rows; all slices static & 8-aligned
        rows = []
        for b in range(B):
            base = b * T * N
            if idx == 0:
                rows.append(x[base + left * N: base + right * N, :])
            else:
                rows.append(last_res[b * N:(b + 1) * N, :])
                rows.append(x[base + left * N: base + right * N, :])
        feat = jnp.concatenate(rows, axis=0)                 # (B*SN, H)

        # residual Conv1d(kernel_size=1): one block-diag matmul over all batches
        residual = (jnp.dot(wres, feat, preferred_element_type=jnp.float32)
                    + bres)                                  # (B*N, H)

        # GCN channels, all batches at once via the kron(I_B, A) supports.
        # TODO(synk): exact DGL GCN message/aggregation not provided; modeled
        # as per-support A @ H @ W + b with ReLU, keeping the last snapshot.
        # TODO(synk): for large N/S exploit A's block structure (S small (N,N)
        # matmuls + shifted copy) instead of the dense kron matmul.
        ch_outs = []
        for ch in range(channels):
            h = feat
            for lyr in range(layers):
                i = ch * layers + lyr
                w_b = wg_ref[2 * i]                          # (H, H)
                w_f = wg_ref[2 * i + 1]                      # (H, H)
                bias = bg_ref[i]                             # (1, H)
                hb = jnp.dot(a_b, h, preferred_element_type=jnp.float32)
                hf = jnp.dot(a_f, h, preferred_element_type=jnp.float32)
                h = (jnp.dot(hb, w_b, preferred_element_type=jnp.float32)
                     + jnp.dot(hf, w_f, preferred_element_type=jnp.float32)
                     + bias)
                h = jnp.maximum(h, 0.0)
            keep = [h[b * SN + (S - 1) * N: b * SN + S * N, :]
                    for b in range(B)]
            ch_outs.append(jnp.concatenate(keep, axis=0))    # (B*N, H)

        conv = jnp.concatenate(ch_outs, axis=-1)             # (B*N, C*H)
        conv = jnp.dot(conv, wred, preferred_element_type=jnp.float32) + bred
        res = conv + residual                                # (B*N, H)

        # LayerNorm([B, N, H], elementwise_affine=False): statistics over the
        # whole tensor (matches the PyTorch normalized_shape spanning B, N, H).
        mean = jnp.mean(res)
        var = jnp.mean((res - mean) ** 2)
        last_res = (res - mean) * lax.rsqrt(var + eps)       # (B*N, H)
        left = right

    # ---- output head: Linear(1,P) -> ReLU -> Linear(H,1), one matmul --------
    # t[m, p*H+h] = relu(last_res[m,h]*w1[p] + b1[p]);  out = t @ w2_block + b2
    P = w2_ref.shape[1]
    xt = jnp.concatenate([last_res] * P, axis=-1)            # (B*N, P*H)
    t = jnp.maximum(xt * w1_ref[...] + b1_ref[...], 0.0)     # (B*N, P*H)
    o_ref[...] = (jnp.dot(t, w2_ref[...], preferred_element_type=jnp.float32)
                  + b2_ref[...])                             # (B*N, P)


# ----------------------------------------------------------------------------
# wrapper: hoisted constant preparation + single pallas_call
# ----------------------------------------------------------------------------
def prepare_constants(adj, params, cfg):
    b, n, s = cfg["batch_size"], cfg["num_node"], cfg["snpsts_len"]
    h, c, l, p = cfg["hid_dim"], cfg["channels"], cfg["layers"], cfg["pred_len"]

    eye_b = jnp.eye(b, dtype=jnp.float32)
    a_f = combine_graph_forward(adj, s)          # (S*N, S*N)
    a_b = combine_graph_backward(adj, s)

    return {
        "w_in": params["w_in"], "b_in": params["b_in"],
        "a_b": jnp.kron(eye_b, a_b),             # (B*S*N, B*S*N)
        "a_f": jnp.kron(eye_b, a_f),
        "wg": params["wg"],
        "bg": params["bg"].reshape(c * l, 1, h),
        "wres": jnp.kron(eye_b, params["wres"]),  # (B*N, B*S*N)
        "bres": jnp.tile(params["bres"], (b, 1)),  # (B*N, 1)
        "wred": params["wred"], "bred": params["bred"],
        "w1_row": jnp.repeat(params["w1"].reshape(p, 1), h, axis=1
                             ).reshape(1, p * h),
        "b1_row": jnp.repeat(params["b1"].reshape(p, 1), h, axis=1
                             ).reshape(1, p * h),
        "w2_block": jnp.kron(jnp.eye(p, dtype=jnp.float32),
                             params["w2"].reshape(h, 1)),      # (P*H, P)
        "b2": params["b2"],
    }


def model_forward(inputs, consts, cfg):
    b, t, n, din = inputs.shape
    h, s = cfg["hid_dim"], cfg["snpsts_len"]
    c, l, p = cfg["channels"], cfg["layers"], cfg["pred_len"]
    cps = build_checkpoints(t, s)

    x_flat = inputs.reshape(b * t * n, din)       # row = b*T*N + t*N + n

    kern = functools.partial(
        _fused_forward_kernel,
        batch=b, his_len=t, num_node=n, snpsts_len=s,
        channels=c, layers=l, checkpoints=tuple(cps), eps=1e-5)

    args = (x_flat, consts["w_in"], consts["b_in"], consts["a_b"],
            consts["a_f"], consts["wg"], consts["bg"], consts["wres"],
            consts["bres"], consts["wred"], consts["bred"],
            consts["w1_row"], consts["b1_row"], consts["w2_block"],
            consts["b2"])

    out_flat = pl.pallas_call(
        kern,
        out_shape=jax.ShapeDtypeStruct((b * n, p), jnp.float32),
        grid=(1,),
        in_specs=[full_spec(a.shape) for a in args],
        out_specs=full_spec((b * n, p)),
        compiler_params=pltpu.CompilerParams(
            dimension_semantics=("arbitrary",)),
    )(*args)

    # (B*N, P) -> (B, P, N, 1); wrapper-side reshape/transpose is free
    return jnp.transpose(out_flat.reshape(b, n, p), (0, 2, 1))[..., None]


# ----------------------------------------------------------------------------
# params
# ----------------------------------------------------------------------------
def init_params(key, cfg):
    din, h = cfg["in_dim"], cfg["hid_dim"]
    n, s = cfg["num_node"], cfg["snpsts_len"]
    c, l, p = cfg["channels"], cfg["layers"], cfg["pred_len"]
    ks = iter(jax.random.split(key, 16))

    def nrm(shape, scale=0.1):
        return scale * jax.random.normal(next(ks), shape, jnp.float32)

    return {
        "w_in": nrm((din, h)), "b_in": nrm((1, h)),
        "wg": nrm((c * l * 2, h, h)), "bg": nrm((c * l, h)),
        "wres": nrm((n, s * n)), "bres": nrm((n, 1)),
        "wred": nrm((c * h, h)), "bred": nrm((1, h)),
        "w1": nrm((1, p)), "b1": nrm((1, p)),
        "w2": nrm((1, h)), "b2": nrm((1, 1)),
    }


if __name__ == "__main__":
    cfg = dict(batch_size=2, his_len=7, num_node=8, in_dim=4, hid_dim=32,
               snpsts_len=3, channels=2, layers=2, pred_len=4)
    key = jax.random.PRNGKey(0)
    k_in, k_adj, k_par = jax.random.split(key, 3)

    inputs = jax.random.normal(
        k_in, (cfg["batch_size"], cfg["his_len"], cfg["num_node"],
               cfg["in_dim"]), jnp.float32)
    adj = jax.random.uniform(k_adj, (cfg["num_node"], cfg["num_node"]),
                             jnp.float32)
    params = init_params(k_par, cfg)

    consts = prepare_constants(adj, params, cfg)       # hoisted, runs once
    fwd = jax.jit(lambda x: model_forward(x, consts, cfg))

    out = jax.block_until_ready(fwd(inputs))
    assert out.shape == (cfg["batch_size"], cfg["pred_len"],
                         cfg["num_node"], 1)
    assert bool(jnp.all(jnp.isfinite(out)))
    print("KERNEL_OK")
</pallas_src>

<mosaic_0001>
module attributes {stable_mosaic.version = 11 : i64} {
  func.func @_fused_forward_kernel(%arg0: i32, %arg1: memref<112x4xf32, #tpu.memory_space<vmem>>, %arg2: memref<4x32xf32, #tpu.memory_space<vmem>>, %arg3: memref<1x32xf32, #tpu.memory_space<vmem>>, %arg4: memref<48x48xf32, #tpu.memory_space<vmem>>, %arg5: memref<48x48xf32, #tpu.memory_space<vmem>>, %arg6: memref<8x32x32xf32, #tpu.memory_space<vmem>>, %arg7: memref<4x1x32xf32, #tpu.memory_space<vmem>>, %arg8: memref<16x48xf32, #tpu.memory_space<vmem>>, %arg9: memref<16x1xf32, #tpu.memory_space<vmem>>, %arg10: memref<64x32xf32, #tpu.memory_space<vmem>>, %arg11: memref<1x32xf32, #tpu.memory_space<vmem>>, %arg12: memref<1x128xf32, #tpu.memory_space<vmem>>, %arg13: memref<1x128xf32, #tpu.memory_space<vmem>>, %arg14: memref<128x4xf32, #tpu.memory_space<vmem>>, %arg15: memref<1x1xf32, #tpu.memory_space<vmem>>, %arg16: memref<16x4xf32, #tpu.memory_space<vmem>>) attributes {dimension_semantics = [#tpu.dimension_semantics<arbitrary>], iteration_bounds = array<i64: 1>, scalar_prefetch = 0 : i64, scratch_operands = 0 : i64, tpu.core_type = #tpu.core_type<tc>, window_params = [{pipeline_mode = #tpu.pipeline_mode<synchronous>, transform_indices = @transform_0, window_bounds = array<i64: 112, 4>}, {pipeline_mode = #tpu.pipeline_mode<synchronous>, transform_indices = @transform_1, window_bounds = array<i64: 4, 32>}, {pipeline_mode = #tpu.pipeline_mode<synchronous>, transform_indices = @transform_2, window_bounds = array<i64: 1, 32>}, {pipeline_mode = #tpu.pipeline_mode<synchronous>, transform_indices = @transform_3, window_bounds = array<i64: 48, 48>}, {pipeline_mode = #tpu.pipeline_mode<synchronous>, transform_indices = @transform_4, window_bounds = array<i64: 48, 48>}, {pipeline_mode = #tpu.pipeline_mode<synchronous>, transform_indices = @transform_5, window_bounds = array<i64: 8, 32, 32>}, {pipeline_mode = #tpu.pipeline_mode<synchronous>, transform_indices = @transform_6, window_bounds = array<i64: 4, 1, 32>}, {pipeline_mode = #tpu.pipeline_mode<synchronous>, transform_indices = @transform_7, window_bounds = array<i64: 16, 48>}, {pipeline_mode = #tpu.pipeline_mode<synchronous>, transform_indices = @transform_8, window_bounds = array<i64: 16, 1>}, {pipeline_mode = #tpu.pipeline_mode<synchronous>, transform_indices = @transform_9, window_bounds = array<i64: 64, 32>}, {pipeline_mode = #tpu.pipeline_mode<synchronous>, transform_indices = @transform_10, window_bounds = array<i64: 1, 32>}, {pipeline_mode = #tpu.pipeline_mode<synchronous>, transform_indices = @transform_11, window_bounds = array<i64: 1, 128>}, {pipeline_mode = #tpu.pipeline_mode<synchronous>, transform_indices = @transform_12, window_bounds = array<i64: 1, 128>}, {pipeline_mode = #tpu.pipeline_mode<synchronous>, transform_indices = @transform_13, window_bounds = array<i64: 128, 4>}, {pipeline_mode = #tpu.pipeline_mode<synchronous>, transform_indices = @transform_14, window_bounds = array<i64: 1, 1>}, {pipeline_mode = #tpu.pipeline_mode<synchronous>, transform_indices = @transform_15, window_bounds = array<i64: 16, 4>}]} {
    %c0 = arith.constant 0 : index
    %c0_0 = arith.constant 0 : index
    %0 = vector.load %arg1[%c0, %c0_0] : memref<112x4xf32, #tpu.memory_space<vmem>>, vector<112x4xf32>
    %c0_1 = arith.constant 0 : index
    %c0_2 = arith.constant 0 : index
    %1 = vector.load %arg2[%c0_1, %c0_2] : memref<4x32xf32, #tpu.memory_space<vmem>>, vector<4x32xf32>
    %cst = arith.constant dense<0.000000e+00> : vector<112x32xf32>
    %2 = tpu.matmul %0, %1, %cst {dimension_numbers = #tpu.dot_dimension_numbers<[1], [0], [0], [1], [0, 0, 1, 1], [], []>} : vector<112x4xf32>, vector<4x32xf32>, vector<112x32xf32> -> vector<112x32xf32>
    %c0_3 = arith.constant 0 : index
    %c0_4 = arith.constant 0 : index
    %3 = vector.load %arg3[%c0_3, %c0_4] : memref<1x32xf32, #tpu.memory_space<vmem>>, vector<1x32xf32>
    %4 = vector.broadcast %3 : vector<1x32xf32> to vector<112x32xf32>
    %5 = arith.addf %2, %4 : vector<112x32xf32>
    %c0_5 = arith.constant 0 : index
    %c0_6 = arith.constant 0 : index
    %6 = vector.load %arg4[%c0_5, %c0_6] : memref<48x48xf32, #tpu.memory_space<vmem>>, vector<48x48xf32>
    %c0_7 = arith.constant 0 : index
    %c0_8 = arith.constant 0 : index
    %7 = vector.load %arg5[%c0_7, %c0_8] : memref<48x48xf32, #tpu.memory_space<vmem>>, vector<48x48xf32>
    %c0_9 = arith.constant 0 : index
    %c0_10 = arith.constant 0 : index
    %8 = vector.load %arg8[%c0_9, %c0_10] : memref<16x48xf32, #tpu.memory_space<vmem>>, vector<16x48xf32>
    %c0_11 = arith.constant 0 : index
    %c0_12 = arith.constant 0 : index
    %9 = vector.load %arg9[%c0_11, %c0_12] : memref<16x1xf32, #tpu.memory_space<vmem>>, vector<16x1xf32>
    %c0_13 = arith.constant 0 : index
    %c0_14 = arith.constant 0 : index
    %10 = vector.load %arg10[%c0_13, %c0_14] : memref<64x32xf32, #tpu.memory_space<vmem>>, vector<64x32xf32>
    %c0_15 = arith.constant 0 : index
    %c0_16 = arith.constant 0 : index
    %11 = vector.load %arg11[%c0_15, %c0_16] : memref<1x32xf32, #tpu.memory_space<vmem>>, vector<1x32xf32>
    %12 = vector.extract_strided_slice %5 {offsets = [0, 0], sizes = [24, 32], strides = [1, 1]} : vector<112x32xf32> to vector<24x32xf32>
    %13 = vector.extract_strided_slice %5 {offsets = [56, 0], sizes = [24, 32], strides = [1, 1]} : vector<112x32xf32> to vector<24x32xf32>
    %14 = tpu.concatenate %12, %13 in 0 : vector<24x32xf32>, vector<24x32xf32> -> vector<48x32xf32>
    %cst_17 = arith.constant dense<0.000000e+00> : vector<16x32xf32>
    %15 = tpu.matmul %8, %14, %cst_17 {dimension_numbers = #tpu.dot_dimension_numbers<[1], [0], [0], [1], [0, 0, 1, 1], [], []>} : vector<16x48xf32>, vector<48x32xf32>, vector<16x32xf32> -> vector<16x32xf32>
    %16 = vector.broadcast %9 : vector<16x1xf32> to vector<16x32xf32>
    %17 = arith.addf %15, %16 : vector<16x32xf32>
    %c0_18 = arith.constant 0 : index
    %c0_19 = arith.constant 0 : index
    %c0_20 = arith.constant 0 : index
    %18 = vector.load %arg6[%c0_18, %c0_19, %c0_20] : memref<8x32x32xf32, #tpu.memory_space<vmem>>, vector<1x32x32xf32>
    %19 = vector.shape_cast %18 : vector<1x32x32xf32> to vector<32x32xf32>
    %c1 = arith.constant 1 : index
    %c0_21 = arith.constant 0 : index
    %c0_22 = arith.constant 0 : index
    %20 = vector.load %arg6[%c1, %c0_21, %c0_22] : memref<8x32x32xf32, #tpu.memory_space<vmem>>, vector<1x32x32xf32>
    %21 = vector.shape_cast %20 : vector<1x32x32xf32> to vector<32x32xf32>
    %c0_23 = arith.constant 0 : index
    %c0_24 = arith.constant 0 : index
    %c0_25 = arith.constant 0 : index
    %22 = vector.load %arg7[%c0_23, %c0_24, %c0_25] : memref<4x1x32xf32, #tpu.memory_space<vmem>>, vector<1x1x32xf32>
    %23 = vector.shape_cast %22 : vector<1x1x32xf32> to vector<1x32xf32>
    %cst_26 = arith.constant dense<0.000000e+00> : vector<48x32xf32>
    %24 = tpu.matmul %6, %14, %cst_26 {dimension_numbers = #tpu.dot_dimension_numbers<[1], [0], [0], [1], [0, 0, 1, 1], [], []>} : vector<48x48xf32>, vector<48x32xf32>, vector<48x32xf32> -> vector<48x32xf32>
    %cst_27 = arith.constant dense<0.000000e+00> : vector<48x32xf32>
    %25 = tpu.matmul %7, %14, %cst_27 {dimension_numbers = #tpu.dot_dimension_numbers<[1], [0], [0], [1], [0, 0, 1, 1], [], []>} : vector<48x48xf32>, vector<48x32xf32>, vector<48x32xf32> -> vector<48x32xf32>
    %cst_28 = arith.constant dense<0.000000e+00> : vector<48x32xf32>
    %26 = tpu.matmul %24, %19, %cst_28 {dimension_numbers = #tpu.dot_dimension_numbers<[1], [0], [0], [1], [0, 0, 1, 1], [], []>} : vector<48x32xf32>, vector<32x32xf32>, vector<48x32xf32> -> vector<48x32xf32>
    %cst_29 = arith.constant dense<0.000000e+00> : vector<48x32xf32>
    %27 = tpu.matmul %25, %21, %cst_29 {dimension_numbers = #tpu.dot_dimension_numbers<[1], [0], [0], [1], [0, 0, 1, 1], [], []>} : vector<48x32xf32>, vector<32x32xf32>, vector<48x32xf32> -> vector<48x32xf32>
    %28 = arith.addf %26, %27 : vector<48x32xf32>
    %29 = vector.broadcast %23 : vector<1x32xf32> to vector<48x32xf32>
    %30 = arith.addf %28, %29 : vector<48x32xf32>
    %cst_30 = arith.constant 0.000000e+00 : f32
    %31 = vector.broadcast %cst_30 : f32 to vector<48x32xf32>
    %32 = arith.maximumf %30, %31 : vector<48x32xf32>
    %c2 = arith.constant 2 : index
    %c0_31 = arith.constant 0 : index
    %c0_32 = arith.constant 0 : index
    %33 = vector.load %arg6[%c2, %c0_31, %c0_32] : memref<8x32x32xf32, #tpu.memory_space<vmem>>, vector<1x32x32xf32>
    %34 = vector.shape_cast %33 : vector<1x32x32xf32> to vector<32x32xf32>
    %c3 = arith.constant 3 : index
    %c0_33 = arith.constant 0 : index
    %c0_34 = arith.constant 0 : index
    %35 = vector.load %arg6[%c3, %c0_33, %c0_34] : memref<8x32x32xf32, #tpu.memory_space<vmem>>, vector<1x32x32xf32>
    %36 = vector.shape_cast %35 : vector<1x32x32xf32> to vector<32x32xf32>
    %c1_35 = arith.constant 1 : index
    %c0_36 = arith.constant 0 : index
    %c0_37 = arith.constant 0 : index
    %37 = vector.load %arg7[%c1_35, %c0_36, %c0_37] : memref<4x1x32xf32, #tpu.memory_space<vmem>>, vector<1x1x32xf32>
    %38 = vector.shape_cast %37 : vector<1x1x32xf32> to vector<1x32xf32>
    %cst_38 = arith.constant dense<0.000000e+00> : vector<48x32xf32>
    %39 = tpu.matmul %6, %32, %cst_38 {dimension_numbers = #tpu.dot_dimension_numbers<[1], [0], [0], [1], [0, 0, 1, 1], [], []>} : vector<48x48xf32>, vector<48x32xf32>, vector<48x32xf32> -> vector<48x32xf32>
    %cst_39 = arith.constant dense<0.000000e+00> : vector<48x32xf32>
    %40 = tpu.matmul %7, %32, %cst_39 {dimension_numbers = #tpu.dot_dimension_numbers<[1], [0], [0], [1], [0, 0, 1, 1], [], []>} : vector<48x48xf32>, vector<48x32xf32>, vector<48x32xf32> -> vector<48x32xf32>
    %cst_40 = arith.constant dense<0.000000e+00> : vector<48x32xf32>
    %41 = tpu.matmul %39, %34, %cst_40 {dimension_numbers = #tpu.dot_dimension_numbers<[1], [0], [0], [1], [0, 0, 1, 1], [], []>} : vector<48x32xf32>, vector<32x32xf32>, vector<48x32xf32> -> vector<48x32xf32>
    %cst_41 = arith.constant dense<0.000000e+00> : vector<48x32xf32>
    %42 = tpu.matmul %40, %36, %cst_41 {dimension_numbers = #tpu.dot_dimension_numbers<[1], [0], [0], [1], [0, 0, 1, 1], [], []>} : vector<48x32xf32>, vector<32x32xf32>, vector<48x32xf32> -> vector<48x32xf32>
    %43 = arith.addf %41, %42 : vector<48x32xf32>
    %44 = vector.broadcast %38 : vector<1x32xf32> to vector<48x32xf32>
    %45 = arith.addf %43, %44 : vector<48x32xf32>
    %cst_42 = arith.constant 0.000000e+00 : f32
    %46 = vector.broadcast %cst_42 : f32 to vector<48x32xf32>
    %47 = arith.maximumf %45, %46 : vector<48x32xf32>
    %48 = vector.extract_strided_slice %47 {offsets = [16, 0], sizes = [8, 32], strides = [1, 1]} : vector<48x32xf32> to vector<8x32xf32>
    %49 = vector.extract_strided_slice %47 {offsets = [40, 0], sizes = [8, 32], strides = [1, 1]} : vector<48x32xf32> to vector<8x32xf32>
    %50 = tpu.concatenate %48, %49 in 0 : vector<8x32xf32>, vector<8x32xf32> -> vector<16x32xf32>
    %c4 = arith.constant 4 : index
    %c0_43 = arith.constant 0 : index
    %c0_44 = arith.constant 0 : index
    %51 = vector.load %arg6[%c4, %c0_43, %c0_44] : memref<8x32x32xf32, #tpu.memory_space<vmem>>, vector<1x32x32xf32>
    %52 = vector.shape_cast %51 : vector<1x32x32xf32> to vector<32x32xf32>
    %c5 = arith.constant 5 : index
    %c0_45 = arith.constant 0 : index
    %c0_46 = arith.constant 0 : index
    %53 = vector.load %arg6[%c5, %c0_45, %c0_46] : memref<8x32x32xf32, #tpu.memory_space<vmem>>, vector<1x32x32xf32>
    %54 = vector.shape_cast %53 : vector<1x32x32xf32> to vector<32x32xf32>
    %c2_47 = arith.constant 2 : index
    %c0_48 = arith.constant 0 : index
    %c0_49 = arith.constant 0 : index
    %55 = vector.load %arg7[%c2_47, %c0_48, %c0_49] : memref<4x1x32xf32, #tpu.memory_space<vmem>>, vector<1x1x32xf32>
    %56 = vector.shape_cast %55 : vector<1x1x32xf32> to vector<1x32xf32>
    %cst_50 = arith.constant dense<0.000000e+00> : vector<48x32xf32>
    %57 = tpu.matmul %6, %14, %cst_50 {dimension_numbers = #tpu.dot_dimension_numbers<[1], [0], [0], [1], [0, 0, 1, 1], [], []>} : vector<48x48xf32>, vector<48x32xf32>, vector<48x32xf32> -> vector<48x32xf32>
    %cst_51 = arith.constant dense<0.000000e+00> : vector<48x32xf32>
    %58 = tpu.matmul %7, %14, %cst_51 {dimension_numbers = #tpu.dot_dimension_numbers<[1], [0], [0], [1], [0, 0, 1, 1], [], []>} : vector<48x48xf32>, vector<48x32xf32>, vector<48x32xf32> -> vector<48x32xf32>
    %cst_52 = arith.constant dense<0.000000e+00> : vector<48x32xf32>
    %59 = tpu.matmul %57, %52, %cst_52 {dimension_numbers = #tpu.dot_dimension_numbers<[1], [0], [0], [1], [0, 0, 1, 1], [], []>} : vector<48x32xf32>, vector<32x32xf32>, vector<48x32xf32> -> vector<48x32xf32>
    %cst_53 = arith.constant dense<0.000000e+00> : vector<48x32xf32>
    %60 = tpu.matmul %58, %54, %cst_53 {dimension_numbers = #tpu.dot_dimension_numbers<[1], [0], [0], [1], [0, 0, 1, 1], [], []>} : vector<48x32xf32>, vector<32x32xf32>, vector<48x32xf32> -> vector<48x32xf32>
    %61 = arith.addf %59, %60 : vector<48x32xf32>
    %62 = vector.broadcast %56 : vector<1x32xf32> to vector<48x32xf32>
    %63 = arith.addf %61, %62 : vector<48x32xf32>
    %cst_54 = arith.constant 0.000000e+00 : f32
    %64 = vector.broadcast %cst_54 : f32 to vector<48x32xf32>
    %65 = arith.maximumf %63, %64 : vector<48x32xf32>
    %c6 = arith.constant 6 : index
    %c0_55 = arith.constant 0 : index
    %c0_56 = arith.constant 0 : index
    %66 = vector.load %arg6[%c6, %c0_55, %c0_56] : memref<8x32x32xf32, #tpu.memory_space<vmem>>, vector<1x32x32xf32>
    %67 = vector.shape_cast %66 : vector<1x32x32xf32> to vector<32x32xf32>
    %c7 = arith.constant 7 : index
    %c0_57 = arith.constant 0 : index
    %c0_58 = arith.constant 0 : index
    %68 = vector.load %arg6[%c7, %c0_57, %c0_58] : memref<8x32x32xf32, #tpu.memory_space<vmem>>, vector<1x32x32xf32>
    %69 = vector.shape_cast %68 : vector<1x32x32xf32> to vector<32x32xf32>
    %c3_59 = arith.constant 3 : index
    %c0_60 = arith.constant 0 : index
    %c0_61 = arith.constant 0 : index
    %70 = vector.load %arg7[%c3_59, %c0_60, %c0_61] : memref<4x1x32xf32, #tpu.memory_space<vmem>>, vector<1x1x32xf32>
    %71 = vector.shape_cast %70 : vector<1x1x32xf32> to vector<1x32xf32>
    %cst_62 = arith.constant dense<0.000000e+00> : vector<48x32xf32>
    %72 = tpu.matmul %6, %65, %cst_62 {dimension_numbers = #tpu.dot_dimension_numbers<[1], [0], [0], [1], [0, 0, 1, 1], [], []>} : vector<48x48xf32>, vector<48x32xf32>, vector<48x32xf32> -> vector<48x32xf32>
    %cst_63 = arith.constant dense<0.000000e+00> : vector<48x32xf32>
    %73 = tpu.matmul %7, %65, %cst_63 {dimension_numbers = #tpu.dot_dimension_numbers<[1], [0], [0], [1], [0, 0, 1, 1], [], []>} : vector<48x48xf32>, vector<48x32xf32>, vector<48x32xf32> -> vector<48x32xf32>
    %cst_64 = arith.constant dense<0.000000e+00> : vector<48x32xf32>
    %74 = tpu.matmul %72, %67, %cst_64 {dimension_numbers = #tpu.dot_dimension_numbers<[1], [0], [0], [1], [0, 0, 1, 1], [], []>} : vector<48x32xf32>, vector<32x32xf32>, vector<48x32xf32> -> vector<48x32xf32>
    %cst_65 = arith.constant dense<0.000000e+00> : vector<48x32xf32>
    %75 = tpu.matmul %73, %69, %cst_65 {dimension_numbers = #tpu.dot_dimension_numbers<[1], [0], [0], [1], [0, 0, 1, 1], [], []>} : vector<48x32xf32>, vector<32x32xf32>, vector<48x32xf32> -> vector<48x32xf32>
    %76 = arith.addf %74, %75 : vector<48x32xf32>
    %77 = vector.broadcast %71 : vector<1x32xf32> to vector<48x32xf32>
    %78 = arith.addf %76, %77 : vector<48x32xf32>
    %cst_66 = arith.constant 0.000000e+00 : f32
    %79 = vector.broadcast %cst_66 : f32 to vector<48x32xf32>
    %80 = arith.maximumf %78, %79 : vector<48x32xf32>
    %81 = vector.extract_strided_slice %80 {offsets = [16, 0], sizes = [8, 32], strides = [1, 1]} : vector<48x32xf32> to vector<8x32xf32>
    %82 = vector.extract_strided_slice %80 {offsets = [40, 0], sizes = [8, 32], strides = [1, 1]} : vector<48x32xf32> to vector<8x32xf32>
    %83 = tpu.concatenate %81, %82 in 0 : vector<8x32xf32>, vector<8x32xf32> -> vector<16x32xf32>
    %84 = tpu.concatenate %50, %83 in 1 : vector<16x32xf32>, vector<16x32xf32> -> vector<16x64xf32>
    %cst_67 = arith.constant dense<0.000000e+00> : vector<16x32xf32>
    %85 = tpu.matmul %84, %10, %cst_67 {dimension_numbers = #tpu.dot_dimension_numbers<[1], [0], [0], [1], [0, 0, 1, 1], [], []>} : vector<16x64xf32>, vector<64x32xf32>, vector<16x32xf32> -> vector<16x32xf32>
    %86 = vector.broadcast %11 : vector<1x32xf32> to vector<16x32xf32>
    %87 = arith.addf %85, %86 : vector<16x32xf32>
    %88 = arith.addf %87, %17 : vector<16x32xf32>
    %89 = vector.shape_cast %88 : vector<16x32xf32> to vector<1x16x32xf32>
    %cst_68 = arith.constant dense<0.000000e+00> : vector<1xf32>
    %90 = vector.multi_reduction <add>, %89, %cst_68 [1, 2] : vector<1x16x32xf32> to vector<1xf32>
    %91 = vector.shape_cast %90 : vector<1xf32> to vector<1x1x1xf32>
    %92 = vector.extract %91[0, 0, 0] : f32 from vector<1x1x1xf32>
    %cst_69 = arith.constant 5.120000e+02 : f32
    %93 = arith.divf %92, %cst_69 : f32
    %94 = vector.broadcast %93 : f32 to vector<16x32xf32>
    %95 = arith.subf %88, %94 : vector<16x32xf32>
    %96 = arith.mulf %95, %95 : vector<16x32xf32>
    %97 = vector.shape_cast %96 : vector<16x32xf32> to vector<1x16x32xf32>
    %cst_70 = arith.constant dense<0.000000e+00> : vector<1xf32>
    %98 = vector.multi_reduction <add>, %97, %cst_70 [1, 2] : vector<1x16x32xf32> to vector<1xf32>
    %99 = vector.shape_cast %98 : vector<1xf32> to vector<1x1x1xf32>
    %100 = vector.extract %99[0, 0, 0] : f32 from vector<1x1x1xf32>
    %cst_71 = arith.constant 5.120000e+02 : f32
    %101 = arith.divf %100, %cst_71 : f32
    %102 = vector.broadcast %93 : f32 to vector<16x32xf32>
    %103 = arith.subf %88, %102 : vector<16x32xf32>
    %cst_72 = arith.constant 9.99999974E-6 : f32
    %104 = arith.addf %101, %cst_72 : f32
    %105 = math.rsqrt %104 : f32
    %106 = vector.broadcast %105 : f32 to vector<16x32xf32>
    %107 = arith.mulf %103, %106 : vector<16x32xf32>
    %108 = vector.extract_strided_slice %107 {offsets = [0, 0], sizes = [8, 32], strides = [1, 1]} : vector<16x32xf32> to vector<8x32xf32>
    %109 = vector.extract_strided_slice %5 {offsets = [24, 0], sizes = [16, 32], strides = [1, 1]} : vector<112x32xf32> to vector<16x32xf32>
    %110 = vector.extract_strided_slice %107 {offsets = [8, 0], sizes = [8, 32], strides = [1, 1]} : vector<16x32xf32> to vector<8x32xf32>
    %111 = vector.extract_strided_slice %5 {offsets = [80, 0], sizes = [16, 32], strides = [1, 1]} : vector<112x32xf32> to vector<16x32xf32>
    %112 = tpu.concatenate %108, %109, %110, %111 in 0 : vector<8x32xf32>, vector<16x32xf32>, vector<8x32xf32>, vector<16x32xf32> -> vector<48x32xf32>
    %cst_73 = arith.constant dense<0.000000e+00> : vector<16x32xf32>
    %113 = tpu.matmul %8, %112, %cst_73 {dimension_numbers = #tpu.dot_dimension_numbers<[1], [0], [0], [1], [0, 0, 1, 1], [], []>} : vector<16x48xf32>, vector<48x32xf32>, vector<16x32xf32> -> vector<16x32xf32>
    %114 = vector.broadcast %9 : vector<16x1xf32> to vector<16x32xf32>
    %115 = arith.addf %113, %114 : vector<16x32xf32>
    %c0_74 = arith.constant 0 : index
    %c0_75 = arith.constant 0 : index
    %c0_76 = arith.constant 0 : index
    %116 = vector.load %arg6[%c0_74, %c0_75, %c0_76] : memref<8x32x32xf32, #tpu.memory_space<vmem>>, vector<1x32x32xf32>
    %117 = vector.shape_cast %116 : vector<1x32x32xf32> to vector<32x32xf32>
    %c1_77 = arith.constant 1 : index
    %c0_78 = arith.constant 0 : index
    %c0_79 = arith.constant 0 : index
    %118 = vector.load %arg6[%c1_77, %c0_78, %c0_79] : memref<8x32x32xf32, #tpu.memory_space<vmem>>, vector<1x32x32xf32>
    %119 = vector.shape_cast %118 : vector<1x32x32xf32> to vector<32x32xf32>
    %c0_80 = arith.constant 0 : index
    %c0_81 = arith.constant 0 : index
    %c0_82 = arith.constant 0 : index
    %120 = vector.load %arg7[%c0_80, %c0_81, %c0_82] : memref<4x1x32xf32, #tpu.memory_space<vmem>>, vector<1x1x32xf32>
    %121 = vector.shape_cast %120 : vector<1x1x32xf32> to vector<1x32xf32>
    %cst_83 = arith.constant dense<0.000000e+00> : vector<48x32xf32>
    %122 = tpu.matmul %6, %112, %cst_83 {dimension_numbers = #tpu.dot_dimension_numbers<[1], [0], [0], [1], [0, 0, 1, 1], [], []>} : vector<48x48xf32>, vector<48x32xf32>, vector<48x32xf32> -> vector<48x32xf32>
    %cst_84 = arith.constant dense<0.000000e+00> : vector<48x32xf32>
    %123 = tpu.matmul %7, %112, %cst_84 {dimension_numbers = #tpu.dot_dimension_numbers<[1], [0], [0], [1], [0, 0, 1, 1], [], []>} : vector<48x48xf32>, vector<48x32xf32>, vector<48x32xf32> -> vector<48x32xf32>
    %cst_85 = arith.constant dense<0.000000e+00> : vector<48x32xf32>
    %124 = tpu.matmul %122, %117, %cst_85 {dimension_numbers = #tpu.dot_dimension_numbers<[1], [0], [0], [1], [0, 0, 1, 1], [], []>} : vector<48x32xf32>, vector<32x32xf32>, vector<48x32xf32> -> vector<48x32xf32>
    %cst_86 = arith.constant dense<0.000000e+00> : vector<48x32xf32>
    %125 = tpu.matmul %123, %119, %cst_86 {dimension_numbers = #tpu.dot_dimension_numbers<[1], [0], [0], [1], [0, 0, 1, 1], [], []>} : vector<48x32xf32>, vector<32x32xf32>, vector<48x32xf32> -> vector<48x32xf32>
    %126 = arith.addf %124, %125 : vector<48x32xf32>
    %127 = vector.broadcast %121 : vector<1x32xf32> to vector<48x32xf32>
    %128 = arith.addf %126, %127 : vector<48x32xf32>
    %cst_87 = arith.constant 0.000000e+00 : f32
    %129 = vector.broadcast %cst_87 : f32 to vector<48x32xf32>
    %130 = arith.maximumf %128, %129 : vector<48x32xf32>
    %c2_88 = arith.constant 2 : index
    %c0_89 = arith.constant 0 : index
    %c0_90 = arith.constant 0 : index
    %131 = vector.load %arg6[%c2_88, %c0_89, %c0_90] : memref<8x32x32xf32, #tpu.memory_space<vmem>>, vector<1x32x32xf32>
    %132 = vector.shape_cast %131 : vector<1x32x32xf32> to vector<32x32xf32>
    %c3_91 = arith.constant 3 : index
    %c0_92 = arith.constant 0 : index
    %c0_93 = arith.constant 0 : index
    %133 = vector.load %arg6[%c3_91, %c0_92, %c0_93] : memref<8x32x32xf32, #tpu.memory_space<vmem>>, vector<1x32x32xf32>
    %134 = vector.shape_cast %133 : vector<1x32x32xf32> to vector<32x32xf32>
    %c1_94 = arith.constant 1 : index
    %c0_95 = arith.constant 0 : index
    %c0_96 = arith.constant 0 : index
    %135 = vector.load %arg7[%c1_94, %c0_95, %c0_96] : memref<4x1x32xf32, #tpu.memory_space<vmem>>, vector<1x1x32xf32>
    %136 = vector.shape_cast %135 : vector<1x1x32xf32> to vector<1x32xf32>
    %cst_97 = arith.constant dense<0.000000e+00> : vector<48x32xf32>
    %137 = tpu.matmul %6, %130, %cst_97 {dimension_numbers = #tpu.dot_dimension_numbers<[1], [0], [0], [1], [0, 0, 1, 1], [], []>} : vector<48x48xf32>, vector<48x32xf32>, vector<48x32xf32> -> vector<48x32xf32>
    %cst_98 = arith.constant dense<0.000000e+00> : vector<48x32xf32>
    %138 = tpu.matmul %7, %130, %cst_98 {dimension_numbers = #tpu.dot_dimension_numbers<[1], [0], [0], [1], [0, 0, 1, 1], [], []>} : vector<48x48xf32>, vector<48x32xf32>, vector<48x32xf32> -> vector<48x32xf32>
    %cst_99 = arith.constant dense<0.000000e+00> : vector<48x32xf32>
    %139 = tpu.matmul %137, %132, %cst_99 {dimension_numbers = #tpu.dot_dimension_numbers<[1], [0], [0], [1], [0, 0, 1, 1], [], []>} : vector<48x32xf32>, vector<32x32xf32>, vector<48x32xf32> -> vector<48x32xf32>
    %cst_100 = arith.constant dense<0.000000e+00> : vector<48x32xf32>
    %140 = tpu.matmul %138, %134, %cst_100 {dimension_numbers = #tpu.dot_dimension_numbers<[1], [0], [0], [1], [0, 0, 1, 1], [], []>} : vector<48x32xf32>, vector<32x32xf32>, vector<48x32xf32> -> vector<48x32xf32>
    %141 = arith.addf %139, %140 : vector<48x32xf32>
    %142 = vector.broadcast %136 : vector<1x32xf32> to vector<48x32xf32>
    %143 = arith.addf %141, %142 : vector<48x32xf32>
    %cst_101 = arith.constant 0.000000e+00 : f32
    %144 = vector.broadcast %cst_101 : f32 to vector<48x32xf32>
    %145 = arith.maximumf %143, %144 : vector<48x32xf32>
    %146 = vector.extract_strided_slice %145 {offsets = [16, 0], sizes = [8, 32], strides = [1, 1]} : vector<48x32xf32> to vector<8x32xf32>
    %147 = vector.extract_strided_slice %145 {offsets = [40, 0], sizes = [8, 32], strides = [1, 1]} : vector<48x32xf32> to vector<8x32xf32>
    %148 = tpu.concatenate %146, %147 in 0 : vector<8x32xf32>, vector<8x32xf32> -> vector<16x32xf32>
    %c4_102 = arith.constant 4 : index
    %c0_103 = arith.constant 0 : index
    %c0_104 = arith.constant 0 : index
    %149 = vector.load %arg6[%c4_102, %c0_103, %c0_104] : memref<8x32x32xf32, #tpu.memory_space<vmem>>, vector<1x32x32xf32>
    %150 = vector.shape_cast %149 : vector<1x32x32xf32> to vector<32x32xf32>
    %c5_105 = arith.constant 5 : index
    %c0_106 = arith.constant 0 : index
    %c0_107 = arith.constant 0 : index
    %151 = vector.load %arg6[%c5_105, %c0_106, %c0_107] : memref<8x32x32xf32, #tpu.memory_space<vmem>>, vector<1x32x32xf32>
    %152 = vector.shape_cast %151 : vector<1x32x32xf32> to vector<32x32xf32>
    %c2_108 = arith.constant 2 : index
    %c0_109 = arith.constant 0 : index
    %c0_110 = arith.constant 0 : index
    %153 = vector.load %arg7[%c2_108, %c0_109, %c0_110] : memref<4x1x32xf32, #tpu.memory_space<vmem>>, vector<1x1x32xf32>
    %154 = vector.shape_cast %153 : vector<1x1x32xf32> to vector<1x32xf32>
    %cst_111 = arith.constant dense<0.000000e+00> : vector<48x32xf32>
    %155 = tpu.matmul %6, %112, %cst_111 {dimension_numbers = #tpu.dot_dimension_numbers<[1], [0], [0], [1], [0, 0, 1, 1], [], []>} : vector<48x48xf32>, vector<48x32xf32>, vector<48x32xf32> -> vector<48x32xf32>
    %cst_112 = arith.constant dense<0.000000e+00> : vector<48x32xf32>
    %156 = tpu.matmul %7, %112, %cst_112 {dimension_numbers = #tpu.dot_dimension_numbers<[1], [0], [0], [1], [0, 0, 1, 1], [], []>} : vector<48x48xf32>, vector<48x32xf32>, vector<48x32xf32> -> vector<48x32xf32>
    %cst_113 = arith.constant dense<0.000000e+00> : vector<48x32xf32>
    %157 = tpu.matmul %155, %150, %cst_113 {dimension_numbers = #tpu.dot_dimension_numbers<[1], [0], [0], [1], [0, 0, 1, 1], [], []>} : vector<48x32xf32>, vector<32x32xf32>, vector<48x32xf32> -> vector<48x32xf32>
    %cst_114 = arith.constant dense<0.000000e+00> : vector<48x32xf32>
    %158 = tpu.matmul %156, %152, %cst_114 {dimension_numbers = #tpu.dot_dimension_numbers<[1], [0], [0], [1], [0, 0, 1, 1], [], []>} : vector<48x32xf32>, vector<32x32xf32>, vector<48x32xf32> -> vector<48x32xf32>
    %159 = arith.addf %157, %158 : vector<48x32xf32>
    %160 = vector.broadcast %154 : vector<1x32xf32> to vector<48x32xf32>
    %161 = arith.addf %159, %160 : vector<48x32xf32>
    %cst_115 = arith.constant 0.000000e+00 : f32
    %162 = vector.broadcast %cst_115 : f32 to vector<48x32xf32>
    %163 = arith.maximumf %161, %162 : vector<48x32xf32>
    %c6_116 = arith.constant 6 : index
    %c0_117 = arith.constant 0 : index
    %c0_118 = arith.constant 0 : index
    %164 = vector.load %arg6[%c6_116, %c0_117, %c0_118] : memref<8x32x32xf32, #tpu.memory_space<vmem>>, vector<1x32x32xf32>
    %165 = vector.shape_cast %164 : vector<1x32x32xf32> to vector<32x32xf32>
    %c7_119 = arith.constant 7 : index
    %c0_120 = arith.constant 0 : index
    %c0_121 = arith.constant 0 : index
    %166 = vector.load %arg6[%c7_119, %c0_120, %c0_121] : memref<8x32x32xf32, #tpu.memory_space<vmem>>, vector<1x32x32xf32>
    %167 = vector.shape_cast %166 : vector<1x32x32xf32> to vector<32x32xf32>
    %c3_122 = arith.constant 3 : index
    %c0_123 = arith.constant 0 : index
    %c0_124 = arith.constant 0 : index
    %168 = vector.load %arg7[%c3_122, %c0_123, %c0_124] : memref<4x1x32xf32, #tpu.memory_space<vmem>>, vector<1x1x32xf32>
    %169 = vector.shape_cast %168 : vector<1x1x32xf32> to vector<1x32xf32>
    %cst_125 = arith.constant dense<0.000000e+00> : vector<48x32xf32>
    %170 = tpu.matmul %6, %163, %cst_125 {dimension_numbers = #tpu.dot_dimension_numbers<[1], [0], [0], [1], [0, 0, 1, 1], [], []>} : vector<48x48xf32>, vector<48x32xf32>, vector<48x32xf32> -> vector<48x32xf32>
    %cst_126 = arith.constant dense<0.000000e+00> : vector<48x32xf32>
    %171 = tpu.matmul %7, %163, %cst_126 {dimension_numbers = #tpu.dot_dimension_numbers<[1], [0], [0], [1], [0, 0, 1, 1], [], []>} : vector<48x48xf32>, vector<48x32xf32>, vector<48x32xf32> -> vector<48x32xf32>
    %cst_127 = arith.constant dense<0.000000e+00> : vector<48x32xf32>
    %172 = tpu.matmul %170, %165, %cst_127 {dimension_numbers = #tpu.dot_dimension_numbers<[1], [0], [0], [1], [0, 0, 1, 1], [], []>} : vector<48x32xf32>, vector<32x32xf32>, vector<48x32xf32> -> vector<48x32xf32>
    %cst_128 = arith.constant dense<0.000000e+00> : vector<48x32xf32>
    %173 = tpu.matmul %171, %167, %cst_128 {dimension_numbers = #tpu.dot_dimension_numbers<[1], [0], [0], [1], [0, 0, 1, 1], [], []>} : vector<48x32xf32>, vector<32x32xf32>, vector<48x32xf32> -> vector<48x32xf32>
    %174 = arith.addf %172, %173 : vector<48x32xf32>
    %175 = vector.broadcast %169 : vector<1x32xf32> to vector<48x32xf32>
    %176 = arith.addf %174, %175 : vector<48x32xf32>
    %cst_129 = arith.constant 0.000000e+00 : f32
    %177 = vector.broadcast %cst_129 : f32 to vector<48x32xf32>
    %178 = arith.maximumf %176, %177 : vector<48x32xf32>
    %179 = vector.extract_strided_slice %178 {offsets = [16, 0], sizes = [8, 32], strides = [1, 1]} : vector<48x32xf32> to vector<8x32xf32>
    %180 = vector.extract_strided_slice %178 {offsets = [40, 0], sizes = [8, 32], strides = [1, 1]} : vector<48x32xf32> to vector<8x32xf32>
    %181 = tpu.concatenate %179, %180 in 0 : vector<8x32xf32>, vector<8x32xf32> -> vector<16x32xf32>
    %182 = tpu.concatenate %148, %181 in 1 : vector<16x32xf32>, vector<16x32xf32> -> vector<16x64xf32>
    %cst_130 = arith.constant dense<0.000000e+00> : vector<16x32xf32>
    %183 = tpu.matmul %182, %10, %cst_130 {dimension_numbers = #tpu.dot_dimension_numbers<[1], [0], [0], [1], [0, 0, 1, 1], [], []>} : vector<16x64xf32>, vector<64x32xf32>, vector<16x32xf32> -> vector<16x32xf32>
    %184 = vector.broadcast %11 : vector<1x32xf32> to vector<16x32xf32>
    %185 = arith.addf %183, %184 : vector<16x32xf32>
    %186 = arith.addf %185, %115 : vector<16x32xf32>
    %187 = vector.shape_cast %186 : vector<16x32xf32> to vector<1x16x32xf32>
    %cst_131 = arith.constant dense<0.000000e+00> : vector<1xf32>
    %188 = vector.multi_reduction <add>, %187, %cst_131 [1, 2] : vector<1x16x32xf32> to vector<1xf32>
    %189 = vector.shape_cast %188 : vector<1xf32> to vector<1x1x1xf32>
    %190 = vector.extract %189[0, 0, 0] : f32 from vector<1x1x1xf32>
    %cst_132 = arith.constant 5.120000e+02 : f32
    %191 = arith.divf %190, %cst_132 : f32
    %192 = vector.broadcast %191 : f32 to vector<16x32xf32>
    %193 = arith.subf %186, %192 : vector<16x32xf32>
    %194 = arith.mulf %193, %193 : vector<16x32xf32>
    %195 = vector.shape_cast %194 : vector<16x32xf32> to vector<1x16x32xf32>
    %cst_133 = arith.constant dense<0.000000e+00> : vector<1xf32>
    %196 = vector.multi_reduction <add>, %195, %cst_133 [1, 2] : vector<1x16x32xf32> to vector<1xf32>
    %197 = vector.shape_cast %196 : vector<1xf32> to vector<1x1x1xf32>
    %198 = vector.extract %197[0, 0, 0] : f32 from vector<1x1x1xf32>
    %cst_134 = arith.constant 5.120000e+02 : f32
    %199 = arith.divf %198, %cst_134 : f32
    %200 = vector.broadcast %191 : f32 to vector<16x32xf32>
    %201 = arith.subf %186, %200 : vector<16x32xf32>
    %cst_135 = arith.constant 9.99999974E-6 : f32
    %202 = arith.addf %199, %cst_135 : f32
    %203 = math.rsqrt %202 : f32
    %204 = vector.broadcast %203 : f32 to vector<16x32xf32>
    %205 = arith.mulf %201, %204 : vector<16x32xf32>
    %206 = vector.extract_strided_slice %205 {offsets = [0, 0], sizes = [8, 32], strides = [1, 1]} : vector<16x32xf32> to vector<8x32xf32>
    %207 = vector.extract_strided_slice %5 {offsets = [40, 0], sizes = [16, 32], strides = [1, 1]} : vector<112x32xf32> to vector<16x32xf32>
    %208 = vector.extract_strided_slice %205 {offsets = [8, 0], sizes = [8, 32], strides = [1, 1]} : vector<16x32xf32> to vector<8x32xf32>
    %209 = vector.extract_strided_slice %5 {offsets = [96, 0], sizes = [16, 32], strides = [1, 1]} : vector<112x32xf32> to vector<16x32xf32>
    %210 = tpu.concatenate %206, %207, %208, %209 in 0 : vector<8x32xf32>, vector<16x32xf32>, vector<8x32xf32>, vector<16x32xf32> -> vector<48x32xf32>
    %cst_136 = arith.constant dense<0.000000e+00> : vector<16x32xf32>
    %211 = tpu.matmul %8, %210, %cst_136 {dimension_numbers = #tpu.dot_dimension_numbers<[1], [0], [0], [1], [0, 0, 1, 1], [], []>} : vector<16x48xf32>, vector<48x32xf32>, vector<16x32xf32> -> vector<16x32xf32>
    %212 = vector.broadcast %9 : vector<16x1xf32> to vector<16x32xf32>
    %213 = arith.addf %211, %212 : vector<16x32xf32>
    %c0_137 = arith.constant 0 : index
    %c0_138 = arith.constant 0 : index
    %c0_139 = arith.constant 0 : index
    %214 = vector.load %arg6[%c0_137, %c0_138, %c0_139] : memref<8x32x32xf32, #tpu.memory_space<vmem>>, vector<1x32x32xf32>
    %215 = vector.shape_cast %214 : vector<1x32x32xf32> to vector<32x32xf32>
    %c1_140 = arith.constant 1 : index
    %c0_141 = arith.constant 0 : index
    %c0_142 = arith.constant 0 : index
    %216 = vector.load %arg6[%c1_140, %c0_141, %c0_142] : memref<8x32x32xf32, #tpu.memory_space<vmem>>, vector<1x32x32xf32>
    %217 = vector.shape_cast %216 : vector<1x32x32xf32> to vector<32x32xf32>
    %c0_143 = arith.constant 0 : index
    %c0_144 = arith.constant 0 : index
    %c0_145 = arith.constant 0 : index
    %218 = vector.load %arg7[%c0_143, %c0_144, %c0_145] : memref<4x1x32xf32, #tpu.memory_space<vmem>>, vector<1x1x32xf32>
    %219 = vector.shape_cast %218 : vector<1x1x32xf32> to vector<1x32xf32>
    %cst_146 = arith.constant dense<0.000000e+00> : vector<48x32xf32>
    %220 = tpu.matmul %6, %210, %cst_146 {dimension_numbers = #tpu.dot_dimension_numbers<[1], [0], [0], [1], [0, 0, 1, 1], [], []>} : vector<48x48xf32>, vector<48x32xf32>, vector<48x32xf32> -> vector<48x32xf32>
    %cst_147 = arith.constant dense<0.000000e+00> : vector<48x32xf32>
    %221 = tpu.matmul %7, %210, %cst_147 {dimension_numbers = #tpu.dot_dimension_numbers<[1], [0], [0], [1], [0, 0, 1, 1], [], []>} : vector<48x48xf32>, vector<48x32xf32>, vector<48x32xf32> -> vector<48x32xf32>
    %cst_148 = arith.constant dense<0.000000e+00> : vector<48x32xf32>
    %222 = tpu.matmul %220, %215, %cst_148 {dimension_numbers = #tpu.dot_dimension_numbers<[1], [0], [0], [1], [0, 0, 1, 1], [], []>} : vector<48x32xf32>, vector<32x32xf32>, vector<48x32xf32> -> vector<48x32xf32>
    %cst_149 = arith.constant dense<0.000000e+00> : vector<48x32xf32>
    %223 = tpu.matmul %221, %217, %cst_149 {dimension_numbers = #tpu.dot_dimension_numbers<[1], [0], [0], [1], [0, 0, 1, 1], [], []>} : vector<48x32xf32>, vector<32x32xf32>, vector<48x32xf32> -> vector<48x32xf32>
    %224 = arith.addf %222, %223 : vector<48x32xf32>
    %225 = vector.broadcast %219 : vector<1x32xf32> to vector<48x32xf32>
    %226 = arith.addf %224, %225 : vector<48x32xf32>
    %cst_150 = arith.constant 0.000000e+00 : f32
    %227 = vector.broadcast %cst_150 : f32 to vector<48x32xf32>
    %228 = arith.maximumf %226, %227 : vector<48x32xf32>
    %c2_151 = arith.constant 2 : index
    %c0_152 = arith.constant 0 : index
    %c0_153 = arith.constant 0 : index
    %229 = vector.load %arg6[%c2_151, %c0_152, %c0_153] : memref<8x32x32xf32, #tpu.memory_space<vmem>>, vector<1x32x32xf32>
    %230 = vector.shape_cast %229 : vector<1x32x32xf32> to vector<32x32xf32>
    %c3_154 = arith.constant 3 : index
    %c0_155 = arith.constant 0 : index
    %c0_156 = arith.constant 0 : index
    %231 = vector.load %arg6[%c3_154, %c0_155, %c0_156] : memref<8x32x32xf32, #tpu.memory_space<vmem>>, vector<1x32x32xf32>
    %232 = vector.shape_cast %231 : vector<1x32x32xf32> to vector<32x32xf32>
    %c1_157 = arith.constant 1 : index
    %c0_158 = arith.constant 0 : index
    %c0_159 = arith.constant 0 : index
    %233 = vector.load %arg7[%c1_157, %c0_158, %c0_159] : memref<4x1x32xf32, #tpu.memory_space<vmem>>, vector<1x1x32xf32>
    %234 = vector.shape_cast %233 : vector<1x1x32xf32> to vector<1x32xf32>
    %cst_160 = arith.constant dense<0.000000e+00> : vector<48x32xf32>
    %235 = tpu.matmul %6, %228, %cst_160 {dimension_numbers = #tpu.dot_dimension_numbers<[1], [0], [0], [1], [0, 0, 1, 1], [], []>} : vector<48x48xf32>, vector<48x32xf32>, vector<48x32xf32> -> vector<48x32xf32>
    %cst_161 = arith.constant dense<0.000000e+00> : vector<48x32xf32>
    %236 = tpu.matmul %7, %228, %cst_161 {dimension_numbers = #tpu.dot_dimension_numbers<[1], [0], [0], [1], [0, 0, 1, 1], [], []>} : vector<48x48xf32>, vector<48x32xf32>, vector<48x32xf32> -> vector<48x32xf32>
    %cst_162 = arith.constant dense<0.000000e+00> : vector<48x32xf32>
    %237 = tpu.matmul %235, %230, %cst_162 {dimension_numbers = #tpu.dot_dimension_numbers<[1], [0], [0], [1], [0, 0, 1, 1], [], []>} : vector<48x32xf32>, vector<32x32xf32>, vector<48x32xf32> -> vector<48x32xf32>
    %cst_163 = arith.constant dense<0.000000e+00> : vector<48x32xf32>
    %238 = tpu.matmul %236, %232, %cst_163 {dimension_numbers = #tpu.dot_dimension_numbers<[1], [0], [0], [1], [0, 0, 1, 1], [], []>} : vector<48x32xf32>, vector<32x32xf32>, vector<48x32xf32> -> vector<48x32xf32>
    %239 = arith.addf %237, %238 : vector<48x32xf32>
    %240 = vector.broadcast %234 : vector<1x32xf32> to vector<48x32xf32>
    %241 = arith.addf %239, %240 : vector<48x32xf32>
    %cst_164 = arith.constant 0.000000e+00 : f32
    %242 = vector.broadcast %cst_164 : f32 to vector<48x32xf32>
    %243 = arith.maximumf %241, %242 : vector<48x32xf32>
    %244 = vector.extract_strided_slice %243 {offsets = [16, 0], sizes = [8, 32], strides = [1, 1]} : vector<48x32xf32> to vector<8x32xf32>
    %245 = vector.extract_strided_slice %243 {offsets = [40, 0], sizes = [8, 32], strides = [1, 1]} : vector<48x32xf32> to vector<8x32xf32>
    %246 = tpu.concatenate %244, %245 in 0 : vector<8x32xf32>, vector<8x32xf32> -> vector<16x32xf32>
    %c4_165 = arith.constant 4 : index
    %c0_166 = arith.constant 0 : index
    %c0_167 = arith.constant 0 : index
    %247 = vector.load %arg6[%c4_165, %c0_166, %c0_167] : memref<8x32x32xf32, #tpu.memory_space<vmem>>, vector<1x32x32xf32>
    %248 = vector.shape_cast %247 : vector<1x32x32xf32> to vector<32x32xf32>
    %c5_168 = arith.constant 5 : index
    %c0_169 = arith.constant 0 : index
    %c0_170 = arith.constant 0 : index
    %249 = vector.load %arg6[%c5_168, %c0_169, %c0_170] : memref<8x32x32xf32, #tpu.memory_space<vmem>>, vector<1x32x32xf32>
    %250 = vector.shape_cast %249 : vector<1x32x32xf32> to vector<32x32xf32>
    %c2_171 = arith.constant 2 : index
    %c0_172 = arith.constant 0 : index
    %c0_173 = arith.constant 0 : index
    %251 = vector.load %arg7[%c2_171, %c0_172, %c0_173] : memref<4x1x32xf32, #tpu.memory_space<vmem>>, vector<1x1x32xf32>
    %252 = vector.shape_cast %251 : vector<1x1x32xf32> to vector<1x32xf32>
    %cst_174 = arith.constant dense<0.000000e+00> : vector<48x32xf32>
    %253 = tpu.matmul %6, %210, %cst_174 {dimension_numbers = #tpu.dot_dimension_numbers<[1], [0], [0], [1], [0, 0, 1, 1], [], []>} : vector<48x48xf32>, vector<48x32xf32>, vector<48x32xf32> -> vector<48x32xf32>
    %cst_175 = arith.constant dense<0.000000e+00> : vector<48x32xf32>
    %254 = tpu.matmul %7, %210, %cst_175 {dimension_numbers = #tpu.dot_dimension_numbers<[1], [0], [0], [1], [0, 0, 1, 1], [], []>} : vector<48x48xf32>, vector<48x32xf32>, vector<48x32xf32> -> vector<48x32xf32>
    %cst_176 = arith.constant dense<0.000000e+00> : vector<48x32xf32>
    %255 = tpu.matmul %253, %248, %cst_176 {dimension_numbers = #tpu.dot_dimension_numbers<[1], [0], [0], [1], [0, 0, 1, 1], [], []>} : vector<48x32xf32>, vector<32x32xf32>, vector<48x32xf32> -> vector<48x32xf32>
    %cst_177 = arith.constant dense<0.000000e+00> : vector<48x32xf32>
    %256 = tpu.matmul %254, %250, %cst_177 {dimension_numbers = #tpu.dot_dimension_numbers<[1], [0], [0], [1], [0, 0, 1, 1], [], []>} : vector<48x32xf32>, vector<32x32xf32>, vector<48x32xf32> -> vector<48x32xf32>
    %257 = arith.addf %255, %256 : vector<48x32xf32>
    %258 = vector.broadcast %252 : vector<1x32xf32> to vector<48x32xf32>
    %259 = arith.addf %257, %258 : vector<48x32xf32>
    %cst_178 = arith.constant 0.000000e+00 : f32
    %260 = vector.broadcast %cst_178 : f32 to vector<48x32xf32>
    %261 = arith.maximumf %259, %260 : vector<48x32xf32>
    %c6_179 = arith.constant 6 : index
    %c0_180 = arith.constant 0 : index
    %c0_181 = arith.constant 0 : index
    %262 = vector.load %arg6[%c6_179, %c0_180, %c0_181] : memref<8x32x32xf32, #tpu.memory_space<vmem>>, vector<1x32x32xf32>
    %263 = vector.shape_cast %262 : vector<1x32x32xf32> to vector<32x32xf32>
    %c7_182 = arith.constant 7 : index
    %c0_183 = arith.constant 0 : index
    %c0_184 = arith.constant 0 : index
    %264 = vector.load %arg6[%c7_182, %c0_183, %c0_184] : memref<8x32x32xf32, #tpu.memory_space<vmem>>, vector<1x32x32xf32>
    %265 = vector.shape_cast %264 : vector<1x32x32xf32> to vector<32x32xf32>
    %c3_185 = arith.constant 3 : index
    %c0_186 = arith.constant 0 : index
    %c0_187 = arith.constant 0 : index
    %266 = vector.load %arg7[%c3_185, %c0_186, %c0_187] : memref<4x1x32xf32, #tpu.memory_space<vmem>>, vector<1x1x32xf32>
    %267 = vector.shape_cast %266 : vector<1x1x32xf32> to vector<1x32xf32>
    %cst_188 = arith.constant dense<0.000000e+00> : vector<48x32xf32>
    %268 = tpu.matmul %6, %261, %cst_188 {dimension_numbers = #tpu.dot_dimension_numbers<[1], [0], [0], [1], [0, 0, 1, 1], [], []>} : vector<48x48xf32>, vector<48x32xf32>, vector<48x32xf32> -> vector<48x32xf32>
    %cst_189 = arith.constant dense<0.000000e+00> : vector<48x32xf32>
    %269 = tpu.matmul %7, %261, %cst_189 {dimension_numbers = #tpu.dot_dimension_numbers<[1], [0], [0], [1], [0, 0, 1, 1], [], []>} : vector<48x48xf32>, vector<48x32xf32>, vector<48x32xf32> -> vector<48x32xf32>
    %cst_190 = arith.constant dense<0.000000e+00> : vector<48x32xf32>
    %270 = tpu.matmul %268, %263, %cst_190 {dimension_numbers = #tpu.dot_dimension_numbers<[1], [0], [0], [1], [0, 0, 1, 1], [], []>} : vector<48x32xf32>, vector<32x32xf32>, vector<48x32xf32> -> vector<48x32xf32>
    %cst_191 = arith.constant dense<0.000000e+00> : vector<48x32xf32>
    %271 = tpu.matmul %269, %265, %cst_191 {dimension_numbers = #tpu.dot_dimension_numbers<[1], [0], [0], [1], [0, 0, 1, 1], [], []>} : vector<48x32xf32>, vector<32x32xf32>, vector<48x32xf32> -> vector<48x32xf32>
    %272 = arith.addf %270, %271 : vector<48x32xf32>
    %273 = vector.broadcast %267 : vector<1x32xf32> to vector<48x32xf32>
    %274 = arith.addf %272, %273 : vector<48x32xf32>
    %cst_192 = arith.constant 0.000000e+00 : f32
    %275 = vector.broadcast %cst_192 : f32 to vector<48x32xf32>
    %276 = arith.maximumf %274, %275 : vector<48x32xf32>
    %277 = vector.extract_strided_slice %276 {offsets = [16, 0], sizes = [8, 32], strides = [1, 1]} : vector<48x32xf32> to vector<8x32xf32>
    %278 = vector.extract_strided_slice %276 {offsets = [40, 0], sizes = [8, 32], strides = [1, 1]} : vector<48x32xf32> to vector<8x32xf32>
    %279 = tpu.concatenate %277, %278 in 0 : vector<8x32xf32>, vector<8x32xf32> -> vector<16x32xf32>
    %280 = tpu.concatenate %246, %279 in 1 : vector<16x32xf32>, vector<16x32xf32> -> vector<16x64xf32>
    %cst_193 = arith.constant dense<0.000000e+00> : vector<16x32xf32>
    %281 = tpu.matmul %280, %10, %cst_193 {dimension_numbers = #tpu.dot_dimension_numbers<[1], [0], [0], [1], [0, 0, 1, 1], [], []>} : vector<16x64xf32>, vector<64x32xf32>, vector<16x32xf32> -> vector<16x32xf32>
    %282 = vector.broadcast %11 : vector<1x32xf32> to vector<16x32xf32>
    %283 = arith.addf %281, %282 : vector<16x32xf32>
    %284 = arith.addf %283, %213 : vector<16x32xf32>
    %285 = vector.shape_cast %284 : vector<16x32xf32> to vector<1x16x32xf32>
    %cst_194 = arith.constant dense<0.000000e+00> : vector<1xf32>
    %286 = vector.multi_reduction <add>, %285, %cst_194 [1, 2] : vector<1x16x32xf32> to vector<1xf32>
    %287 = vector.shape_cast %286 : vector<1xf32> to vector<1x1x1xf32>
    %288 = vector.extract %287[0, 0, 0] : f32 from vector<1x1x1xf32>
    %cst_195 = arith.constant 5.120000e+02 : f32
    %289 = arith.divf %288, %cst_195 : f32
    %290 = vector.broadcast %289 : f32 to vector<16x32xf32>
    %291 = arith.subf %284, %290 : vector<16x32xf32>
    %292 = arith.mulf %291, %291 : vector<16x32xf32>
    %293 = vector.shape_cast %292 : vector<16x32xf32> to vector<1x16x32xf32>
    %cst_196 = arith.constant dense<0.000000e+00> : vector<1xf32>
    %294 = vector.multi_reduction <add>, %293, %cst_196 [1, 2] : vector<1x16x32xf32> to vector<1xf32>
    %295 = vector.shape_cast %294 : vector<1xf32> to vector<1x1x1xf32>
    %296 = vector.extract %295[0, 0, 0] : f32 from vector<1x1x1xf32>
    %cst_197 = arith.constant 5.120000e+02 : f32
    %297 = arith.divf %296, %cst_197 : f32
    %298 = vector.broadcast %289 : f32 to vector<16x32xf32>
    %299 = arith.subf %284, %298 : vector<16x32xf32>
    %cst_198 = arith.constant 9.99999974E-6 : f32
    %300 = arith.addf %297, %cst_198 : f32
    %301 = math.rsqrt %300 : f32
    %302 = vector.broadcast %301 : f32 to vector<16x32xf32>
    %303 = arith.mulf %299, %302 : vector<16x32xf32>
    %304 = tpu.concatenate %303, %303, %303, %303 in 1 : vector<16x32xf32>, vector<16x32xf32>, vector<16x32xf32>, vector<16x32xf32> -> vector<16x128xf32>
    %c0_199 = arith.constant 0 : index
    %c0_200 = arith.constant 0 : index
    %305 = vector.load %arg12[%c0_199, %c0_200] : memref<1x128xf32, #tpu.memory_space<vmem>>, vector<1x128xf32>
    %306 = vector.broadcast %305 : vector<1x128xf32> to vector<16x128xf32>
    %307 = arith.mulf %304, %306 : vector<16x128xf32>
    %c0_201 = arith.constant 0 : index
    %c0_202 = arith.constant 0 : index
    %308 = vector.load %arg13[%c0_201, %c0_202] : memref<1x128xf32, #tpu.memory_space<vmem>>, vector<1x128xf32>
    %309 = vector.broadcast %308 : vector<1x128xf32> to vector<16x128xf32>
    %310 = arith.addf %307, %309 : vector<16x128xf32>
    %cst_203 = arith.constant 0.000000e+00 : f32
    %311 = vector.broadcast %cst_203 : f32 to vector<16x128xf32>
    %312 = arith.maximumf %310, %311 : vector<16x128xf32>
    %c0_204 = arith.constant 0 : index
    %c0_205 = arith.constant 0 : index
    %313 = vector.load %arg14[%c0_204, %c0_205] : memref<128x4xf32, #tpu.memory_space<vmem>>, vector<128x4xf32>
    %cst_206 = arith.constant dense<0.000000e+00> : vector<16x4xf32>
    %314 = tpu.matmul %312, %313, %cst_206 {dimension_numbers = #tpu.dot_dimension_numbers<[1], [0], [0], [1], [0, 0, 1, 1], [], []>} : vector<16x128xf32>, vector<128x4xf32>, vector<16x4xf32> -> vector<16x4xf32>
    %c0_207 = arith.constant 0 : index
    %c0_208 = arith.constant 0 : index
    %315 = vector.load %arg15[%c0_207, %c0_208] : memref<1x1xf32, #tpu.memory_space<vmem>>, vector<1x1xf32>
    %316 = vector.broadcast %315 : vector<1x1xf32> to vector<16x4xf32>
    %317 = arith.addf %314, %316 : vector<16x4xf32>
    %c0_209 = arith.constant 0 : index
    %c0_210 = arith.constant 0 : index
    %318 = vector.load %arg16[%c0_209, %c0_210] : memref<16x4xf32, #tpu.memory_space<vmem>>, vector<16x4xf32>
    tpu.vector_store %arg16[%c0_209, %c0_210], %317 {strides = array<i32>} : memref<16x4xf32, #tpu.memory_space<vmem>>, vector<16x4xf32>,
    return
  }
  func.func @transform_0(%arg0: i32) -> (i32, i32) {
    %c0_i32 = arith.constant 0 : i32
    %c0_i32_0 = arith.constant 0 : i32
    %c0_i32_1 = arith.constant 0 : i32
    return %c0_i32, %c0_i32_0 : i32, i32
  }
  func.func @transform_1(%arg0: i32) -> (i32, i32) {
    %c0_i32 = arith.constant 0 : i32
    %c0_i32_0 = arith.constant 0 : i32
    %c0_i32_1 = arith.constant 0 : i32
    return %c0_i32, %c0_i32_0 : i32, i32
  }
  func.func @transform_2(%arg0: i32) -> (i32, i32) {
    %c0_i32 = arith.constant 0 : i32
    %c0_i32_0 = arith.constant 0 : i32
    %c0_i32_1 = arith.constant 0 : i32
    return %c0_i32, %c0_i32_0 : i32, i32
  }
  func.func @transform_3(%arg0: i32) -> (i32, i32) {
    %c0_i32 = arith.constant 0 : i32
    %c0_i32_0 = arith.constant 0 : i32
    %c0_i32_1 = arith.constant 0 : i32
    return %c0_i32, %c0_i32_0 : i32, i32
  }
  func.func @transform_4(%arg0: i32) -> (i32, i32) {
    %c0_i32 = arith.constant 0 : i32
    %c0_i32_0 = arith.constant 0 : i32
    %c0_i32_1 = arith.constant 0 : i32
    return %c0_i32, %c0_i32_0 : i32, i32
  }
  func.func @transform_5(%arg0: i32) -> (i32, i32, i32) {
    %c0_i32 = arith.constant 0 : i32
    %c0_i32_0 = arith.constant 0 : i32
    %c0_i32_1 = arith.constant 0 : i32
    %c0_i32_2 = arith.constant 0 : i32
    return %c0_i32, %c0_i32_0, %c0_i32_1 : i32, i32, i32
  }
  func.func @transform_6(%arg0: i32) -> (i32, i32, i32) {
    %c0_i32 = arith.constant 0 : i32
    %c0_i32_0 = arith.constant 0 : i32
    %c0_i32_1 = arith.constant 0 : i32
    %c0_i32_2 = arith.constant 0 : i32
    return %c0_i32, %c0_i32_0, %c0_i32_1 : i32, i32, i32
  }
  func.func @transform_7(%arg0: i32) -> (i32, i32) {
    %c0_i32 = arith.constant 0 : i32
    %c0_i32_0 = arith.constant 0 : i32
    %c0_i32_1 = arith.constant 0 : i32
    return %c0_i32, %c0_i32_0 : i32, i32
  }
  func.func @transform_8(%arg0: i32) -> (i32, i32) {
    %c0_i32 = arith.constant 0 : i32
    %c0_i32_0 = arith.constant 0 : i32
    %c0_i32_1 = arith.constant 0 : i32
    return %c0_i32, %c0_i32_0 : i32, i32
  }
  func.func @transform_9(%arg0: i32) -> (i32, i32) {
    %c0_i32 = arith.constant 0 : i32
    %c0_i32_0 = arith.constant 0 : i32
    %c0_i32_1 = arith.constant 0 : i32
    return %c0_i32, %c0_i32_0 : i32, i32
  }
  func.func @transform_10(%arg0: i32) -> (i32, i32) {
    %c0_i32 = arith.constant 0 : i32
    %c0_i32_0 = arith.constant 0 : i32
    %c0_i32_1 = arith.constant 0 : i32
    return %c0_i32, %c0_i32_0 : i32, i32
  }
  func.func @transform_11(%arg0: i32) -> (i32, i32) {
    %c0_i32 = arith.constant 0 : i32
    %c0_i32_0 = arith.constant 0 : i32
    %c0_i32_1 = arith.constant 0 : i32
    return %c0_i32, %c0_i32_0 : i32, i32
  }
  func.func @transform_12(%arg0: i32) -> (i32, i32) {
    %c0_i32 = arith.constant 0 : i32
    %c0_i32_0 = arith.constant 0 : i32
    %c0_i32_1 = arith.constant 0 : i32
    return %c0_i32, %c0_i32_0 : i32, i32
  }
  func.func @transform_13(%arg0: i32) -> (i32, i32) {
    %c0_i32 = arith.constant 0 : i32
    %c0_i32_0 = arith.constant 0 : i32
    %c0_i32_1 = arith.constant 0 : i32
    return %c0_i32, %c0_i32_0 : i32, i32
  }
  func.func @transform_14(%arg0: i32) -> (i32, i32) {
    %c0_i32 = arith.constant 0 : i32
    %c0_i32_0 = arith.constant 0 : i32
    %c0_i32_1 = arith.constant 0 : i32
    return %c0_i32, %c0_i32_0 : i32, i32
  }
  func.func @transform_15(%arg0: i32) -> (i32, i32) {
    %c0_i32 = arith.constant 0 : i32
    %c0_i32_0 = arith.constant 0 : i32
    %c0_i32_1 = arith.constant 0 : i32
    return %c0_i32, %c0_i32_0 : i32, i32
  }
}

</mosaic_0001>

<bundles_post_ra>
// kernel: _lambda_.1
= control target key start
LH: loop header
LB: loop body
LE: loop exit
PB: predicated region body
PF: predicated region fallthrough
CT: control target
= control target key end

     0   :  { %s9370_s0 = inlined_call_operand.vmem [shape: f32[112,4], index: 0, kind: input, shape index: {}]   ;;  %s9371_s1 = inlined_call_operand.vmem [shape: f32[4,32], index: 1, kind: input, shape index: {}]   ;;  %s9372_s2 = inlined_call_operand.vmem [shape: f32[1,32], index: 2, kind: input, shape index: {}]   ;;  %s9373_s3 = inlined_call_operand.hbm [shape: f32[48,48], index: 3, kind: input, shape index: {}]   ;;  %s9374_s4 = inlined_call_operand.hbm [shape: f32[48,48], index: 4, kind: input, shape index: {}]   ;;  %s9375_s5 = inlined_call_operand.hbm [shape: f32[8,32,32], index: 5, kind: input, shape index: {}]   ;;  %s9376_s6 = inlined_call_operand.vmem [shape: f32[4,1,32], index: 6, kind: input, shape index: {}]   ;;  %s9377_s7 = inlined_call_operand.hbm [shape: f32[16,48], index: 7, kind: input, shape index: {}]   ;;  %s9378_s8 = inlined_call_operand.vmem [shape: f32[16,1], index: 8, kind: input, shape index: {}]   ;;  %s9379_s9 = inlined_call_operand.vmem [shape: f32[64,32], index: 9, kind: input, shape index: {}]   ;;  %s9380_s10 = inlined_call_operand.vmem [shape: f32[1,32], index: 10, kind: input, shape index: {}]   ;;  %s9381_s11 = inlined_call_operand.vmem [shape: f32[1,128], index: 11, kind: input, shape index: {}]   ;;  %s9382_s12 = inlined_call_operand.vmem [shape: f32[1,128], index: 12, kind: input, shape index: {}]   ;;  %s9383_s13 = inlined_call_operand.vmem [shape: f32[128,4], index: 13, kind: input, shape index: {}]   ;;  %s9384_s14 = inlined_call_operand.<no memory space> [shape: f32[1,1], index: 14, kind: input, shape index: {}]   ;;  %s9385_s15 = inlined_call_operand.vmem [shape: f32[16,4], index: 15, kind: output, shape index: {}]  }
   0x1   :  { %v20_v0 = vstv %s9384_s14 }
   0x2   :  { %21 = vst [vmem:[#allocation2] sm:$0x1] %v20_v0 }
   0x3   :  { %22 = vsyncpa [#allocation4], 0 }
   0x4   :  { %23 = vsyncpa [#allocation6], 0 }
   0x5   :  { %24 = vsyncpa [#allocation9], 0  ;;  %s8125_s20 = smov [#allocation5]   ;;  %s8126_s22 = smov [#allocation3]  }
   0x6   :  { %s48_s21 = sshll.u32 %s8125_s20, 4  ;;  %s36_s23 = sshll.u32 %s8126_s22, 4  ;;  %s49_s21 = int_to_ptr.vmem [resolvable:$true] %s48_s21  ;;  %s8218_s23 = int_to_ptr.vmem [resolvable:$true] %s36_s23 }
   0x7   :  { %s8031_s26 = scalar_lea.hbm %s9374_s4, 768 }
   0x8   :  { %p8032_p0 = scmp.ne.s32.totalorder %s9374_s4, %s8031_s26  ;;  %p8035_p1 = scmp.lt.u32.totalorder %s8031_s26, %s9374_s4 }
   0xa   :  { %p8037_p2 = pnand %p8035_p1, %p8032_p0 }
   0xc   :  { %8040 = shalt.err (!%p8037_p2)
}
   0xd   :  { %s8041_s30 = scalar_lea.vmem %s49_s21, 768  ;;  %p8046_p4 = scmp.lt.s32.totalorder %s49_s21, %s49_s21 }
   0xe   :  { %p8042_p3 = scmp.ne.s32.totalorder %s49_s21, %s8041_s30  ;;  %p8047_p5 = scmp.lt.s32.totalorder %s8041_s30, %s8041_s30 }
  0x10   :  { %p8048_p6 = por %p8047_p5, %p8046_p4 }
  0x12   :  { %p8049_p7 = pnand %p8048_p6, %p8042_p3 }
  0x14   :  { %8052 = shalt.err (!%p8049_p7)
}
  0x15   :  { %s8127_s16 = smov 128   ;;  %s8128_s17 = smov 8  }
  0x16   :  { %54 = dma.hbm_to_vmem [thread:$0]  %s9374_s4, 768, %s49_s21, [#allocation6], %s8127_s16, %s8127_s16, %s8128_s17  }
  0x17   :  { %s8053_s24 = scalar_lea.hbm %s9373_s3, 768 }
  0x18   :  { %p8054_p8 = scmp.ne.s32.totalorder %s9373_s3, %s8053_s24  ;;  %p8057_p9 = scmp.lt.u32.totalorder %s8053_s24, %s9373_s3 }
  0x1a   :  { %p8059_p10 = pnand %p8057_p9, %p8054_p8 }
  0x1c   :  { %8062 = shalt.err (!%p8059_p10)
}
  0x1d   :  { %s8063_s14 = scalar_lea.vmem %s8218_s23, 768  ;;  %p8068_p12 = scmp.lt.s32.totalorder %s8218_s23, %s8218_s23 }
  0x1e   :  { %p8064_p11 = scmp.ne.s32.totalorder %s8218_s23, %s8063_s14  ;;  %p8069_p13 = scmp.lt.s32.totalorder %s8063_s14, %s8063_s14 }
  0x20   :  { %p8070_p0 = por %p8069_p13, %p8068_p12 }
  0x22   :  { %p8071_p1 = pnand %p8070_p0, %p8064_p11 }
  0x24   :  { %8074 = shalt.err (!%p8071_p1)
}
  0x25   :  { %42 = dma.hbm_to_vmem [thread:$0]  %s9373_s3, 768, %s8218_s23, [#allocation4], %s8127_s16, %s8127_s16, %s8128_s17  }
  0x26   :  { %s8129_s29 = smov [#allocation7]   ;;  %s8130_s18 = smov [#allocation8]  }
  0x27   :  { %s60_s30 = sshll.u32 %s8129_s29, 4  ;;  %s74_s19 = sshll.u32 %s8130_s18, 4  ;;  %s61_s30 = int_to_ptr.vmem [resolvable:$true] %s60_s30  ;;  %s8255_s19 = int_to_ptr.vmem [resolvable:$true] %s74_s19 }
  0x28   :  { %s8075_s24 = scalar_lea.hbm %s9375_s5, 4096 }
  0x29   :  { %p8076_p2 = scmp.ne.s32.totalorder %s9375_s5, %s8075_s24  ;;  %p8079_p3 = scmp.lt.u32.totalorder %s8075_s24, %s9375_s5 }
  0x2b   :  { %p8081_p4 = pnand %p8079_p3, %p8076_p2 }
  0x2d   :  { %8084 = shalt.err (!%p8081_p4)
}
  0x2e   :  { %s8085_s3 = scalar_lea.vmem %s61_s30, 4096  ;;  %p8090_p6 = scmp.lt.s32.totalorder %s61_s30, %s61_s30 }
  0x2f   :  { %p8086_p5 = scmp.ne.s32.totalorder %s61_s30, %s8085_s3  ;;  %p8091_p7 = scmp.lt.s32.totalorder %s8085_s3, %s8085_s3 }
  0x31   :  { %p8092_p8 = por %p8091_p7, %p8090_p6 }
  0x33   :  { %p8093_p9 = pnand %p8092_p8, %p8086_p5 }
  0x35   :  { %8096 = shalt.err (!%p8093_p9)
}
  0x36   :  { %66 = dma.hbm_to_vmem [thread:$0]  %s9375_s5, 4096, %s61_s30, [#allocation6], %s8127_s16, %s8127_s16, %s8128_s17  }
  0x37   :  { %s8097_s29 = scalar_lea.hbm %s9377_s7, 256 }
  0x38   :  { %p8098_p10 = scmp.ne.s32.totalorder %s9377_s7, %s8097_s29  ;;  %p8101_p11 = scmp.lt.u32.totalorder %s8097_s29, %s9377_s7 }
  0x3a   :  { %p8103_p12 = pnand %p8101_p11, %p8098_p10 }
  0x3c   :  { %8106 = shalt.err (!%p8103_p12)
}
  0x3d   :  { %s8107_s25 = scalar_lea.vmem %s8255_s19, 256  ;;  %p8112_p0 = scmp.lt.s32.totalorder %s8255_s19, %s8255_s19 }
  0x3e   :  { %p8108_p13 = scmp.ne.s32.totalorder %s8255_s19, %s8107_s25  ;;  %p8113_p1 = scmp.lt.s32.totalorder %s8107_s25, %s8107_s25 }
  0x40   :  { %p8114_p2 = por %p8113_p1, %p8112_p0 }
  0x42   :  { %p8115_p3 = pnand %p8114_p2, %p8108_p13 }
  0x44   :  { %8118 = shalt.err (!%p8115_p3)
}
  0x45   :  { %80 = dma.hbm_to_vmem [thread:$0]  %s9377_s7, 256, %s8255_s19, [#allocation9], %s8127_s16, %s8127_s16, %s8128_s17  }
  0x46   :  { %8119 = dma.done.wait [#allocation4], 768  }
  0x47   :  { %8120 = vsyncadd [#allocation4], 4294966528 }
  0x48   :  { %8121 = dma.done.wait [#allocation6], 4864  }
  0x49   :  { %8122 = vsyncadd [#allocation6], 4294962432 }
  0x4a   :  { %8123 = dma.done.wait [#allocation9], 256  }
  0x4b   :  { %8124 = vsyncadd [#allocation9], 4294967040  ;;  %vm172_vm0 = vcmask 1043456   ;;  %vm129_vm1 = vcmask 31744   ;;  %v121_v1 = vld [vmem:[%s9371_s1] sm:$0xf] }
  0x4c   :  { %v107_v2 = vld [vmem:[%s9370_s0] sm:$0xff]  ;;  %v108_v3 = vld [vmem:[%s9370_s0 + $0x8] sm:$0xff]  ;;  %6450 = vmatprep.subr.msk.mxu0 %vm172_vm0, %v121_v1  ;;  %v109_v4 = vld [vmem:[%s9370_s0 + $0x10] sm:$0xff]  ;;  %7920 = vmatprep.subr.msk.mxu1 %vm172_vm0, %v121_v1  ;;  %vm346_vm2 = vcmask 392192   ;;  %vm664_vm3 = vcmask 261120   ;;  %s8132_s29 = smov 32  }
  0x4d   :  { %6452 = vmatprep.mubr.msk.f32.mxu0 %vm129_vm1, %v107_v2  ;;  %v113_v5 = vld [vmem:[%s9370_s0 + $0x30] sm:$0xff]  ;;  %6451 = vmatpush3.msk.msra.mxu0 %vm172_vm0, %v121_v1  ;;  %v114_v6 = vld [vmem:[%s9370_s0 + $0x38] sm:$0xff]  ;;  %v115_v7 = vld [vmem:[%s9370_s0 + $0x40] sm:$0xff]  ;;  %vm2005_vm4 = vcmask 523264   ;;  %vm5483_vm5 = vcmask 785408  }
  0x4e   :  { %6453 = vmatmul.mubr.msk.f32.vlgmr.msra.gmra.mrb[0].mxu0 %vm129_vm1, %v108_v3  ;;  %7921 = vmatpush3.msk.msra.mxu1 %vm172_vm0, %v121_v1  ;;  %v110_v8 = vld [vmem:[%s9370_s0 + $0x18] sm:$0xff]  ;;  %v116_v9 = vld [vmem:[%s9370_s0 + $0x48] sm:$0xff]  ;;  %v117_v10 = vld [vmem:[%s9370_s0 + $0x50] sm:$0xff] }
  0x4f   :  { %6455 = vmatprep.mubr.msk.f32.mxu0 %vm129_vm1, %v109_v4  ;;  %6461 = vmatprep.mubr.msk.f32.mxu1 %vm129_vm1, %v113_v5  ;;  %v118_v11 = vld [vmem:[%s9370_s0 + $0x58] sm:$0xff]  ;;  %v111_v12 = vld [vmem:[%s9370_s0 + $0x20] sm:$0xff]  ;;  %v112_v13 = vld [vmem:[%s9370_s0 + $0x28] sm:$0xff] }
  0x50   :  { %6462 = vmatmul.mubr.msk.f32.vlgmr.msra.gmra.mrb[0].mxu1 %vm129_vm1, %v114_v6  ;;  %v119_v14 = vld [vmem:[%s9370_s0 + $0x60] sm:$0xff]  ;;  %v120_v15 = vld [vmem:[%s9370_s0 + $0x68] sm:$0xff]  ;;  %v8351_v16 = vld [vmem:[#allocation5] sm:$0xff] }
  0x51   :  { %6464 = vmatprep.mubr.msk.f32.mxu1 %vm129_vm1, %v115_v7  ;;  %v8353_v17 = vld [vmem:[#allocation8] sm:$0xff]  ;;  %v8362_v18 = vld [vmem:[%s9372_s2] ss:$0 sm:$0xff]  ;;  %v8376_v37 = vld [vmem:[#allocation8 + $0x8] sm:$0xff] }
  0x52   :  { %6456 = vmatmul.mubr.msk.f32.gmra.mrb[2].mxu0 %vm129_vm1, %v110_v8  ;;  %v8374_v36 = vld [vmem:[#allocation5 + $0x8] sm:$0xff]  ;;  %v8378_v38 = vld [vmem:[#allocation5 + $0x10] sm:$0xff]  ;;  %v8388_v40 = vld [vmem:[#allocation5 + $0x18] sm:$0xff] }
  0x53   :  { %6458 = vmatprep.mubr.msk.f32.mxu0 %vm129_vm1, %v111_v12  ;;  %v8380_v39 = vld [vmem:[#allocation3] sm:$0xff]  ;;  %v8390_v41 = vld [vmem:[#allocation5 + $0x20] sm:$0xff]  ;;  %v434_v43 = vld [vmem:[#allocation7 + $0x28] sm:$0xff] }
  0x54   :  { %6465 = vmatmul.mubr.msk.f32.gmra.mrb[2].mxu1 %vm129_vm1, %v116_v9  ;;  %v433_v42 = vld [vmem:[#allocation7 + $0x20] sm:$0xff]  ;;  %v8398_v44 = vld [vmem:[#allocation5 + $0x28] sm:$0xff]  ;;  %v435_v46 = vld [vmem:[#allocation7 + $0x30] sm:$0xff] }
  0x55   :  { %6467 = vmatprep.mubr.msk.f32.mxu1 %vm129_vm1, %v117_v10  ;;  %v8400_v45 = vpack.c.bf16 %v434_v43, %v433_v42  ;;  %v436_v47 = vld [vmem:[#allocation7 + $0x38] sm:$0xff]  ;;  %v8404_v48 = vld [vmem:[#allocation3 + $0x8] sm:$0xff]  ;;  %v8408_v49 = vld [vmem:[#allocation3 + $0x10] sm:$0xff] }
  0x56   :  { %6459 = vmatmul.mubr.msk.f32.gmra.mrb[4].mxu0 %vm129_vm1, %v112_v13  ;;  %v8411_v50 = vpack.c.bf16 %v436_v47, %v435_v46  ;;  %v8417_v51 = vld [vmem:[#allocation3 + $0x18] sm:$0xff]  ;;  %v8420_v52 = vld [vmem:[#allocation3 + $0x20] sm:$0xff]  ;;  %v8427_v53 = vld [vmem:[#allocation3 + $0x28] sm:$0xff] }
  0x57   :  { %6521 = vmatprep.mubr.msk.f32.mxu0 %vm346_vm2, %v8351_v16  ;;  %v428_v2 = vld [vmem:[#allocation7] sm:$0xff]  ;;  %v429_v3 = vld [vmem:[#allocation7 + $0x8] sm:$0xff]  ;;  %v430_v5 = vld [vmem:[#allocation7 + $0x10] sm:$0xff] }
  0x58   :  { %6468 = vmatmul.mubr.msk.f32.gmra.mrb[4].mxu1 %vm129_vm1, %v118_v11  ;;  %v8444_v4 = vpack.c.bf16 %v429_v3, %v428_v2  ;;  %v431_v6 = vld [vmem:[#allocation7 + $0x18] sm:$0xff]  ;;  %v911_v2 = vld [vmem:[#allocation7 + $0x48] sm:$0xff] }
  0x59   :  { %6470 = vmatprep.mubr.msk.f32.mxu1 %vm129_vm1, %v119_v14  ;;  %v8451_v9 = vpack.c.bf16 %v431_v6, %v430_v5  ;;  %v912_v5 = vld [vmem:[#allocation7 + $0x50] sm:$0xff]  ;;  %v913_v6 = vld [vmem:[#allocation7 + $0x58] sm:$0xff] }
  0x5c   :  { %6471 = vmatmul.mubr.msk.f32.gmra.mrb[6].mxu1 %vm129_vm1, %v120_v15 }
  0x5d   :  { %6485 = vmatprep.mubr.msk.f32.mxu1 %vm346_vm2, %v8353_v17 }
 0x121   :  { %v6454_v19 = vpop.f32.mrb[0].mxu0 }
 0x122   :  { %v248_v20 = vadd.f32 %v6454_v19, %v8362_v18  ;;  %v242_v21 = vpop.f32.mrb[1].mxu0 }
 0x123   :  { %v243_v22 = vadd.f32 %v8362_v18, %v242_v21  ;;  %v6463_v23 = vpop.f32.mrb[0].mxu1 }
 0x124   :  { %v8366_v24 = vpop.f32.mrb[1].mxu1  ;;  %v278_v27 = vadd.f32 %v6463_v23, %v8362_v18  ;;  %v8503_v23 = vld [vmem:[%s9376_s6] ss:$0 sm:$0xff] }
 0x125   :  { %v7396_v25 = vpack.c.bf16 %v248_v20, %v243_v22  ;;  %v8368_v26 = vpop.f32.mrb[2].mxu0 }
 0x126   :  { %v252_v28 = vpop.f32.mrb[3].mxu0 }
 0x127   :  { %v253_v29 = vadd.f32 %v8362_v18, %v252_v28  ;;  %7397 = vmatprep.subr.bf16.mxu1 %v7396_v25  ;;  %7421 = vmatprep.subr.bf16.mxu0 %v7396_v25  ;;  %v6466_v30 = vpop.f32.mrb[2].mxu1 }
 0x128   :  { %7399 = vmatpush3.bf16.msra.mxu1 %v7396_v25  ;;  %7423 = vmatpush3.bf16.msra.mxu0 %v7396_v25  ;;  %v288_v31 = vadd.f32 %v6466_v30, %v8362_v18  ;;  %v282_v32 = vpop.f32.mrb[3].mxu1 }
 0x129   :  { %v7400_v33 = vpack.c.bf16 %v278_v27, %v253_v29  ;;  %v283_v34 = vadd.f32 %v8362_v18, %v282_v32  ;;  %v8434_v58 = vpop.f32.mrb[4].mxu0 }
 0x12a   :  { %v8438_v60 = vpop.f32.mrb[5].mxu0 }
 0x12b   :  { %v7404_v35 = vpack.c.bf16 %v288_v31, %v283_v34  ;;  %7401 = vmatprep.subr.bf16.mxu1 %v7400_v33  ;;  %7425 = vmatprep.subr.bf16.mxu0 %v7400_v33  ;;  %v6469_v54 = vpop.f32.mrb[4].mxu1 }
 0x12c   :  { %7403 = vmatpush3.bf16.msra.mxu1 %v7400_v33  ;;  %7427 = vmatpush3.bf16.msra.mxu0 %v7400_v33  ;;  %v298_v55 = vadd.f32 %v6469_v54, %v8362_v18  ;;  %v292_v56 = vpop.f32.mrb[5].mxu1 }
 0x12d   :  { %7405 = vmatprep.subr.bf16.mxu1 %v7404_v35  ;;  %7429 = vmatprep.subr.bf16.mxu0 %v7404_v35  ;;  %v293_v57 = vadd.f32 %v8362_v18, %v292_v56 }
 0x12f   :  { %v8436_v59 = vpack.c.bf16 %v298_v55, %v293_v57  ;;  %v6472_v61 = vpop.f32.mrb[6].mxu1 }
 0x130   :  { %7407 = vmatpush3.bf16.msra.mxu1 %v7404_v35  ;;  %7431 = vmatpush3.bf16.msra.mxu0 %v7404_v35  ;;  %v308_v62 = vadd.f32 %v6472_v61, %v8362_v18  ;;  %v302_v63 = vpop.f32.mrb[7].mxu1 }
 0x131   :  { %7409 = vmatprep.subr.bf16.mxu1 %v7396_v25  ;;  %v303_v0 = vadd.f32 %v8362_v18, %v302_v63 }
 0x133   :  { %6522 = vmatmul.mubr.msk.f32.vlgmr.msra.gmra.mrb[6].mxu0 %vm346_vm2, %v8374_v36  ;;  %6486 = vmatmul.mubr.msk.f32.vlgmr.msra.gmra.mrb[8].mxu1 %vm346_vm2, %v8376_v37  ;;  %v8442_v1 = vpack.c.bf16 %v308_v62, %v303_v0  ;;  %v910_v0 = vld [vmem:[#allocation7 + $0x40] sm:$0xff] }
 0x134   :  { %7411 = vmatpush3.bf16.msra.mxu1 %v7396_v25  ;;  %6524 = vmatprep.mubr.msk.f32.mxu0 %vm346_vm2, %v8378_v38  ;;  %v8519_v3 = vpack.c.bf16 %v911_v2, %v910_v0  ;;  %v1340_v0 = vld [vmem:[#allocation7 + $0x80] sm:$0xff]  ;;  %v1341_v2 = vld [vmem:[#allocation7 + $0x88] sm:$0xff] }
 0x135   :  { %7413 = vmatprep.subr.bf16.mxu1 %v7400_v33  ;;  %6500 = vmatprep.mubr.msk.f32.mxu1 %vm346_vm2, %v8380_v39  ;;  %9387 = vst [vmem:[#allocation13_spill] sm:$0xff] %v8442_v1 }
 0x137   :  { %6525 = vmatmul.mubr.msk.f32.gmra.mrb[8].mxu0 %vm346_vm2, %v8388_v40 }
 0x138   :  { %7415 = vmatpush3.bf16.msra.mxu1 %v7400_v33  ;;  %6527 = vmatprep.mubr.msk.f32.mxu0 %vm346_vm2, %v8390_v41 }
 0x139   :  { %7417 = vmatprep.subr.bf16.mxu1 %v7404_v35 }
 0x13b   :  { %6528 = vmatmul.mubr.msk.f32.gmra.mrb[10].mxu0 %vm346_vm2, %v8398_v44 }
 0x13c   :  { %7419 = vmatpush3.bf16.msra.mxu1 %v7404_v35  ;;  %6576 = vmatprep.mubr.msk.f32.mxu0 %vm346_vm2, %v8380_v39 }
 0x13d   :  { %7433 = vmatprep.subr.bf16.mxu1 %v8400_v45 }
 0x13f   :  { %6501 = vmatmul.mubr.msk.f32.vlgmr.msra.gmra.mrb[10].mxu1 %vm346_vm2, %v8404_v48 }
 0x140   :  { %6503 = vmatprep.mubr.msk.f32.mxu1 %vm346_vm2, %v8408_v49  ;;  %7435 = vmatpush3.bf16.msra.mxu1 %v8400_v45 }
 0x141   :  { %7437 = vmatprep.subr.bf16.mxu1 %v8411_v50 }
 0x143   :  { %6504 = vmatmul.mubr.msk.f32.gmra.mrb[12].mxu1 %vm346_vm2, %v8417_v51 }
 0x144   :  { %6506 = vmatprep.mubr.msk.f32.mxu1 %vm346_vm2, %v8420_v52  ;;  %7439 = vmatpush3.bf16.msra.mxu1 %v8411_v50 }
 0x145   :  { %7441 = vmatprep.subr.bf16.mxu1 %v8444_v4 }
 0x147   :  { %6507 = vmatmul.mubr.msk.f32.gmra.mrb[14].mxu1 %vm346_vm2, %v8427_v53 }
 0x206   :  { %v8447_v7 = vpop.f32.mrb[6].mxu0 }
 0x207   :  { %v8449_v8 = vpop.f32.mrb[7].mxu0 }
 0x208   :  { %6538 = vmatprep.mubr.msk.f32.mxu1 %vm664_vm3, %v8449_v8 }
 0x209   :  { %6539 = vmatmul.mubr.msk.f32.vlgmr.msra.gmra.mrb[16].mxu1 %vm664_vm3, %v8447_v7 }
 0x20a   :  { %v8457_v10 = vpop.f32.mrb[8].mxu0  ;;  %7443 = vmatpush3.bf16.msra.mxu1 %v8444_v4 }
 0x20b   :  { %v8460_v11 = vpop.f32.mrb[9].mxu0  ;;  %7445 = vmatprep.subr.bf16.mxu1 %v8451_v9 }
 0x20c   :  { %6541 = vmatprep.mubr.msk.f32.mxu1 %vm664_vm3, %v8460_v11 }
 0x20d   :  { %6542 = vmatmul.mubr.msk.f32.gmra.mrb[18].mxu1 %vm664_vm3, %v8457_v10 }
 0x20e   :  { %v8467_v12 = vpop.f32.mrb[10].mxu0  ;;  %7447 = vmatpush3.bf16.msra.mxu1 %v8451_v9 }
 0x20f   :  { %v8470_v13 = vpop.f32.mrb[11].mxu0 }
 0x210   :  { %6544 = vmatprep.mubr.msk.f32.mxu1 %vm664_vm3, %v8470_v13 }
 0x211   :  { %6545 = vmatmul.mubr.msk.f32.gmra.mrb[20].mxu1 %vm664_vm3, %v8467_v12 }
 0x212   :  { %v8476_v14 = vpop.f32.mrb[10].mxu1 }
 0x213   :  { %v8478_v15 = vpop.f32.mrb[11].mxu1 }
 0x214   :  { %6555 = vmatprep.mubr.msk.f32.mxu1 %vm664_vm3, %v8478_v15 }
 0x215   :  { %6556 = vmatmul.mubr.msk.f32.vlgmr.msra.gmra.mrb[16].mxu1 %vm664_vm3, %v8476_v14 }
 0x216   :  { %v8484_v19 = vpop.f32.mrb[12].mxu1 }
 0x217   :  { %v8486_v20 = vpop.f32.mrb[13].mxu1 }
 0x218   :  { %6558 = vmatprep.mubr.msk.f32.mxu1 %vm664_vm3, %v8486_v20 }
 0x219   :  { %6559 = vmatmul.mubr.msk.f32.gmra.mrb[18].mxu1 %vm664_vm3, %v8484_v19 }
 0x21a   :  { %v8492_v21 = vpop.f32.mrb[14].mxu1 }
 0x21b   :  { %v8494_v22 = vpop.f32.mrb[15].mxu1 }
 0x21c   :  { %6561 = vmatprep.mubr.msk.f32.mxu1 %vm664_vm3, %v8494_v22 }
 0x21d   :  { %6562 = vmatmul.mubr.msk.f32.gmra.mrb[20].mxu1 %vm664_vm3, %v8492_v21 }
 0x2e8   :  { %v6557_v25 = vpop.f32.mrb[16].mxu1 }
 0x2e9   :  { %v898_v27 = vadd.f32 %v6557_v25, %v8503_v23  ;;  %v862_v28 = vpop.f32.mrb[17].mxu1  ;;  %v8526_v25 = vpack.c.bf16 %v913_v6, %v912_v5 }
 0x2ea   :  { %v897_v29 = vadd.f32 %v8503_v23, %v862_v28  ;;  %v916_v28 = vld [vmem:[#allocation7 + $0x68] sm:$0xff] }
 0x2eb   :  { %v904_v30 = vmax.f32 %v898_v27, 0.0  ;;  %v915_v27 = vld [vmem:[#allocation7 + $0x60] sm:$0xff] }
 0x2ec   :  { %v903_v31 = vmax.f32 %v897_v29, 0.0  ;;  %v6560_v32 = vpop.f32.mrb[18].mxu1  ;;  %v8541_v29 = vpack.c.bf16 %v916_v28, %v915_v27  ;;  %v8566_v27 = vpack.c.bf16 %v1341_v2, %v1340_v0 }
 0x2ed   :  { %v900_v33 = vadd.f32 %v6560_v32, %v8503_v23  ;;  %v872_v34 = vpop.f32.mrb[19].mxu1 }
 0x2ee   :  { %v7448_v35 = vpack.c.bf16 %v904_v30, %v903_v31  ;;  %v899_v42 = vadd.f32 %v8503_v23, %v872_v34  ;;  %7473 = vmatprep.subr.bf16.mxu1 %v8541_v29  ;;  %v917_v30 = vld [vmem:[#allocation7 + $0x70] sm:$0xff]  ;;  %v918_v31 = vld [vmem:[#allocation7 + $0x78] sm:$0xff]  ;;  %v1346_v34 = vld [vmem:[#allocation7 + $0xa8] sm:$0xff] }
 0x2ef   :  { %v906_v43 = vmax.f32 %v900_v33, 0.0  ;;  %7475 = vmatpush3.bf16.msra.mxu1 %v8541_v29  ;;  %v8545_v32 = vpack.c.bf16 %v918_v31, %v917_v30  ;;  %v1345_v33 = vld [vmem:[#allocation7 + $0xa0] sm:$0xff]  ;;  %v1342_v31 = vld [vmem:[#allocation7 + $0x90] sm:$0xff] }
 0x2f0   :  { %v905_v46 = vmax.f32 %v899_v42, 0.0  ;;  %v6563_v47 = vpop.f32.mrb[20].mxu1  ;;  %7449 = vmatprep.subr.bf16.mxu0 %v7448_v35 }
 0x2f1   :  { %v902_v54 = vadd.f32 %v6563_v47, %v8503_v23  ;;  %v882_v55 = vpop.f32.mrb[21].mxu1  ;;  %7451 = vmatpush3.bf16.msra.mxu0 %v7448_v35  ;;  %7477 = vmatprep.subr.bf16.mxu1 %v8545_v32 }
 0x2f2   :  { %v7452_v56 = vpack.c.bf16 %v906_v43, %v905_v46  ;;  %v901_v57 = vadd.f32 %v8503_v23, %v882_v55 }
 0x2f3   :  { %v908_v61 = vmax.f32 %v902_v54, 0.0  ;;  %7479 = vmatpush3.bf16.msra.mxu1 %v8545_v32 }
 0x2f4   :  { %v907_v62 = vmax.f32 %v901_v57, 0.0  ;;  %7453 = vmatprep.subr.bf16.mxu0 %v7452_v56  ;;  %v1348_v57 = vld [vmem:[#allocation7 + $0xb8] sm:$0xff] }
 0x2f5   :  { %7455 = vmatpush3.bf16.msra.mxu0 %v7452_v56 }
 0x2f6   :  { %v7456_v63 = vpack.c.bf16 %v908_v61, %v907_v62 }
 0x2f8   :  { %7457 = vmatprep.subr.bf16.mxu0 %v7456_v63 }
 0x2f9   :  { %7459 = vmatpush3.bf16.msra.mxu0 %v7456_v63 }
 0x2fa   :  { %7461 = vmatprep.subr.bf16.mxu0 %v7448_v35 }
 0x2fc   :  { %6577 = vmatmul.mubr.msk.f32.vlgmr.msra.gmra.mrb[12].mxu0 %vm346_vm2, %v8404_v48 }
 0x2fd   :  { %7463 = vmatpush3.bf16.msra.mxu0 %v7448_v35  ;;  %6579 = vmatprep.mubr.msk.f32.mxu0 %vm346_vm2, %v8408_v49  ;;  %v8549_v35 = vpack.c.bf16 %v1346_v34, %v1345_v33  ;;  %v1343_v33 = vld [vmem:[#allocation7 + $0x98] sm:$0xff] }
 0x2fe   :  { %7465 = vmatprep.subr.bf16.mxu0 %v7452_v56  ;;  %v8576_v34 = vpack.c.bf16 %v1343_v33, %v1342_v31 }
 0x2ff   :  { %7489 = vmatprep.subr.bf16.mxu1 %v8549_v35 }
 0x300   :  { %6580 = vmatmul.mubr.msk.f32.gmra.mrb[14].mxu0 %vm346_vm2, %v8417_v51 }
 0x301   :  { %7467 = vmatpush3.bf16.msra.mxu0 %v7452_v56  ;;  %6582 = vmatprep.mubr.msk.f32.mxu0 %vm346_vm2, %v8420_v52  ;;  %v1347_v56 = vld [vmem:[#allocation7 + $0xb0] sm:$0xff] }
 0x302   :  { %7469 = vmatprep.subr.bf16.mxu0 %v7456_v63 }
 0x304   :  { %6583 = vmatmul.mubr.msk.f32.gmra.mrb[16].mxu0 %vm346_vm2, %v8427_v53 }
 0x305   :  { %7471 = vmatpush3.bf16.msra.mxu0 %v7456_v63  ;;  %6597 = vmatprep.mubr.msk.f32.mxu0 %vm346_vm2, %v8351_v16  ;;  %v8560_v63 = vpack.c.bf16 %v1348_v57, %v1347_v56 }
 0x306   :  { %7481 = vmatprep.subr.bf16.mxu0 %v8519_v3 }
 0x308   :  { %6598 = vmatmul.mubr.msk.f32.vlgmr.msra.gmra.mrb[18].mxu0 %vm346_vm2, %v8374_v36 }
 0x309   :  { %6600 = vmatprep.mubr.msk.f32.mxu0 %vm346_vm2, %v8378_v38  ;;  %7483 = vmatpush3.bf16.msra.mxu0 %v8519_v3 }
 0x30a   :  { %7485 = vmatprep.subr.bf16.mxu0 %v8526_v25 }
 0x30c   :  { %6601 = vmatmul.mubr.msk.f32.gmra.mrb[20].mxu0 %vm346_vm2, %v8388_v40 }
 0x30d   :  { %6603 = vmatprep.mubr.msk.f32.mxu0 %vm346_vm2, %v8390_v41  ;;  %7487 = vmatpush3.bf16.msra.mxu0 %v8526_v25 }
 0x310   :  { %6604 = vmatmul.mubr.msk.f32.gmra.mrb[22].mxu0 %vm346_vm2, %v8398_v44 }
 0x3cf   :  { %v6578_v42 = vpop.f32.mrb[12].mxu0 }
 0x3d0   :  { %v987_v43 = vpop.f32.mrb[13].mxu0 }
 0x3d1   :  { %6631 = vmatprep.mubr.msk.f32.mxu0 %vm664_vm3, %v987_v43 }
 0x3d2   :  { %6632 = vmatmul.mubr.msk.f32.vlgmr.msra.gmra.mrb[24].mxu0 %vm664_vm3, %v6578_v42 }
 0x3d3   :  { %v6581_v46 = vpop.f32.mrb[14].mxu0 }
 0x3d4   :  { %v997_v47 = vpop.f32.mrb[15].mxu0 }
 0x3d5   :  { %6634 = vmatprep.mubr.msk.f32.mxu0 %vm664_vm3, %v997_v47 }
 0x3d6   :  { %6635 = vmatmul.mubr.msk.f32.gmra.mrb[26].mxu0 %vm664_vm3, %v6581_v46 }
 0x3d7   :  { %v6584_v54 = vpop.f32.mrb[16].mxu0 }
 0x3d8   :  { %v1007_v55 = vpop.f32.mrb[17].mxu0 }
 0x3d9   :  { %6637 = vmatprep.mubr.msk.f32.mxu0 %vm664_vm3, %v1007_v55 }
 0x3da   :  { %6638 = vmatmul.mubr.msk.f32.gmra.mrb[28].mxu0 %vm664_vm3, %v6584_v54 }
 0x3db   :  { %v6599_v61 = vpop.f32.mrb[18].mxu0  ;;  %6686 = vmatprep.mubr.msk.f32.mxu0 %vm346_vm2, %v8380_v39 }
 0x3dc   :  { %v1082_v62 = vpop.f32.mrb[19].mxu0 }
 0x3dd   :  { %6614 = vmatprep.mubr.msk.f32.mxu1 %vm664_vm3, %v1082_v62 }
 0x3de   :  { %6615 = vmatmul.mubr.msk.f32.vlgmr.msra.gmra.mrb[22].mxu1 %vm664_vm3, %v6599_v61 }
 0x3df   :  { %v6602_v5 = vpop.f32.mrb[20].mxu0  ;;  %7491 = vmatpush3.bf16.msra.mxu1 %v8549_v35 }
 0x3e0   :  { %v1092_v6 = vpop.f32.mrb[21].mxu0  ;;  %7493 = vmatprep.subr.bf16.mxu1 %v8560_v63 }
 0x3e1   :  { %6617 = vmatprep.mubr.msk.f32.mxu1 %vm664_vm3, %v1092_v6 }
 0x3e2   :  { %6618 = vmatmul.mubr.msk.f32.gmra.mrb[24].mxu1 %vm664_vm3, %v6602_v5 }
 0x3e3   :  { %v6605_v28 = vpop.f32.mrb[22].mxu0  ;;  %7495 = vmatpush3.bf16.msra.mxu1 %v8560_v63 }
 0x3e4   :  { %v1102_v30 = vpop.f32.mrb[23].mxu0  ;;  %7497 = vmatprep.subr.bf16.mxu1 %v8566_v27 }
 0x3e5   :  { %6620 = vmatprep.mubr.msk.f32.mxu1 %vm664_vm3, %v1102_v30 }
 0x3e6   :  { %6621 = vmatmul.mubr.msk.f32.gmra.mrb[26].mxu1 %vm664_vm3, %v6605_v28 }
 0x3e7   :  { %6648 = vmatprep.mubr.msk.f32.mxu1 %vm664_vm3, %v8449_v8 }
 0x3ea   :  { %6649 = vmatmul.mubr.msk.f32.vlgmr.msra.gmra.mrb[28].mxu1 %vm664_vm3, %v8447_v7 }
 0x3eb   :  { %6651 = vmatprep.mubr.msk.f32.mxu1 %vm664_vm3, %v8460_v11  ;;  %7499 = vmatpush3.bf16.msra.mxu1 %v8566_v27 }
 0x3ec   :  { %7501 = vmatprep.subr.bf16.mxu1 %v8576_v34 }
 0x3ee   :  { %6652 = vmatmul.mubr.msk.f32.gmra.mrb[30].mxu1 %vm664_vm3, %v8457_v10 }
 0x3ef   :  { %6654 = vmatprep.mubr.msk.f32.mxu1 %vm664_vm3, %v8470_v13  ;;  %7503 = vmatpush3.bf16.msra.mxu1 %v8576_v34 }
 0x3f2   :  { %6655 = vmatmul.mubr.msk.f32.gmra.mrb[32].mxu1 %vm664_vm3, %v8467_v12 }
 0x3f3   :  { %6665 = vmatprep.mubr.msk.f32.mxu1 %vm664_vm3, %v8478_v15 }
 0x3f6   :  { %6666 = vmatmul.mubr.msk.f32.vlgmr.msra.gmra.mrb[28].mxu1 %vm664_vm3, %v8476_v14 }
 0x3f7   :  { %6668 = vmatprep.mubr.msk.f32.mxu1 %vm664_vm3, %v8486_v20 }
 0x3fa   :  { %6669 = vmatmul.mubr.msk.f32.gmra.mrb[30].mxu1 %vm664_vm3, %v8484_v19 }
 0x3fb   :  { %6671 = vmatprep.mubr.msk.f32.mxu1 %vm664_vm3, %v8494_v22 }
 0x3fe   :  { %6672 = vmatmul.mubr.msk.f32.gmra.mrb[32].mxu1 %vm664_vm3, %v8492_v21  ;;  %v8610_v21 = vld [vmem:[%s9376_s6 + $0x2] ss:$0 sm:$0xff] }
 0x4a5   :  { %v6633_v7 = vpop.f32.mrb[24].mxu0 }
 0x4a6   :  { %v1304_v8 = vpop.f32.mrb[25].mxu0 }
 0x4a9   :  { %v6636_v10 = vpop.f32.mrb[26].mxu0 }
 0x4aa   :  { %v1312_v11 = vpop.f32.mrb[27].mxu0 }
 0x4ad   :  { %v6639_v12 = vpop.f32.mrb[28].mxu0 }
 0x4ae   :  { %v1321_v13 = vpop.f32.mrb[29].mxu0 }
 0x4b1   :  { %v6616_v15 = vpop.f32.mrb[22].mxu1 }
 0x4b2   :  { %v1195_v14 = vpop.f32.mrb[23].mxu1  ;;  %v1560_v15 = vld [vmem:[#allocation7 + $0xc0] sm:$0xff] }
 0x4b3   :  { %v1561_v14 = vld [vmem:[#allocation7 + $0xc8] sm:$0xff] }
 0x4b5   :  { %v6619_v42 = vpop.f32.mrb[24].mxu1 }
 0x4b6   :  { %v1203_v43 = vpop.f32.mrb[25].mxu1  ;;  %v8626_v42 = vpack.c.bf16 %v1561_v14, %v1560_v15  ;;  %v330_v15 = vld [vmem:[%s9379_s9 + $0x18] sm:$0xff] }
 0x4b7   :  { %v8603_v20 = vadd.f32 %v1312_v11, %v1203_v43  ;;  %v1562_v43 = vld [vmem:[#allocation7 + $0xd0] sm:$0xff] }
 0x4b9   :  { %v6622_v46 = vpop.f32.mrb[26].mxu1 }
 0x4ba   :  { %v8605_v19 = vadd.f32 %v6639_v12, %v6622_v46  ;;  %v1212_v47 = vpop.f32.mrb[27].mxu1  ;;  %v1563_v46 = vld [vmem:[#allocation7 + $0xd8] sm:$0xff] }
 0x4bb   :  { %v8633_v47 = vpack.c.bf16 %v1563_v46, %v1562_v43  ;;  %v331_v43 = vld [vmem:[%s9379_s9 + $0x20] sm:$0xff]  ;;  %v332_v46 = vld [vmem:[%s9379_s9 + $0x28] sm:$0xff] }
 0x4c9   :  { %v6667_v22 = vpop.f32.mrb[28].mxu1 }
 0x4ca   :  { %v1548_v54 = vadd.f32 %v6667_v22, %v8610_v21  ;;  %v1512_v55 = vpop.f32.mrb[29].mxu1  ;;  %v1565_v22 = vld [vmem:[#allocation7 + $0xe0] sm:$0xff] }
 0x4cb   :  { %v1547_v56 = vadd.f32 %v8610_v21, %v1512_v55 }
 0x4cc   :  { %v1554_v57 = vmax.f32 %v1548_v54, 0.0  ;;  %v1566_v54 = vld [vmem:[#allocation7 + $0xe8] sm:$0xff] }
 0x4cd   :  { %v1553_v61 = vmax.f32 %v1547_v56, 0.0  ;;  %v6670_v62 = vpop.f32.mrb[30].mxu1  ;;  %v8648_v55 = vpack.c.bf16 %v1566_v54, %v1565_v22  ;;  %v1567_v56 = vld [vmem:[#allocation7 + $0xf0] sm:$0xff]  ;;  %v8695_v22 = vpack.c.bf16 %v332_v46, %v331_v43 }
 0x4ce   :  { %v1550_v0 = vadd.f32 %v6670_v62, %v8610_v21  ;;  %v1522_v2 = vpop.f32.mrb[31].mxu1 }
 0x4cf   :  { %v7504_v5 = vpack.c.bf16 %v1554_v57, %v1553_v61  ;;  %v1549_v6 = vadd.f32 %v8610_v21, %v1522_v2  ;;  %7529 = vmatprep.subr.bf16.mxu1 %v8648_v55  ;;  %v1568_v57 = vld [vmem:[#allocation7 + $0xf8] sm:$0xff] }
 0x4d0   :  { %v1556_v28 = vmax.f32 %v1550_v0, 0.0  ;;  %7531 = vmatpush3.bf16.msra.mxu1 %v8648_v55  ;;  %v8652_v61 = vpack.c.bf16 %v1568_v57, %v1567_v56 }
 0x4d1   :  { %v1555_v30 = vmax.f32 %v1549_v6, 0.0  ;;  %v6673_v31 = vpop.f32.mrb[32].mxu1  ;;  %7505 = vmatprep.subr.bf16.mxu0 %v7504_v5 }
 0x4d2   :  { %v1552_v33 = vadd.f32 %v6673_v31, %v8610_v21  ;;  %v1532_v7 = vpop.f32.mrb[33].mxu1  ;;  %7507 = vmatpush3.bf16.msra.mxu0 %v7504_v5  ;;  %7533 = vmatprep.subr.bf16.mxu1 %v8652_v61 }
 0x4d3   :  { %v7508_v8 = vpack.c.bf16 %v1556_v28, %v1555_v30  ;;  %v1551_v10 = vadd.f32 %v8610_v21, %v1532_v7 }
 0x4d4   :  { %v1558_v11 = vmax.f32 %v1552_v33, 0.0  ;;  %7535 = vmatpush3.bf16.msra.mxu1 %v8652_v61 }
 0x4d5   :  { %v1557_v12 = vmax.f32 %v1551_v10, 0.0  ;;  %7509 = vmatprep.subr.bf16.mxu0 %v7508_v8 }
 0x4d6   :  { %7511 = vmatpush3.bf16.msra.mxu0 %v7508_v8 }
 0x4d7   :  { %v7512_v13 = vpack.c.bf16 %v1558_v11, %v1557_v12  ;;  %v328_v11 = vld [vmem:[%s9379_s9 + $0x8] sm:$0xff]  ;;  %v329_v12 = vld [vmem:[%s9379_s9 + $0x10] sm:$0xff] }
 0x4d8   :  { %v8684_v14 = vpack.c.bf16 %v330_v15, %v329_v12  ;;  %v326_v12 = vld [vmem:[%s9378_s8 + $0x8] sm:$0xff] }
 0x4d9   :  { %7513 = vmatprep.subr.bf16.mxu0 %v7512_v13 }
 0x4da   :  { %7515 = vmatpush3.bf16.msra.mxu0 %v7512_v13 }
 0x4db   :  { %7517 = vmatprep.subr.bf16.mxu0 %v7504_v5 }
 0x4dd   :  { %6687 = vmatmul.mubr.msk.f32.vlgmr.msra.gmra.mrb[30].mxu0 %vm346_vm2, %v8404_v48 }
 0x4de   :  { %7519 = vmatpush3.bf16.msra.mxu0 %v7504_v5  ;;  %6689 = vmatprep.mubr.msk.f32.mxu0 %vm346_vm2, %v8408_v49 }
 0x4df   :  { %7521 = vmatprep.subr.bf16.mxu0 %v7508_v8 }
 0x4e1   :  { %6690 = vmatmul.mubr.msk.f32.gmra.mrb[32].mxu0 %vm346_vm2, %v8417_v51 }
 0x4e2   :  { %7523 = vmatpush3.bf16.msra.mxu0 %v7508_v8  ;;  %6692 = vmatprep.mubr.msk.f32.mxu0 %vm346_vm2, %v8420_v52 }
 0x4e3   :  { %7525 = vmatprep.subr.bf16.mxu0 %v7512_v13 }
 0x4e5   :  { %6693 = vmatmul.mubr.msk.f32.gmra.mrb[34].mxu0 %vm346_vm2, %v8427_v53 }
 0x4e6   :  { %7527 = vmatpush3.bf16.msra.mxu0 %v7512_v13  ;;  %6707 = vmatprep.mubr.msk.f32.mxu0 %vm346_vm2, %v8351_v16 }
 0x4e7   :  { %7537 = vmatprep.subr.bf16.mxu0 %v8626_v42 }
 0x4e9   :  { %6708 = vmatmul.mubr.msk.f32.vlgmr.msra.gmra.mrb[36].mxu0 %vm346_vm2, %v8374_v36 }
 0x4ea   :  { %6710 = vmatprep.mubr.msk.f32.mxu0 %vm346_vm2, %v8378_v38  ;;  %7539 = vmatpush3.bf16.msra.mxu0 %v8626_v42 }
 0x4eb   :  { %7541 = vmatprep.subr.bf16.mxu0 %v8633_v47 }
 0x4ed   :  { %6711 = vmatmul.mubr.msk.f32.gmra.mrb[38].mxu0 %vm346_vm2, %v8388_v40 }
 0x4ee   :  { %6713 = vmatprep.mubr.msk.f32.mxu0 %vm346_vm2, %v8390_v41  ;;  %7543 = vmatpush3.bf16.msra.mxu0 %v8633_v47 }
 0x4f1   :  { %6714 = vmatmul.mubr.msk.f32.gmra.mrb[40].mxu0 %vm346_vm2, %v8398_v44 }
 0x5b0   :  { %v6688_v62 = vpop.f32.mrb[30].mxu0 }
 0x5b1   :  { %v1637_v0 = vpop.f32.mrb[31].mxu0 }
 0x5b2   :  { %6741 = vmatprep.mubr.msk.f32.mxu0 %vm664_vm3, %v1637_v0 }
 0x5b3   :  { %6742 = vmatmul.mubr.msk.f32.vlgmr.msra.gmra.mrb[42].mxu0 %vm664_vm3, %v6688_v62 }
 0x5b4   :  { %v6691_v2 = vpop.f32.mrb[32].mxu0 }
 0x5b5   :  { %v1647_v5 = vpop.f32.mrb[33].mxu0 }
 0x5b6   :  { %6744 = vmatprep.mubr.msk.f32.mxu0 %vm664_vm3, %v1647_v5  ;;  %v333_v5 = vld [vmem:[%s9379_s9 + $0x30] sm:$0xff] }
 0x5b7   :  { %6745 = vmatmul.mubr.msk.f32.gmra.mrb[44].mxu0 %vm664_vm3, %v6691_v2 }
 0x5b8   :  { %v6694_v6 = vpop.f32.mrb[34].mxu0 }
 0x5b9   :  { %v1657_v28 = vpop.f32.mrb[35].mxu0 }
 0x5ba   :  { %6747 = vmatprep.mubr.msk.f32.mxu0 %vm664_vm3, %v1657_v28 }
 0x5bb   :  { %6748 = vmatmul.mubr.msk.f32.gmra.mrb[46].mxu0 %vm664_vm3, %v6694_v6  ;;  %v334_v6 = vld [vmem:[%s9379_s9 + $0x38] sm:$0xff] }
 0x5bc   :  { %v6709_v30 = vpop.f32.mrb[36].mxu0  ;;  %6781 = vmatprep.mubr.msk.f32.mxu0 %vm346_vm2, %v8353_v17  ;;  %v327_v17 = vld [vmem:[%s9379_s9] sm:$0xff]  ;;  %v8706_v28 = vpack.c.bf16 %v334_v6, %v333_v5 }
 0x5bd   :  { %v1732_v31 = vpop.f32.mrb[37].mxu0  ;;  %v8679_v13 = vpack.c.bf16 %v328_v11, %v327_v17  ;;  %v8131_v17 = vmov 0  }
 0x5be   :  { %6724 = vmatprep.mubr.msk.f32.mxu1 %vm664_vm3, %v1732_v31  ;;  %8004 = vset.pattern.permute.xlu1 %v8131_v17 }
 0x5bf   :  { %6725 = vmatmul.mubr.msk.f32.vlgmr.msra.gmra.mrb[34].mxu1 %vm664_vm3, %v6709_v30  ;;  %7545 = vmatprep.subr.bf16.mxu1 %v8679_v13 }
 0x5c0   :  { %v6712_v33 = vpop.f32.mrb[38].mxu0  ;;  %7547 = vmatpush3.bf16.msra.mxu1 %v8679_v13  ;;  %8005 = vset.pattern.permute.xlu0 %v8131_v17 }
 0x5c1   :  { %v1742_v7 = vpop.f32.mrb[39].mxu0  ;;  %7549 = vmatprep.subr.bf16.mxu1 %v8684_v14 }
 0x5c2   :  { %6727 = vmatprep.mubr.msk.f32.mxu1 %vm664_vm3, %v1742_v7  ;;  %v325_v7 = vld [vmem:[%s9378_s8] sm:$0xff] }
 0x5c3   :  { %6728 = vmatmul.mubr.msk.f32.gmra.mrb[36].mxu1 %vm664_vm3, %v6712_v33  ;;  %338 = vperm.xlu1 %8004, %v325_v7  }
 0x5c4   :  { %v6715_v8 = vpop.f32.mrb[40].mxu0  ;;  %7551 = vmatpush3.bf16.msra.mxu1 %v8684_v14 }
 0x5c5   :  { %v1752_v10 = vpop.f32.mrb[41].mxu0  ;;  %7553 = vmatprep.subr.bf16.mxu1 %v8695_v22 }
 0x5c6   :  { %6730 = vmatprep.mubr.msk.f32.mxu1 %vm664_vm3, %v1752_v10  ;;  %v8716_v10 = vld [vmem:[%s9376_s6 + $0x3] ss:$0 sm:$0xff] }
 0x5c7   :  { %6731 = vmatmul.mubr.msk.f32.gmra.mrb[38].mxu1 %vm664_vm3, %v6715_v8  ;;  %343 = vperm.xlu1 %8004, %v326_v12  }
 0x5c8   :  { %7555 = vmatpush3.bf16.msra.mxu1 %v8695_v22 }
 0x5c9   :  { %7557 = vmatprep.subr.bf16.mxu1 %v8706_v28 }
 0x5cc   :  { %7559 = vmatpush3.bf16.msra.mxu1 %v8706_v28 }
 0x686   :  { %v6743_v54 = vpop.f32.mrb[42].mxu0 }
 0x687   :  { %v1954_v56 = vpop.f32.mrb[43].mxu0 }
 0x68a   :  { %v6746_v57 = vpop.f32.mrb[44].mxu0 }
 0x68b   :  { %v1962_v62 = vpop.f32.mrb[45].mxu0 }
 0x68e   :  { %v6749_v0 = vpop.f32.mrb[46].mxu0 }
 0x68f   :  { %v1971_v2 = vpop.f32.mrb[47].mxu0 }
 0x692   :  { %v6726_v30 = vpop.f32.mrb[34].mxu1 }
 0x693   :  { %v1845_v31 = vpop.f32.mrb[35].mxu1 }
 0x696   :  { %v6729_v33 = vpop.f32.mrb[36].mxu1 }
 0x697   :  { %v1853_v8 = vpop.f32.mrb[37].mxu1 }
 0x698   :  { %v1963_v11 = vadd.f32 %v1962_v62, %v1853_v8  ;;  %v8728_v62 = vld [vmem:[%s9376_s6 + $0x1] ss:$0 sm:$0xff] }
 0x699   :  { %v1335_v5 = vadd.f32 %v8728_v62, %v8603_v20  ;;  %v1336_v6 = vadd.f32 %v8728_v62, %v8605_v19  ;;  %v8740_v20 = vpop.permute.xlu1 %338 }
 0x69a   :  { %v6732_v15 = vpop.f32.mrb[38].mxu1  ;;  %v1985_v43 = vadd.f32 %v8716_v10, %v1963_v11 }
 0x69b   :  { %v1976_v46 = vadd.f32 %v6749_v0, %v6732_v15  ;;  %v1862_v54 = vpop.f32.mrb[39].mxu1  ;;  %v1337_v0 = vmax.f32 %v1335_v5, 0.0  ;;  %v1338_v33 = vmax.f32 %v1336_v6, 0.0  ;;  %v8748_v15 = vld [vmem:[%s9380_s10] ss:$0 sm:$0xff] }
 0x69c   :  { %v1987_v56 = vmax.f32 %v1985_v43, 0.0 }
 0x69d   :  { %v1986_v57 = vadd.f32 %v8716_v10, %v1976_v46  ;;  %v8742_v17 = vpop.permute.xlu1 %343 }
 0x69e   :  { %1991 = vrot.lane.b32.xlu0 %v1987_v56, %s8132_s29 }
 0x69f   :  { %v1988_v2 = vmax.f32 %v1986_v57, 0.0 }
 0x6a2   :  { %1993 = vrot.lane.b32.xlu0 %v1988_v2, %s8132_s29 }
 0x710   :  { %v1992_v30 = vpop.permute.xlu0 %1991 }
 0x711   :  { %v1997_v31 = vsel %vm664_vm3, %v1337_v0, %v1992_v30 }
 0x712   :  { %6766 = vmatprep.mubr.msk.f32.mxu1 %vm2005_vm4, %v1997_v31 }
 0x714   :  { %v1994_v7 = vpop.permute.xlu0 %1993 }
 0x715   :  { %v1998_v8 = vsel %vm664_vm3, %v1338_v33, %v1994_v7 }
 0x716   :  { %6767 = vmatmul.mubr.msk.f32.vlgmr.msra.gmra.mrb[8].mxu1 %vm2005_vm4, %v1998_v8 }
 0x717   :  { %6796 = vmatprep.mubr.msk.f32.mxu1 %vm346_vm2, %v8380_v39 }
 0x7e9   :  { %v6768_v19 = vpop.f32.mrb[8].mxu1 }
 0x7ea   :  { %v7922_v11 = vadd.f32 %v6768_v19, %v8742_v17  ;;  %v2078_v12 = vpop.f32.mrb[9].mxu1 }
 0x7eb   :  { %v7924_v43 = vadd.f32 %v2078_v12, %v8740_v20 }
 0x7ec   :  { %v7923_v46 = vadd.f32 %v7922_v11, %v8748_v15 }
 0x7ed   :  { %v7925_v54 = vadd.f32 %v7924_v43, %v8748_v15 }
 0x7ee   :  { %v2090_v56 = vsel %vm664_vm3, %v7923_v46, 0.0 }
 0x7ef   :  { %v2089_v57 = vsel %vm664_vm3, %v7925_v54, 0.0 }
 0x7f0   :  { %v2091_v2 = vadd.f32 %v2090_v56, %v2089_v57 }
 0x7f2   :  { %2092 = vadd.xlane.f32.xlu0 %v2091_v2 }
 0x87f   :  { %v2093_v5 = vpop.xlane.xlu0 %2092 }
 0x880   :  { %v2094_v0 = vrot.slane %v2093_v5, 4 }
 0x882   :  { %v2095_v6 = vadd.f32 %v2094_v0, %v2093_v5 }
 0x884   :  { %v2096_v30 = vrot.slane %v2095_v6, 2 }
 0x886   :  { %v2097_v31 = vadd.f32 %v2096_v30, %v2095_v6 }
 0x888   :  { %v2098_v33 = vrot.slane %v2097_v31, 1 }
 0x88a   :  { %v2099_v7 = vadd.f32 %v2098_v33, %v2097_v31 }
 0x88c   :  { %7976 = vpush %v2099_v7 }
 0x8bd   :  { %s7977_s10 = spop %7976 }
 0x8be   :  { %s2103_s24 = smul.f32 0.001953125, %s7977_s10 }
 0x8c0   :  { %v2104_v8 = vstv %s2103_s24 }
 0x8c1   :  { %v2105_v19 = vsub.f32 %v7925_v54, %v2104_v8  ;;  %v2106_v11 = vsub.f32 %v7923_v46, %v2104_v8 }
 0x8c3   :  { %v2107_v12 = vmul.f32 %v2105_v19, %v2105_v19  ;;  %v2108_v43 = vmul.f32 %v2106_v11, %v2106_v11 }
 0x8c5   :  { %v2109_v1 = vsel %vm664_vm3, %v2107_v12, 0.0  ;;  %v2110_v56 = vsel %vm664_vm3, %v2108_v43, 0.0  ;;  %v263_v43 = vadd.f32 %v8362_v18, %v8438_v60 }
 0x8c6   :  { %v2111_v57 = vadd.f32 %v2110_v56, %v2109_v1  ;;  %v258_v1 = vadd.f32 %v8368_v26, %v8362_v18 }
 0x8c8   :  { %2112 = vadd.xlane.f32.xlu1 %v2111_v57 }
 0x955   :  { %v2113_v2 = vpop.xlane.xlu1 %2112 }
 0x956   :  { %v2114_v5 = vrot.slane %v2113_v2, 4 }
 0x958   :  { %v2115_v0 = vadd.f32 %v2114_v5, %v2113_v2 }
 0x95a   :  { %v2116_v6 = vrot.slane %v2115_v0, 2 }
 0x95c   :  { %v2117_v30 = vadd.f32 %v2116_v6, %v2115_v0 }
 0x95e   :  { %v2118_v31 = vrot.slane %v2117_v30, 1 }
 0x960   :  { %v2119_v33 = vadd.f32 %v2118_v31, %v2117_v30 }
 0x962   :  { %7978 = vpush %v2119_v33 }
 0x993   :  { %s7979_s25 = spop %7978 }
 0x994   :  { %s2123_s5 = smul.f32 0.001953125, %s7979_s25 }
 0x996   :  { %s2124_s30 = sadd.f32 1e-05, %s2123_s5 }
 0x998   :  { %v2125_v46 = vstv %s2124_s30 }
 0x999   :  { %8006 = vrsqrt.f32 %v2125_v46 }
 0x9a3   :  { %v8007_v54 = vpop.eup %8006 }
 0x9a4   :  { %7980 = vpush %v8007_v54 }
 0x9d5   :  { %s7981_s26 = spop %7980 }
 0x9d6   :  { %v2128_v7 = vstv %s7981_s26 }
 0x9d7   :  { %v2129_v8 = vmul.f32 %v2128_v7, %v2105_v19  ;;  %v2130_v12 = vmul.f32 %v2128_v7, %v2106_v11 }
 0x9d9   :  { %v7560_v56 = vpack.c.bf16 %v258_v1, %v2129_v8  ;;  %v7564_v57 = vpack.c.bf16 %v2130_v12, %v263_v43 }
 0x9db   :  { %7561 = vmatprep.subr.bf16.mxu0 %v7560_v56  ;;  %7573 = vmatprep.subr.bf16.mxu1 %v7560_v56 }
 0x9dc   :  { %7563 = vmatpush3.bf16.msra.mxu0 %v7560_v56  ;;  %7575 = vmatpush3.bf16.msra.mxu1 %v7560_v56 }
 0x9dd   :  { %7565 = vmatprep.subr.bf16.mxu0 %v7564_v57  ;;  %7577 = vmatprep.subr.bf16.mxu1 %v7564_v57 }
 0x9e0   :  { %7567 = vmatpush3.bf16.msra.mxu0 %v7564_v57  ;;  %7579 = vmatpush3.bf16.msra.mxu1 %v7564_v57 }
 0x9e1   :  { %7569 = vmatprep.subr.bf16.mxu0 %v8436_v59  ;;  %7581 = vmatprep.subr.bf16.mxu1 %v8436_v59 }
 0x9e4   :  { %7571 = vmatpush3.bf16.msra.mxu0 %v8436_v59  ;;  %7583 = vmatpush3.bf16.msra.mxu1 %v8436_v59 }
 0x9e5   :  { %7585 = vmatprep.subr.bf16.mxu0 %v7560_v56  ;;  %7597 = vmatprep.subr.bf16.mxu1 %v8400_v45 }
 0x9e7   :  { %6782 = vmatmul.mubr.msk.f32.vlgmr.msra.gmra.mrb[48].mxu0 %vm346_vm2, %v8376_v37  ;;  %6797 = vmatmul.mubr.msk.f32.vlgmr.msra.gmra.mrb[40].mxu1 %vm346_vm2, %v8404_v48 }
 0x9e8   :  { %7587 = vmatpush3.bf16.msra.mxu0 %v7560_v56  ;;  %6817 = vmatprep.mubr.msk.f32.mxu0 %vm346_vm2, %v8351_v16 }
 0x9e9   :  { %7589 = vmatprep.subr.bf16.mxu0 %v7564_v57  ;;  %6799 = vmatprep.mubr.msk.f32.mxu1 %vm346_vm2, %v8408_v49 }
 0x9ea   :  { %7599 = vmatpush3.bf16.msra.mxu1 %v8400_v45 }
 0x9eb   :  { %6800 = vmatmul.mubr.msk.f32.gmra.mrb[42].mxu1 %vm346_vm2, %v8417_v51  ;;  %7601 = vmatprep.subr.bf16.mxu1 %v8411_v50 }
 0x9ec   :  { %7591 = vmatpush3.bf16.msra.mxu0 %v7564_v57  ;;  %6802 = vmatprep.mubr.msk.f32.mxu1 %vm346_vm2, %v8420_v52 }
 0x9ed   :  { %7593 = vmatprep.subr.bf16.mxu0 %v8436_v59 }
 0x9ee   :  { %7603 = vmatpush3.bf16.msra.mxu1 %v8411_v50 }
 0x9ef   :  { %6803 = vmatmul.mubr.msk.f32.gmra.mrb[44].mxu1 %vm346_vm2, %v8427_v53  ;;  %7605 = vmatprep.subr.bf16.mxu1 %v8444_v4 }
 0x9f0   :  { %7595 = vmatpush3.bf16.msra.mxu0 %v8436_v59 }
 0x9f3   :  { %6818 = vmatmul.mubr.msk.f32.vlgmr.msra.gmra.mrb[50].mxu0 %vm346_vm2, %v8374_v36 }
 0x9f4   :  { %6820 = vmatprep.mubr.msk.f32.mxu0 %vm346_vm2, %v8378_v38 }
 0x9f7   :  { %6821 = vmatmul.mubr.msk.f32.gmra.mrb[52].mxu0 %vm346_vm2, %v8388_v40 }
 0x9f8   :  { %6823 = vmatprep.mubr.msk.f32.mxu0 %vm346_vm2, %v8390_v41 }
 0x9fb   :  { %6824 = vmatmul.mubr.msk.f32.gmra.mrb[54].mxu0 %vm346_vm2, %v8398_v44 }
 0x9fc   :  { %6872 = vmatprep.mubr.msk.f32.mxu0 %vm346_vm2, %v8380_v39 }
 0xaba   :  { %v8798_v16 = vpop.f32.mrb[40].mxu1 }
 0xabb   :  { %v8800_v18 = vpop.f32.mrb[41].mxu1 }
 0xabe   :  { %v8802_v26 = vpop.f32.mrb[42].mxu1 }
 0xabf   :  { %v8804_v36 = vpop.f32.mrb[43].mxu1 }
 0xac2   :  { %v8806_v37 = vpop.f32.mrb[44].mxu1 }
 0xac3   :  { %v8808_v38 = vpop.f32.mrb[45].mxu1 }
 0xac6   :  { %v8810_v40 = vpop.f32.mrb[50].mxu0 }
 0xac7   :  { %v8812_v41 = vpop.f32.mrb[51].mxu0 }
 0xac8   :  { %6834 = vmatprep.mubr.msk.f32.mxu1 %vm664_vm3, %v8812_v41 }
 0xac9   :  { %6835 = vmatmul.mubr.msk.f32.vlgmr.msra.gmra.mrb[46].mxu1 %vm664_vm3, %v8810_v40 }
 0xaca   :  { %v8818_v39 = vpop.f32.mrb[52].mxu0  ;;  %7607 = vmatpush3.bf16.msra.mxu1 %v8444_v4 }
 0xacb   :  { %v8821_v44 = vpop.f32.mrb[53].mxu0  ;;  %7609 = vmatprep.subr.bf16.mxu1 %v8451_v9 }
 0xacc   :  { %6837 = vmatprep.mubr.msk.f32.mxu1 %vm664_vm3, %v8821_v44 }
 0xacd   :  { %6838 = vmatmul.mubr.msk.f32.gmra.mrb[48].mxu1 %vm664_vm3, %v8818_v39 }
 0xace   :  { %v8828_v59 = vpop.f32.mrb[54].mxu0  ;;  %7611 = vmatpush3.bf16.msra.mxu1 %v8451_v9 }
 0xacf   :  { %v8831_v60 = vpop.f32.mrb[55].mxu0  ;;  %7637 = vmatprep.subr.bf16.mxu1 %v8541_v29 }
 0xad0   :  { %6840 = vmatprep.mubr.msk.f32.mxu1 %vm664_vm3, %v8831_v60 }
 0xad1   :  { %6841 = vmatmul.mubr.msk.f32.gmra.mrb[50].mxu1 %vm664_vm3, %v8828_v59 }
 0xad2   :  { %6851 = vmatprep.mubr.msk.f32.mxu1 %vm664_vm3, %v8800_v18 }
 0xad5   :  { %6852 = vmatmul.mubr.msk.f32.vlgmr.msra.gmra.mrb[46].mxu1 %vm664_vm3, %v8798_v16 }
 0xad6   :  { %6854 = vmatprep.mubr.msk.f32.mxu1 %vm664_vm3, %v8804_v36  ;;  %7639 = vmatpush3.bf16.msra.mxu1 %v8541_v29 }
 0xad7   :  { %7641 = vmatprep.subr.bf16.mxu1 %v8545_v32 }
 0xad9   :  { %6855 = vmatmul.mubr.msk.f32.gmra.mrb[48].mxu1 %vm664_vm3, %v8802_v26 }
 0xada   :  { %6857 = vmatprep.mubr.msk.f32.mxu1 %vm664_vm3, %v8808_v38  ;;  %7643 = vmatpush3.bf16.msra.mxu1 %v8545_v32 }
 0xadb   :  { %7653 = vmatprep.subr.bf16.mxu1 %v8549_v35 }
 0xadd   :  { %6858 = vmatmul.mubr.msk.f32.gmra.mrb[50].mxu1 %vm664_vm3, %v8806_v37 }
 0xba8   :  { %v6853_v19 = vpop.f32.mrb[46].mxu1 }
 0xba9   :  { %v2623_v11 = vadd.f32 %v6853_v19, %v8503_v23  ;;  %v2593_v2 = vpop.f32.mrb[47].mxu1 }
 0xbaa   :  { %v2622_v5 = vadd.f32 %v8503_v23, %v2593_v2 }
 0xbab   :  { %v2629_v0 = vmax.f32 %v2623_v11, 0.0 }
 0xbac   :  { %v2628_v6 = vmax.f32 %v2622_v5, 0.0  ;;  %v6856_v30 = vpop.f32.mrb[48].mxu1 }
 0xbad   :  { %v2625_v31 = vadd.f32 %v6856_v30, %v8503_v23  ;;  %v2603_v33 = vpop.f32.mrb[49].mxu1 }
 0xbae   :  { %v7612_v46 = vpack.c.bf16 %v2629_v0, %v2628_v6  ;;  %v2624_v54 = vadd.f32 %v8503_v23, %v2603_v33 }
 0xbaf   :  { %v2631_v7 = vmax.f32 %v2625_v31, 0.0 }
 0xbb0   :  { %v2630_v1 = vmax.f32 %v2624_v54, 0.0  ;;  %v6859_v8 = vpop.f32.mrb[50].mxu1  ;;  %7613 = vmatprep.subr.bf16.mxu0 %v7612_v46  ;;  %v8904_v54 = vld [vmem:[#allocation3] sm:$0xff] }
 0xbb1   :  { %v2627_v12 = vadd.f32 %v6859_v8, %v8503_v23  ;;  %v2613_v43 = vpop.f32.mrb[51].mxu1  ;;  %7615 = vmatpush3.bf16.msra.mxu0 %v7612_v46 }
 0xbb2   :  { %v7616_v56 = vpack.c.bf16 %v2631_v7, %v2630_v1  ;;  %v2626_v57 = vadd.f32 %v8503_v23, %v2613_v43  ;;  %v8870_v23 = vld [vmem:[#allocation5] sm:$0xff] }
 0xbb3   :  { %v2633_v19 = vmax.f32 %v2627_v12, 0.0 }
 0xbb4   :  { %v2632_v11 = vmax.f32 %v2626_v57, 0.0  ;;  %7617 = vmatprep.subr.bf16.mxu0 %v7616_v56 }
 0xbb5   :  { %7619 = vmatpush3.bf16.msra.mxu0 %v7616_v56 }
 0xbb6   :  { %v7620_v2 = vpack.c.bf16 %v2633_v19, %v2632_v11 }
 0xbb8   :  { %7621 = vmatprep.subr.bf16.mxu0 %v7620_v2 }
 0xbb9   :  { %7623 = vmatpush3.bf16.msra.mxu0 %v7620_v2 }
 0xbba   :  { %7625 = vmatprep.subr.bf16.mxu0 %v7612_v46 }
 0xbbc   :  { %6873 = vmatmul.mubr.msk.f32.vlgmr.msra.gmra.mrb[56].mxu0 %vm346_vm2, %v8404_v48  ;;  %v8875_v48 = vld [vmem:[#allocation5 + $0x8] sm:$0xff] }
 0xbbd   :  { %7627 = vmatpush3.bf16.msra.mxu0 %v7612_v46  ;;  %6875 = vmatprep.mubr.msk.f32.mxu0 %vm346_vm2, %v8408_v49  ;;  %v8879_v49 = vld [vmem:[#allocation5 + $0x10] sm:$0xff] }
 0xbbe   :  { %7629 = vmatprep.subr.bf16.mxu0 %v7616_v56 }
 0xbc0   :  { %6876 = vmatmul.mubr.msk.f32.gmra.mrb[58].mxu0 %vm346_vm2, %v8417_v51  ;;  %v8885_v51 = vld [vmem:[#allocation5 + $0x18] sm:$0xff] }
 0xbc1   :  { %7631 = vmatpush3.bf16.msra.mxu0 %v7616_v56  ;;  %6878 = vmatprep.mubr.msk.f32.mxu0 %vm346_vm2, %v8420_v52  ;;  %v8889_v52 = vld [vmem:[#allocation5 + $0x20] sm:$0xff] }
 0xbc2   :  { %7633 = vmatprep.subr.bf16.mxu0 %v7620_v2 }
 0xbc4   :  { %6879 = vmatmul.mubr.msk.f32.gmra.mrb[60].mxu0 %vm346_vm2, %v8427_v53  ;;  %v8894_v53 = vld [vmem:[#allocation5 + $0x28] sm:$0xff] }
 0xbc5   :  { %7635 = vmatpush3.bf16.msra.mxu0 %v7620_v2  ;;  %6893 = vmatprep.mubr.msk.f32.mxu0 %vm346_vm2, %v8870_v23 }
 0xbc6   :  { %7645 = vmatprep.subr.bf16.mxu0 %v8519_v3 }
 0xbc8   :  { %6894 = vmatmul.mubr.msk.f32.vlgmr.msra.gmra.mrb[62].mxu0 %vm346_vm2, %v8875_v48 }
 0xbc9   :  { %6896 = vmatprep.mubr.msk.f32.mxu0 %vm346_vm2, %v8879_v49  ;;  %7647 = vmatpush3.bf16.msra.mxu0 %v8519_v3 }
 0xbca   :  { %7649 = vmatprep.subr.bf16.mxu0 %v8526_v25 }
 0xbcc   :  { %6897 = vmatmul.mubr.msk.f32.gmra.mrb[64].mxu0 %vm346_vm2, %v8885_v51 }
 0xbcd   :  { %6899 = vmatprep.mubr.msk.f32.mxu0 %vm346_vm2, %v8889_v52  ;;  %7651 = vmatpush3.bf16.msra.mxu0 %v8526_v25 }
 0xbd0   :  { %6900 = vmatmul.mubr.msk.f32.gmra.mrb[66].mxu0 %vm346_vm2, %v8894_v53 }
 0xc8f   :  { %v6874_v5 = vpop.f32.mrb[56].mxu0 }
 0xc90   :  { %v2700_v0 = vpop.f32.mrb[57].mxu0 }
 0xc91   :  { %6927 = vmatprep.mubr.msk.f32.mxu0 %vm664_vm3, %v2700_v0 }
 0xc92   :  { %6928 = vmatmul.mubr.msk.f32.vlgmr.msra.gmra.mrb[68].mxu0 %vm664_vm3, %v6874_v5 }
 0xc93   :  { %v6877_v6 = vpop.f32.mrb[58].mxu0 }
 0xc94   :  { %v2710_v30 = vpop.f32.mrb[59].mxu0 }
 0xc95   :  { %6930 = vmatprep.mubr.msk.f32.mxu0 %vm664_vm3, %v2710_v30 }
 0xc96   :  { %6931 = vmatmul.mubr.msk.f32.gmra.mrb[70].mxu0 %vm664_vm3, %v6877_v6 }
 0xc97   :  { %v6880_v31 = vpop.f32.mrb[60].mxu0 }
 0xc98   :  { %v2720_v33 = vpop.f32.mrb[61].mxu0 }
 0xc99   :  { %6933 = vmatprep.mubr.msk.f32.mxu0 %vm664_vm3, %v2720_v33 }
 0xc9a   :  { %6934 = vmatmul.mubr.msk.f32.gmra.mrb[72].mxu0 %vm664_vm3, %v6880_v31 }
 0xc9b   :  { %v6895_v46 = vpop.f32.mrb[62].mxu0  ;;  %6982 = vmatprep.mubr.msk.f32.mxu0 %vm346_vm2, %v8904_v54 }
 0xc9c   :  { %v2795_v7 = vpop.f32.mrb[63].mxu0 }
 0xc9d   :  { %6910 = vmatprep.mubr.msk.f32.mxu1 %vm664_vm3, %v2795_v7 }
 0xc9e   :  { %6911 = vmatmul.mubr.msk.f32.vlgmr.msra.gmra.mrb[52].mxu1 %vm664_vm3, %v6895_v46 }
 0xc9f   :  { %v6898_v1 = vpop.f32.mrb[64].mxu0  ;;  %7655 = vmatpush3.bf16.msra.mxu1 %v8549_v35 }
 0xca0   :  { %v2805_v8 = vpop.f32.mrb[65].mxu0  ;;  %7657 = vmatprep.subr.bf16.mxu1 %v8560_v63 }
 0xca1   :  { %6913 = vmatprep.mubr.msk.f32.mxu1 %vm664_vm3, %v2805_v8 }
 0xca2   :  { %6914 = vmatmul.mubr.msk.f32.gmra.mrb[54].mxu1 %vm664_vm3, %v6898_v1 }
 0xca3   :  { %v6901_v12 = vpop.f32.mrb[66].mxu0  ;;  %7659 = vmatpush3.bf16.msra.mxu1 %v8560_v63 }
 0xca4   :  { %v2815_v43 = vpop.f32.mrb[67].mxu0  ;;  %7661 = vmatprep.subr.bf16.mxu1 %v8566_v27 }
 0xca5   :  { %6916 = vmatprep.mubr.msk.f32.mxu1 %vm664_vm3, %v2815_v43 }
 0xca6   :  { %6917 = vmatmul.mubr.msk.f32.gmra.mrb[56].mxu1 %vm664_vm3, %v6901_v12 }
 0xca7   :  { %6944 = vmatprep.mubr.msk.f32.mxu1 %vm664_vm3, %v8812_v41 }
 0xcaa   :  { %6945 = vmatmul.mubr.msk.f32.vlgmr.msra.gmra.mrb[58].mxu1 %vm664_vm3, %v8810_v40 }
 0xcab   :  { %6947 = vmatprep.mubr.msk.f32.mxu1 %vm664_vm3, %v8821_v44  ;;  %7663 = vmatpush3.bf16.msra.mxu1 %v8566_v27 }
 0xcac   :  { %7665 = vmatprep.subr.bf16.mxu1 %v8576_v34 }
 0xcae   :  { %6948 = vmatmul.mubr.msk.f32.gmra.mrb[60].mxu1 %vm664_vm3, %v8818_v39 }
 0xcaf   :  { %6950 = vmatprep.mubr.msk.f32.mxu1 %vm664_vm3, %v8831_v60  ;;  %7667 = vmatpush3.bf16.msra.mxu1 %v8576_v34 }
 0xcb0   :  { %7693 = vmatprep.subr.bf16.mxu1 %v8648_v55 }
 0xcb2   :  { %6951 = vmatmul.mubr.msk.f32.gmra.mrb[62].mxu1 %vm664_vm3, %v8828_v59 }
 0xcb3   :  { %6961 = vmatprep.mubr.msk.f32.mxu1 %vm664_vm3, %v8800_v18 }
 0xcb6   :  { %6962 = vmatmul.mubr.msk.f32.vlgmr.msra.gmra.mrb[58].mxu1 %vm664_vm3, %v8798_v16 }
 0xcb7   :  { %6964 = vmatprep.mubr.msk.f32.mxu1 %vm664_vm3, %v8804_v36  ;;  %7695 = vmatpush3.bf16.msra.mxu1 %v8648_v55 }
 0xcb8   :  { %7697 = vmatprep.subr.bf16.mxu1 %v8652_v61 }
 0xcba   :  { %6965 = vmatmul.mubr.msk.f32.gmra.mrb[60].mxu1 %vm664_vm3, %v8802_v26 }
 0xcbb   :  { %6967 = vmatprep.mubr.msk.f32.mxu1 %vm664_vm3, %v8808_v38  ;;  %7699 = vmatpush3.bf16.msra.mxu1 %v8652_v61 }
 0xcbe   :  { %6968 = vmatmul.mubr.msk.f32.gmra.mrb[62].mxu1 %vm664_vm3, %v8806_v37 }
 0xd65   :  { %v6929_v18 = vpop.f32.mrb[68].mxu0 }
 0xd66   :  { %v3017_v16 = vpop.f32.mrb[69].mxu0 }
 0xd69   :  { %v6932_v40 = vpop.f32.mrb[70].mxu0 }
 0xd6a   :  { %v3025_v41 = vpop.f32.mrb[71].mxu0 }
 0xd6d   :  { %v6935_v36 = vpop.f32.mrb[72].mxu0 }
 0xd6e   :  { %v3034_v39 = vpop.f32.mrb[73].mxu0 }
 0xd71   :  { %v6912_v44 = vpop.f32.mrb[52].mxu1 }
 0xd72   :  { %v2908_v59 = vpop.f32.mrb[53].mxu1  ;;  %v8959_v44 = vld [vmem:[#allocation3 + $0x8] sm:$0xff] }
 0xd73   :  { %v8963_v59 = vld [vmem:[#allocation3 + $0x10] sm:$0xff] }
 0xd75   :  { %v6915_v60 = vpop.f32.mrb[54].mxu1 }
 0xd76   :  { %v2916_v56 = vpop.f32.mrb[55].mxu1  ;;  %v8971_v60 = vld [vmem:[#allocation3 + $0x20] sm:$0xff] }
 0xd77   :  { %v8949_v57 = vadd.f32 %v3025_v41, %v2916_v56  ;;  %v8975_v56 = vld [vmem:[#allocation3 + $0x28] sm:$0xff] }
 0xd79   :  { %v6918_v26 = vpop.f32.mrb[56].mxu1 }
 0xd7a   :  { %v8951_v19 = vadd.f32 %v6935_v36, %v6918_v26  ;;  %v2925_v38 = vpop.f32.mrb[57].mxu1 }
 0xd89   :  { %v6963_v11 = vpop.f32.mrb[58].mxu1 }
 0xd8a   :  { %v3237_v2 = vadd.f32 %v6963_v11, %v8610_v21  ;;  %v3207_v37 = vpop.f32.mrb[59].mxu1 }
 0xd8b   :  { %v3236_v5 = vadd.f32 %v8610_v21, %v3207_v37 }
 0xd8c   :  { %v3243_v0 = vmax.f32 %v3237_v2, 0.0 }
 0xd8d   :  { %v3242_v6 = vmax.f32 %v3236_v5, 0.0  ;;  %v6966_v30 = vpop.f32.mrb[60].mxu1 }
 0xd8e   :  { %v3239_v31 = vadd.f32 %v6966_v30, %v8610_v21  ;;  %v3217_v33 = vpop.f32.mrb[61].mxu1 }
 0xd8f   :  { %v7668_v46 = vpack.c.bf16 %v3243_v0, %v3242_v6  ;;  %v3238_v7 = vadd.f32 %v8610_v21, %v3217_v33 }
 0xd90   :  { %v3245_v1 = vmax.f32 %v3239_v31, 0.0 }
 0xd91   :  { %v3244_v8 = vmax.f32 %v3238_v7, 0.0  ;;  %v6969_v12 = vpop.f32.mrb[62].mxu1  ;;  %7669 = vmatprep.subr.bf16.mxu0 %v7668_v46  ;;  %v8024_v7 = vld [vmem:[#allocation8] sm:$0xff] }
 0xd92   :  { %v3241_v43 = vadd.f32 %v6969_v12, %v8610_v21  ;;  %v3227_v18 = vpop.f32.mrb[63].mxu1  ;;  %7671 = vmatpush3.bf16.msra.mxu0 %v7668_v46 }
 0xd93   :  { %v7672_v16 = vpack.c.bf16 %v3245_v1, %v3244_v8  ;;  %v3240_v40 = vadd.f32 %v8610_v21, %v3227_v18  ;;  %v8967_v21 = vld [vmem:[#allocation3 + $0x18] sm:$0xff] }
 0xd94   :  { %v3247_v41 = vmax.f32 %v3241_v43, 0.0 }
 0xd95   :  { %v3246_v36 = vmax.f32 %v3240_v40, 0.0  ;;  %7673 = vmatprep.subr.bf16.mxu0 %v7672_v16 }
 0xd96   :  { %7675 = vmatpush3.bf16.msra.mxu0 %v7672_v16 }
 0xd97   :  { %v7676_v39 = vpack.c.bf16 %v3247_v41, %v3246_v36 }
 0xd99   :  { %7677 = vmatprep.subr.bf16.mxu0 %v7676_v39 }
 0xd9a   :  { %7679 = vmatpush3.bf16.msra.mxu0 %v7676_v39 }
 0xd9b   :  { %7681 = vmatprep.subr.bf16.mxu0 %v7668_v46 }
 0xd9d   :  { %6983 = vmatmul.mubr.msk.f32.vlgmr.msra.gmra.mrb[74].mxu0 %vm346_vm2, %v8959_v44 }
 0xd9e   :  { %7683 = vmatpush3.bf16.msra.mxu0 %v7668_v46  ;;  %6985 = vmatprep.mubr.msk.f32.mxu0 %vm346_vm2, %v8963_v59 }
 0xd9f   :  { %7685 = vmatprep.subr.bf16.mxu0 %v7672_v16 }
 0xda1   :  { %6986 = vmatmul.mubr.msk.f32.gmra.mrb[76].mxu0 %vm346_vm2, %v8967_v21 }
 0xda2   :  { %7687 = vmatpush3.bf16.msra.mxu0 %v7672_v16  ;;  %6988 = vmatprep.mubr.msk.f32.mxu0 %vm346_vm2, %v8971_v60 }
 0xda3   :  { %7689 = vmatprep.subr.bf16.mxu0 %v7676_v39 }
 0xda5   :  { %6989 = vmatmul.mubr.msk.f32.gmra.mrb[78].mxu0 %vm346_vm2, %v8975_v56 }
 0xda6   :  { %7691 = vmatpush3.bf16.msra.mxu0 %v7676_v39  ;;  %7003 = vmatprep.mubr.msk.f32.mxu0 %vm346_vm2, %v8870_v23 }
 0xda7   :  { %7701 = vmatprep.subr.bf16.mxu0 %v8626_v42 }
 0xda9   :  { %7004 = vmatmul.mubr.msk.f32.vlgmr.msra.gmra.mrb[80].mxu0 %vm346_vm2, %v8875_v48 }
 0xdaa   :  { %7006 = vmatprep.mubr.msk.f32.mxu0 %vm346_vm2, %v8879_v49  ;;  %7703 = vmatpush3.bf16.msra.mxu0 %v8626_v42 }
 0xdab   :  { %7705 = vmatprep.subr.bf16.mxu0 %v8633_v47 }
 0xdad   :  { %7007 = vmatmul.mubr.msk.f32.gmra.mrb[82].mxu0 %vm346_vm2, %v8885_v51 }
 0xdae   :  { %7009 = vmatprep.mubr.msk.f32.mxu0 %vm346_vm2, %v8889_v52  ;;  %7707 = vmatpush3.bf16.msra.mxu0 %v8633_v47 }
 0xdaf   :  { %7709 = vmatprep.subr.bf16.mxu0 %v8679_v13 }
 0xdb1   :  { %7010 = vmatmul.mubr.msk.f32.gmra.mrb[84].mxu0 %vm346_vm2, %v8894_v53 }
 0xe70   :  { %v6984_v26 = vpop.f32.mrb[74].mxu0 }
 0xe71   :  { %v3314_v38 = vpop.f32.mrb[75].mxu0 }
 0xe72   :  { %7037 = vmatprep.mubr.msk.f32.mxu0 %vm664_vm3, %v3314_v38 }
 0xe73   :  { %7038 = vmatmul.mubr.msk.f32.vlgmr.msra.gmra.mrb[86].mxu0 %vm664_vm3, %v6984_v26 }
 0xe74   :  { %v6987_v11 = vpop.f32.mrb[76].mxu0  ;;  %7711 = vmatpush3.bf16.msra.mxu0 %v8679_v13 }
 0xe75   :  { %v3324_v2 = vpop.f32.mrb[77].mxu0  ;;  %7713 = vmatprep.subr.bf16.mxu0 %v8684_v14 }
 0xe76   :  { %7040 = vmatprep.mubr.msk.f32.mxu0 %vm664_vm3, %v3324_v2 }
 0xe77   :  { %7041 = vmatmul.mubr.msk.f32.gmra.mrb[88].mxu0 %vm664_vm3, %v6987_v11 }
 0xe78   :  { %v6990_v37 = vpop.f32.mrb[78].mxu0  ;;  %7715 = vmatpush3.bf16.msra.mxu0 %v8684_v14 }
 0xe79   :  { %v3334_v5 = vpop.f32.mrb[79].mxu0  ;;  %7717 = vmatprep.subr.bf16.mxu0 %v8695_v22 }
 0xe7a   :  { %7043 = vmatprep.mubr.msk.f32.mxu0 %vm664_vm3, %v3334_v5 }
 0xe7b   :  { %7044 = vmatmul.mubr.msk.f32.gmra.mrb[90].mxu0 %vm664_vm3, %v6990_v37 }
 0xe7c   :  { %v7005_v0 = vpop.f32.mrb[80].mxu0  ;;  %7719 = vmatpush3.bf16.msra.mxu0 %v8695_v22 }
 0xe7d   :  { %v3409_v6 = vpop.f32.mrb[81].mxu0  ;;  %7721 = vmatprep.subr.bf16.mxu0 %v8706_v28 }
 0xe7e   :  { %7020 = vmatprep.mubr.msk.f32.mxu1 %vm664_vm3, %v3409_v6 }
 0xe7f   :  { %7021 = vmatmul.mubr.msk.f32.vlgmr.msra.gmra.mrb[64].mxu1 %vm664_vm3, %v7005_v0 }
 0xe80   :  { %v7008_v30 = vpop.f32.mrb[82].mxu0  ;;  %7723 = vmatpush3.bf16.msra.mxu0 %v8706_v28 }
 0xe81   :  { %v3419_v31 = vpop.f32.mrb[83].mxu0 }
 0xe82   :  { %7023 = vmatprep.mubr.msk.f32.mxu1 %vm664_vm3, %v3419_v31  ;;  %v3043_v31 = vadd.f32 %v8728_v62, %v8951_v19 }
 0xe83   :  { %7024 = vmatmul.mubr.msk.f32.gmra.mrb[66].mxu1 %vm664_vm3, %v7008_v30  ;;  %v3042_v30 = vadd.f32 %v8728_v62, %v8949_v57  ;;  %v9032_v57 = vadd.f32 %v8748_v15, %v8742_v17  ;;  %v9036_v62 = vadd.f32 %v8748_v15, %v8740_v20 }
 0xe84   :  { %v7011_v33 = vpop.f32.mrb[84].mxu0 }
 0xe85   :  { %v3429_v46 = vpop.f32.mrb[85].mxu0 }
 0xe86   :  { %7026 = vmatprep.mubr.msk.f32.mxu1 %vm664_vm3, %v3429_v46 }
 0xe87   :  { %7027 = vmatmul.mubr.msk.f32.gmra.mrb[68].mxu1 %vm664_vm3, %v7011_v33  ;;  %v3044_v33 = vmax.f32 %v3042_v30, 0.0 }
 0xe88   :  { %7077 = vmatprep.mubr.msk.f32.mxu1 %vm346_vm2, %v8024_v7 }
 0xf46   :  { %v7039_v1 = vpop.f32.mrb[86].mxu0 }
 0xf47   :  { %v3631_v8 = vpop.f32.mrb[87].mxu0  ;;  %v3045_v1 = vmax.f32 %v3043_v31, 0.0 }
 0xf4a   :  { %v7042_v12 = vpop.f32.mrb[88].mxu0 }
 0xf4b   :  { %v3639_v43 = vpop.f32.mrb[89].mxu0 }
 0xf4e   :  { %v7045_v18 = vpop.f32.mrb[90].mxu0 }
 0xf4f   :  { %v3648_v16 = vpop.f32.mrb[91].mxu0 }
 0xf52   :  { %v7022_v40 = vpop.f32.mrb[64].mxu1 }
 0xf53   :  { %v3522_v41 = vpop.f32.mrb[65].mxu1 }
 0xf56   :  { %v7025_v36 = vpop.f32.mrb[66].mxu1 }
 0xf57   :  { %v3530_v39 = vpop.f32.mrb[67].mxu1 }
 0xf58   :  { %v3640_v26 = vadd.f32 %v3639_v43, %v3530_v39 }
 0xf5a   :  { %v3656_v38 = vadd.f32 %v8716_v10, %v3640_v26  ;;  %v7028_v11 = vpop.f32.mrb[68].mxu1 }
 0xf5b   :  { %v3653_v2 = vadd.f32 %v7045_v18, %v7028_v11  ;;  %v3539_v37 = vpop.f32.mrb[69].mxu1 }
 0xf5c   :  { %v3658_v5 = vmax.f32 %v3656_v38, 0.0 }
 0xf5d   :  { %v3657_v0 = vadd.f32 %v8716_v10, %v3653_v2 }
 0xf5e   :  { %3662 = vrot.lane.b32.xlu0 %v3658_v5, %s8132_s29 }
 0xf5f   :  { %v3659_v6 = vmax.f32 %v3657_v0, 0.0 }
 0xf61   :  { %3664 = vrot.lane.b32.xlu1 %v3659_v6, %s8132_s29 }
 0xfd0   :  { %v3663_v46 = vpop.permute.xlu0 %3662 }
 0xfd1   :  { %v3668_v7 = vsel %vm664_vm3, %v3044_v33, %v3663_v46 }
 0xfd2   :  { %7062 = vmatprep.mubr.msk.f32.mxu0 %vm2005_vm4, %v3668_v7 }
 0xfd3   :  { %v3665_v8 = vpop.permute.xlu1 %3664 }
 0xfd4   :  { %v3669_v10 = vsel %vm664_vm3, %v3045_v1, %v3665_v8 }
 0xfd5   :  { %7063 = vmatmul.mubr.msk.f32.vlgmr.msra.gmra.mrb[48].mxu0 %vm2005_vm4, %v3669_v10 }
 0xfd6   :  { %7113 = vmatprep.mubr.msk.f32.mxu0 %vm346_vm2, %v8870_v23 }
0x10a8   :  { %v7064_v19 = vpop.f32.mrb[48].mxu0 }
0x10a9   :  { %v7927_v12 = vadd.f32 %v9032_v57, %v7064_v19  ;;  %v3742_v43 = vpop.f32.mrb[49].mxu0 }
0x10aa   :  { %v7929_v18 = vadd.f32 %v9036_v62, %v3742_v43 }
0x10ab   :  { %v3754_v16 = vsel %vm664_vm3, %v7927_v12, 0.0 }
0x10ac   :  { %v3753_v40 = vsel %vm664_vm3, %v7929_v18, 0.0 }
0x10ad   :  { %v3755_v41 = vadd.f32 %v3754_v16, %v3753_v40  ;;  %v8025_v16 = vld [vmem:[%s9372_s2] ss:$0 sm:$0xff] }
0x10ae   :  { %v268_v40 = vadd.f32 %v8025_v16, %v8434_v58 }
0x10af   :  { %3756 = vadd.xlane.f32.xlu0 %v3755_v41 }
0x113c   :  { %v3757_v36 = vpop.xlane.xlu0 %3756 }
0x113d   :  { %v3758_v39 = vrot.slane %v3757_v36, 4 }
0x113f   :  { %v3759_v17 = vadd.f32 %v3758_v39, %v3757_v36  ;;  %v273_v39 = vadd.f32 %v8025_v16, %v8366_v24  ;;  %v8026_v24 = vld [vmem:[#allocation8 + $0x8] sm:$0xff] }
0x1141   :  { %v3760_v26 = vrot.slane %v3759_v17, 2 }
0x1143   :  { %v3761_v38 = vadd.f32 %v3760_v26, %v3759_v17 }
0x1145   :  { %v3762_v11 = vrot.slane %v3761_v38, 1 }
0x1147   :  { %v3763_v20 = vadd.f32 %v3762_v11, %v3761_v38  ;;  %v9388_v38 = vld [vmem:[#allocation13_spill] sm:$0xff] }
0x1149   :  { %7982 = vpush %v3763_v20 }
0x117a   :  { %s7983_s27 = spop %7982 }
0x117b   :  { %s3767_s28 = smul.f32 0.001953125, %s7983_s27 }
0x117d   :  { %v3768_v15 = vstv %s3767_s28 }
0x117e   :  { %v3769_v2 = vsub.f32 %v7929_v18, %v3768_v15  ;;  %v3770_v37 = vsub.f32 %v7927_v12, %v3768_v15 }
0x1180   :  { %v3771_v5 = vmul.f32 %v3769_v2, %v3769_v2  ;;  %v3772_v0 = vmul.f32 %v3770_v37, %v3770_v37 }
0x1182   :  { %v3773_v6 = vsel %vm664_vm3, %v3771_v5, 0.0  ;;  %v3774_v30 = vsel %vm664_vm3, %v3772_v0, 0.0 }
0x1183   :  { %v3775_v31 = vadd.f32 %v3774_v30, %v3773_v6  ;;  %v8027_v6 = vld [vmem:[%s9376_s6] ss:$0 sm:$0xff] }
0x1185   :  { %3776 = vadd.xlane.f32.xlu1 %v3775_v31 }
0x1212   :  { %v3777_v33 = vpop.xlane.xlu1 %3776 }
0x1213   :  { %v3778_v46 = vrot.slane %v3777_v33, 4 }
0x1215   :  { %v3779_v7 = vadd.f32 %v3778_v46, %v3777_v33 }
0x1217   :  { %v3780_v1 = vrot.slane %v3779_v7, 2 }
0x1219   :  { %v3781_v8 = vadd.f32 %v3780_v1, %v3779_v7 }
0x121b   :  { %v3782_v10 = vrot.slane %v3781_v8, 1 }
0x121d   :  { %v3783_v19 = vadd.f32 %v3782_v10, %v3781_v8 }
0x121f   :  { %7984 = vpush %v3783_v19 }
0x1250   :  { %s7985_s3 = spop %7984 }
0x1251   :  { %s3787_s23 = smul.f32 0.001953125, %s7985_s3  ;;  %s8133_s3 = smov 64  }
0x1253   :  { %s3788_s14 = sadd.f32 1e-05, %s3787_s23  ;;  %s8134_s23 = smov 96  }
0x1255   :  { %v3789_v12 = vstv %s3788_s14 }
0x1256   :  { %8008 = vrsqrt.f32 %v3789_v12 }
0x1260   :  { %v8009_v43 = vpop.eup %8008 }
0x1261   :  { %7986 = vpush %v8009_v43 }
0x1292   :  { %s7987_s7 = spop %7986 }
0x1293   :  { %v3792_v18 = vstv %s7987_s7 }
0x1294   :  { %v3793_v41 = vmul.f32 %v3792_v18, %v3769_v2  ;;  %v3794_v36 = vmul.f32 %v3792_v18, %v3770_v37 }
0x1296   :  { %v7724_v17 = vpack.c.bf16 %v268_v40, %v3793_v41  ;;  %v7728_v26 = vpack.c.bf16 %v3794_v36, %v273_v39 }
0x1298   :  { %7725 = vmatprep.subr.bf16.mxu1 %v7724_v17  ;;  %7749 = vmatprep.subr.bf16.mxu0 %v7724_v17 }
0x1299   :  { %7727 = vmatpush3.bf16.msra.mxu1 %v7724_v17  ;;  %7751 = vmatpush3.bf16.msra.mxu0 %v7724_v17 }
0x129a   :  { %7729 = vmatprep.subr.bf16.mxu1 %v7728_v26  ;;  %7753 = vmatprep.subr.bf16.mxu0 %v7728_v26 }
0x129d   :  { %7731 = vmatpush3.bf16.msra.mxu1 %v7728_v26  ;;  %7755 = vmatpush3.bf16.msra.mxu0 %v7728_v26 }
0x129e   :  { %7733 = vmatprep.subr.bf16.mxu1 %v9388_v38  ;;  %7757 = vmatprep.subr.bf16.mxu0 %v9388_v38 }
0x12a1   :  { %7735 = vmatpush3.bf16.msra.mxu1 %v9388_v38  ;;  %7759 = vmatpush3.bf16.msra.mxu0 %v9388_v38 }
0x12a2   :  { %7737 = vmatprep.subr.bf16.mxu1 %v7724_v17 }
0x12a4   :  { %7114 = vmatmul.mubr.msk.f32.vlgmr.msra.gmra.mrb[92].mxu0 %vm346_vm2, %v8875_v48  ;;  %7078 = vmatmul.mubr.msk.f32.vlgmr.msra.gmra.mrb[70].mxu1 %vm346_vm2, %v8026_v24 }
0x12a5   :  { %7739 = vmatpush3.bf16.msra.mxu1 %v7724_v17  ;;  %7116 = vmatprep.mubr.msk.f32.mxu0 %vm346_vm2, %v8879_v49 }
0x12a6   :  { %7741 = vmatprep.subr.bf16.mxu1 %v7728_v26  ;;  %7092 = vmatprep.mubr.msk.f32.mxu1 %vm346_vm2, %v8904_v54 }
0x12a8   :  { %7117 = vmatmul.mubr.msk.f32.gmra.mrb[94].mxu0 %vm346_vm2, %v8885_v51 }
0x12a9   :  { %7743 = vmatpush3.bf16.msra.mxu1 %v7728_v26  ;;  %7119 = vmatprep.mubr.msk.f32.mxu0 %vm346_vm2, %v8889_v52 }
0x12aa   :  { %7745 = vmatprep.subr.bf16.mxu1 %v9388_v38 }
0x12ac   :  { %7120 = vmatmul.mubr.msk.f32.gmra.mrb[96].mxu0 %vm346_vm2, %v8894_v53 }
0x12ad   :  { %7747 = vmatpush3.bf16.msra.mxu1 %v9388_v38  ;;  %7168 = vmatprep.mubr.msk.f32.mxu0 %vm346_vm2, %v8904_v54 }
0x12ae   :  { %7761 = vmatprep.subr.bf16.mxu1 %v8400_v45 }
0x12b0   :  { %7093 = vmatmul.mubr.msk.f32.vlgmr.msra.gmra.mrb[72].mxu1 %vm346_vm2, %v8959_v44 }
0x12b1   :  { %7095 = vmatprep.mubr.msk.f32.mxu1 %vm346_vm2, %v8963_v59  ;;  %7763 = vmatpush3.bf16.msra.mxu1 %v8400_v45 }
0x12b2   :  { %7765 = vmatprep.subr.bf16.mxu1 %v8411_v50 }
0x12b4   :  { %7096 = vmatmul.mubr.msk.f32.gmra.mrb[74].mxu1 %vm346_vm2, %v8967_v21 }
0x12b5   :  { %7098 = vmatprep.mubr.msk.f32.mxu1 %vm346_vm2, %v8971_v60  ;;  %7767 = vmatpush3.bf16.msra.mxu1 %v8411_v50 }
0x12b6   :  { %7769 = vmatprep.subr.bf16.mxu1 %v8444_v4 }
0x12b8   :  { %7099 = vmatmul.mubr.msk.f32.gmra.mrb[76].mxu1 %vm346_vm2, %v8975_v56 }
0x1377   :  { %v9085_v58 = vpop.f32.mrb[92].mxu0 }
0x1378   :  { %v9087_v11 = vpop.f32.mrb[93].mxu0 }
0x1379   :  { %7130 = vmatprep.mubr.msk.f32.mxu1 %vm664_vm3, %v9087_v11 }
0x137a   :  { %7131 = vmatmul.mubr.msk.f32.vlgmr.msra.gmra.mrb[78].mxu1 %vm664_vm3, %v9085_v58 }
0x137b   :  { %v9093_v45 = vpop.f32.mrb[94].mxu0  ;;  %7771 = vmatpush3.bf16.msra.mxu1 %v8444_v4 }
0x137c   :  { %v9096_v50 = vpop.f32.mrb[95].mxu0  ;;  %7773 = vmatprep.subr.bf16.mxu1 %v8451_v9 }
0x137d   :  { %7133 = vmatprep.mubr.msk.f32.mxu1 %vm664_vm3, %v9096_v50 }
0x137e   :  { %7134 = vmatmul.mubr.msk.f32.gmra.mrb[80].mxu1 %vm664_vm3, %v9093_v45 }
0x137f   :  { %v9103_v20 = vpop.f32.mrb[96].mxu0  ;;  %7775 = vmatpush3.bf16.msra.mxu1 %v8451_v9 }
0x1380   :  { %v9106_v15 = vpop.f32.mrb[97].mxu0  ;;  %7801 = vmatprep.subr.bf16.mxu1 %v8541_v29 }
0x1381   :  { %7136 = vmatprep.mubr.msk.f32.mxu1 %vm664_vm3, %v9106_v15 }
0x1382   :  { %7137 = vmatmul.mubr.msk.f32.gmra.mrb[82].mxu1 %vm664_vm3, %v9103_v20 }
0x1383   :  { %v9113_v4 = vpop.f32.mrb[72].mxu1 }
0x1384   :  { %v9115_v2 = vpop.f32.mrb[73].mxu1 }
0x1385   :  { %7147 = vmatprep.mubr.msk.f32.mxu1 %vm664_vm3, %v9115_v2 }
0x1386   :  { %7148 = vmatmul.mubr.msk.f32.vlgmr.msra.gmra.mrb[78].mxu1 %vm664_vm3, %v9113_v4 }
0x1387   :  { %v9121_v9 = vpop.f32.mrb[74].mxu1  ;;  %7803 = vmatpush3.bf16.msra.mxu1 %v8541_v29 }
0x1388   :  { %v9124_v37 = vpop.f32.mrb[75].mxu1  ;;  %7805 = vmatprep.subr.bf16.mxu1 %v8545_v32 }
0x1389   :  { %7150 = vmatprep.mubr.msk.f32.mxu1 %vm664_vm3, %v9124_v37 }
0x138a   :  { %7151 = vmatmul.mubr.msk.f32.gmra.mrb[80].mxu1 %vm664_vm3, %v9121_v9 }
0x138b   :  { %v9131_v5 = vpop.f32.mrb[76].mxu1  ;;  %7807 = vmatpush3.bf16.msra.mxu1 %v8545_v32 }
0x138c   :  { %v9134_v0 = vpop.f32.mrb[77].mxu1  ;;  %7817 = vmatprep.subr.bf16.mxu1 %v8549_v35 }
0x138d   :  { %7153 = vmatprep.mubr.msk.f32.mxu1 %vm664_vm3, %v9134_v0 }
0x138e   :  { %7154 = vmatmul.mubr.msk.f32.gmra.mrb[82].mxu1 %vm664_vm3, %v9131_v5 }
0x1459   :  { %v7149_v29 = vpop.f32.mrb[78].mxu1 }
0x145a   :  { %v4287_v30 = vadd.f32 %v8027_v6, %v7149_v29  ;;  %v4257_v31 = vpop.f32.mrb[79].mxu1 }
0x145b   :  { %v4286_v33 = vadd.f32 %v8027_v6, %v4257_v31 }
0x145c   :  { %v4293_v46 = vmax.f32 %v4287_v30, 0.0 }
0x145d   :  { %v4292_v32 = vmax.f32 %v4286_v33, 0.0  ;;  %v7152_v7 = vpop.f32.mrb[80].mxu1 }
0x145e   :  { %v4289_v1 = vadd.f32 %v8027_v6, %v7152_v7  ;;  %v4267_v8 = vpop.f32.mrb[81].mxu1 }
0x145f   :  { %v7776_v10 = vpack.c.bf16 %v4293_v46, %v4292_v32  ;;  %v4288_v19 = vadd.f32 %v8027_v6, %v4267_v8 }
0x1460   :  { %v4295_v12 = vmax.f32 %v4289_v1, 0.0 }
0x1461   :  { %v4294_v43 = vmax.f32 %v4288_v19, 0.0  ;;  %v7155_v18 = vpop.f32.mrb[82].mxu1  ;;  %7777 = vmatprep.subr.bf16.mxu0 %v7776_v10 }
0x1462   :  { %v4291_v16 = vadd.f32 %v8027_v6, %v7155_v18  ;;  %v4277_v40 = vpop.f32.mrb[83].mxu1  ;;  %7779 = vmatpush3.bf16.msra.mxu0 %v7776_v10 }
0x1463   :  { %v7780_v41 = vpack.c.bf16 %v4295_v12, %v4294_v43  ;;  %v4290_v36 = vadd.f32 %v8027_v6, %v4277_v40 }
0x1464   :  { %v4297_v39 = vmax.f32 %v4291_v16, 0.0 }
0x1465   :  { %v4296_v17 = vmax.f32 %v4290_v36, 0.0  ;;  %7781 = vmatprep.subr.bf16.mxu0 %v7780_v41 }
0x1466   :  { %7783 = vmatpush3.bf16.msra.mxu0 %v7780_v41 }
0x1467   :  { %v7784_v26 = vpack.c.bf16 %v4297_v39, %v4296_v17 }
0x1469   :  { %7785 = vmatprep.subr.bf16.mxu0 %v7784_v26 }
0x146a   :  { %7787 = vmatpush3.bf16.msra.mxu0 %v7784_v26 }
0x146b   :  { %7789 = vmatprep.subr.bf16.mxu0 %v7776_v10 }
0x146d   :  { %7169 = vmatmul.mubr.msk.f32.vlgmr.msra.gmra.mrb[98].mxu0 %vm346_vm2, %v8959_v44 }
0x146e   :  { %7791 = vmatpush3.bf16.msra.mxu0 %v7776_v10  ;;  %7171 = vmatprep.mubr.msk.f32.mxu0 %vm346_vm2, %v8963_v59 }
0x146f   :  { %7793 = vmatprep.subr.bf16.mxu0 %v7780_v41 }
0x1471   :  { %7172 = vmatmul.mubr.msk.f32.gmra.mrb[100].mxu0 %vm346_vm2, %v8967_v21 }
0x1472   :  { %7795 = vmatpush3.bf16.msra.mxu0 %v7780_v41  ;;  %7174 = vmatprep.mubr.msk.f32.mxu0 %vm346_vm2, %v8971_v60 }
0x1473   :  { %7797 = vmatprep.subr.bf16.mxu0 %v7784_v26 }
0x1475   :  { %7175 = vmatmul.mubr.msk.f32.gmra.mrb[102].mxu0 %vm346_vm2, %v8975_v56 }
0x1476   :  { %7799 = vmatpush3.bf16.msra.mxu0 %v7784_v26  ;;  %7189 = vmatprep.mubr.msk.f32.mxu0 %vm346_vm2, %v8870_v23 }
0x1477   :  { %7809 = vmatprep.subr.bf16.mxu0 %v8519_v3 }
0x1479   :  { %7190 = vmatmul.mubr.msk.f32.vlgmr.msra.gmra.mrb[104].mxu0 %vm346_vm2, %v8875_v48 }
0x147a   :  { %7192 = vmatprep.mubr.msk.f32.mxu0 %vm346_vm2, %v8879_v49  ;;  %7811 = vmatpush3.bf16.msra.mxu0 %v8519_v3 }
0x147b   :  { %7813 = vmatprep.subr.bf16.mxu0 %v8526_v25 }
0x147d   :  { %7193 = vmatmul.mubr.msk.f32.gmra.mrb[106].mxu0 %vm346_vm2, %v8885_v51 }
0x147e   :  { %7195 = vmatprep.mubr.msk.f32.mxu0 %vm346_vm2, %v8889_v52  ;;  %7815 = vmatpush3.bf16.msra.mxu0 %v8526_v25 }
0x1481   :  { %7196 = vmatmul.mubr.msk.f32.gmra.mrb[108].mxu0 %vm346_vm2, %v8894_v53 }
0x1540   :  { %v7170_v38 = vpop.f32.mrb[98].mxu0 }
0x1541   :  { %v4364_v24 = vpop.f32.mrb[99].mxu0 }
0x1542   :  { %7223 = vmatprep.mubr.msk.f32.mxu0 %vm664_vm3, %v4364_v24 }
0x1543   :  { %7224 = vmatmul.mubr.msk.f32.vlgmr.msra.gmra.mrb[110].mxu0 %vm664_vm3, %v7170_v38 }
0x1544   :  { %v7173_v3 = vpop.f32.mrb[100].mxu0 }
0x1545   :  { %v4374_v29 = vpop.f32.mrb[101].mxu0 }
0x1546   :  { %7226 = vmatprep.mubr.msk.f32.mxu0 %vm664_vm3, %v4374_v29 }
0x1547   :  { %7227 = vmatmul.mubr.msk.f32.gmra.mrb[112].mxu0 %vm664_vm3, %v7173_v3 }
0x1548   :  { %v7176_v6 = vpop.f32.mrb[102].mxu0 }
0x1549   :  { %v4384_v30 = vpop.f32.mrb[103].mxu0 }
0x154a   :  { %7229 = vmatprep.mubr.msk.f32.mxu0 %vm664_vm3, %v4384_v30 }
0x154b   :  { %7230 = vmatmul.mubr.msk.f32.gmra.mrb[114].mxu0 %vm664_vm3, %v7176_v6 }
0x154c   :  { %v7191_v25 = vpop.f32.mrb[104].mxu0  ;;  %7278 = vmatprep.mubr.msk.f32.mxu0 %vm346_vm2, %v8904_v54 }
0x154d   :  { %v4459_v31 = vpop.f32.mrb[105].mxu0 }
0x154e   :  { %7206 = vmatprep.mubr.msk.f32.mxu1 %vm664_vm3, %v4459_v31 }
0x154f   :  { %7207 = vmatmul.mubr.msk.f32.vlgmr.msra.gmra.mrb[84].mxu1 %vm664_vm3, %v7191_v25 }
0x1550   :  { %v7194_v33 = vpop.f32.mrb[106].mxu0  ;;  %7819 = vmatpush3.bf16.msra.mxu1 %v8549_v35 }
0x1551   :  { %v4469_v46 = vpop.f32.mrb[107].mxu0  ;;  %7821 = vmatprep.subr.bf16.mxu1 %v8560_v63 }
0x1552   :  { %7209 = vmatprep.mubr.msk.f32.mxu1 %vm664_vm3, %v4469_v46 }
0x1553   :  { %7210 = vmatmul.mubr.msk.f32.gmra.mrb[86].mxu1 %vm664_vm3, %v7194_v33 }
0x1554   :  { %v7197_v32 = vpop.f32.mrb[108].mxu0  ;;  %7823 = vmatpush3.bf16.msra.mxu1 %v8560_v63 }
0x1555   :  { %v4479_v7 = vpop.f32.mrb[109].mxu0  ;;  %7825 = vmatprep.subr.bf16.mxu1 %v8566_v27 }
0x1556   :  { %7212 = vmatprep.mubr.msk.f32.mxu1 %vm664_vm3, %v4479_v7  ;;  %v8029_v7 = vld [vmem:[%s9376_s6 + $0x3] ss:$0 sm:$0xff] }
0x1557   :  { %7213 = vmatmul.mubr.msk.f32.gmra.mrb[88].mxu1 %vm664_vm3, %v7197_v32 }
0x1558   :  { %7240 = vmatprep.mubr.msk.f32.mxu1 %vm664_vm3, %v9087_v11 }
0x155b   :  { %7241 = vmatmul.mubr.msk.f32.vlgmr.msra.gmra.mrb[90].mxu1 %vm664_vm3, %v9085_v58 }
0x155c   :  { %7243 = vmatprep.mubr.msk.f32.mxu1 %vm664_vm3, %v9096_v50  ;;  %7827 = vmatpush3.bf16.msra.mxu1 %v8566_v27 }
0x155d   :  { %7829 = vmatprep.subr.bf16.mxu1 %v8576_v34 }
0x155f   :  { %7244 = vmatmul.mubr.msk.f32.gmra.mrb[92].mxu1 %vm664_vm3, %v9093_v45 }
0x1560   :  { %7246 = vmatprep.mubr.msk.f32.mxu1 %vm664_vm3, %v9106_v15  ;;  %7831 = vmatpush3.bf16.msra.mxu1 %v8576_v34 }
0x1561   :  { %7857 = vmatprep.subr.bf16.mxu1 %v8648_v55 }
0x1563   :  { %7247 = vmatmul.mubr.msk.f32.gmra.mrb[94].mxu1 %vm664_vm3, %v9103_v20 }
0x1564   :  { %7257 = vmatprep.mubr.msk.f32.mxu1 %vm664_vm3, %v9115_v2 }
0x1567   :  { %7258 = vmatmul.mubr.msk.f32.vlgmr.msra.gmra.mrb[90].mxu1 %vm664_vm3, %v9113_v4 }
0x1568   :  { %7260 = vmatprep.mubr.msk.f32.mxu1 %vm664_vm3, %v9124_v37  ;;  %7859 = vmatpush3.bf16.msra.mxu1 %v8648_v55 }
0x1569   :  { %7861 = vmatprep.subr.bf16.mxu1 %v8652_v61 }
0x156b   :  { %7261 = vmatmul.mubr.msk.f32.gmra.mrb[92].mxu1 %vm664_vm3, %v9121_v9  ;;  %v8028_v9 = vld [vmem:[%s9376_s6 + $0x2] ss:$0 sm:$0xff] }
0x156c   :  { %7263 = vmatprep.mubr.msk.f32.mxu1 %vm664_vm3, %v9134_v0  ;;  %7863 = vmatpush3.bf16.msra.mxu1 %v8652_v61 }
0x156d   :  { %7873 = vmatprep.subr.bf16.mxu1 %v8679_v13 }
0x156f   :  { %7264 = vmatmul.mubr.msk.f32.gmra.mrb[94].mxu1 %vm664_vm3, %v9131_v5 }
0x1616   :  { %v7225_v35 = vpop.f32.mrb[110].mxu0 }
0x1617   :  { %v4681_v63 = vpop.f32.mrb[111].mxu0 }
0x161a   :  { %v7228_v27 = vpop.f32.mrb[112].mxu0 }
0x161b   :  { %v4689_v34 = vpop.f32.mrb[113].mxu0 }
0x161e   :  { %v7231_v55 = vpop.f32.mrb[114].mxu0 }
0x161f   :  { %v4698_v54 = vpop.f32.mrb[115].mxu0 }
0x1620   :  { %v8030_v54 = vld [vmem:[%s9376_s6 + $0x1] ss:$0 sm:$0xff] }
0x1622   :  { %v7208_v58 = vpop.f32.mrb[84].mxu1 }
0x1623   :  { %v4572_v11 = vpop.f32.mrb[85].mxu1 }
0x1626   :  { %v7211_v45 = vpop.f32.mrb[86].mxu1 }
0x1627   :  { %v4580_v50 = vpop.f32.mrb[87].mxu1 }
0x1628   :  { %v9220_v20 = vadd.f32 %v4689_v34, %v4580_v50 }
0x162a   :  { %v7214_v15 = vpop.f32.mrb[88].mxu1  ;;  %v4706_v58 = vadd.f32 %v8030_v54, %v9220_v20 }
0x162b   :  { %v9222_v4 = vadd.f32 %v7231_v55, %v7214_v15  ;;  %v4589_v61 = vpop.f32.mrb[89].mxu1 }
0x162c   :  { %v4708_v45 = vmax.f32 %v4706_v58, 0.0 }
0x162d   :  { %v4707_v11 = vadd.f32 %v8030_v54, %v9222_v4 }
0x162f   :  { %v4709_v61 = vmax.f32 %v4707_v11, 0.0 }
0x163a   :  { %v7259_v2 = vpop.f32.mrb[90].mxu1 }
0x163b   :  { %v4901_v37 = vadd.f32 %v8028_v9, %v7259_v2  ;;  %v4871_v5 = vpop.f32.mrb[91].mxu1 }
0x163c   :  { %v4900_v0 = vadd.f32 %v8028_v9, %v4871_v5 }
0x163d   :  { %v4907_v1 = vmax.f32 %v4901_v37, 0.0 }
0x163e   :  { %v4906_v8 = vmax.f32 %v4900_v0, 0.0  ;;  %v7262_v10 = vpop.f32.mrb[92].mxu1 }
0x163f   :  { %v4903_v19 = vadd.f32 %v8028_v9, %v7262_v10  ;;  %v4881_v12 = vpop.f32.mrb[93].mxu1 }
0x1640   :  { %v7832_v43 = vpack.c.bf16 %v4907_v1, %v4906_v8  ;;  %v4902_v18 = vadd.f32 %v8028_v9, %v4881_v12 }
0x1641   :  { %v4909_v16 = vmax.f32 %v4903_v19, 0.0 }
0x1642   :  { %v4908_v40 = vmax.f32 %v4902_v18, 0.0  ;;  %v7265_v41 = vpop.f32.mrb[94].mxu1  ;;  %7833 = vmatprep.subr.bf16.mxu0 %v7832_v43 }
0x1643   :  { %v4905_v36 = vadd.f32 %v8028_v9, %v7265_v41  ;;  %v4891_v39 = vpop.f32.mrb[95].mxu1  ;;  %7835 = vmatpush3.bf16.msra.mxu0 %v7832_v43 }
0x1644   :  { %v7836_v17 = vpack.c.bf16 %v4909_v16, %v4908_v40  ;;  %v4904_v26 = vadd.f32 %v8028_v9, %v4891_v39 }
0x1645   :  { %v4911_v38 = vmax.f32 %v4905_v36, 0.0 }
0x1646   :  { %v4910_v24 = vmax.f32 %v4904_v26, 0.0  ;;  %7837 = vmatprep.subr.bf16.mxu0 %v7836_v17 }
0x1647   :  { %7839 = vmatpush3.bf16.msra.mxu0 %v7836_v17 }
0x1648   :  { %v7840_v3 = vpack.c.bf16 %v4911_v38, %v4910_v24 }
0x164a   :  { %7841 = vmatprep.subr.bf16.mxu0 %v7840_v3 }
0x164b   :  { %7843 = vmatpush3.bf16.msra.mxu0 %v7840_v3 }
0x164c   :  { %7845 = vmatprep.subr.bf16.mxu0 %v7832_v43 }
0x164e   :  { %7279 = vmatmul.mubr.msk.f32.vlgmr.msra.gmra.mrb[116].mxu0 %vm346_vm2, %v8959_v44 }
0x164f   :  { %7847 = vmatpush3.bf16.msra.mxu0 %v7832_v43  ;;  %7281 = vmatprep.mubr.msk.f32.mxu0 %vm346_vm2, %v8963_v59 }
0x1650   :  { %7849 = vmatprep.subr.bf16.mxu0 %v7836_v17 }
0x1652   :  { %7282 = vmatmul.mubr.msk.f32.gmra.mrb[118].mxu0 %vm346_vm2, %v8967_v21 }
0x1653   :  { %7851 = vmatpush3.bf16.msra.mxu0 %v7836_v17  ;;  %7284 = vmatprep.mubr.msk.f32.mxu0 %vm346_vm2, %v8971_v60 }
0x1654   :  { %7853 = vmatprep.subr.bf16.mxu0 %v7840_v3 }
0x1656   :  { %7285 = vmatmul.mubr.msk.f32.gmra.mrb[120].mxu0 %vm346_vm2, %v8975_v56 }
0x1657   :  { %7855 = vmatpush3.bf16.msra.mxu0 %v7840_v3  ;;  %7299 = vmatprep.mubr.msk.f32.mxu0 %vm346_vm2, %v8870_v23 }
0x1658   :  { %7865 = vmatprep.subr.bf16.mxu0 %v8626_v42 }
0x165a   :  { %7300 = vmatmul.mubr.msk.f32.vlgmr.msra.gmra.mrb[122].mxu0 %vm346_vm2, %v8875_v48 }
0x165b   :  { %7302 = vmatprep.mubr.msk.f32.mxu0 %vm346_vm2, %v8879_v49  ;;  %7867 = vmatpush3.bf16.msra.mxu0 %v8626_v42 }
0x165c   :  { %7869 = vmatprep.subr.bf16.mxu0 %v8633_v47 }
0x165e   :  { %7303 = vmatmul.mubr.msk.f32.gmra.mrb[124].mxu0 %vm346_vm2, %v8885_v51 }
0x165f   :  { %7305 = vmatprep.mubr.msk.f32.mxu0 %vm346_vm2, %v8889_v52  ;;  %7871 = vmatpush3.bf16.msra.mxu0 %v8633_v47 }
0x1662   :  { %7306 = vmatmul.mubr.msk.f32.gmra.mrb[126].mxu0 %vm346_vm2, %v8894_v53 }
0x1721   :  { %v7280_v23 = vpop.f32.mrb[116].mxu0 }
0x1722   :  { %v4978_v48 = vpop.f32.mrb[117].mxu0 }
0x1723   :  { %7333 = vmatprep.mubr.msk.f32.mxu0 %vm664_vm3, %v4978_v48 }
0x1724   :  { %7334 = vmatmul.mubr.msk.f32.vlgmr.msra.gmra.mrb[128].mxu0 %vm664_vm3, %v7280_v23 }
0x1725   :  { %v7283_v42 = vpop.f32.mrb[118].mxu0 }
0x1726   :  { %v4988_v49 = vpop.f32.mrb[119].mxu0 }
0x1727   :  { %7336 = vmatprep.mubr.msk.f32.mxu0 %vm664_vm3, %v4988_v49 }
0x1728   :  { %7337 = vmatmul.mubr.msk.f32.gmra.mrb[130].mxu0 %vm664_vm3, %v7283_v42 }
0x1729   :  { %v7286_v51 = vpop.f32.mrb[120].mxu0 }
0x172a   :  { %v4998_v44 = vpop.f32.mrb[121].mxu0 }
0x172b   :  { %7339 = vmatprep.mubr.msk.f32.mxu0 %vm664_vm3, %v4998_v44  ;;  %v5506_v44 = vld [vmem:[%s9383_s13] sm:$0xff] }
0x172c   :  { %7340 = vmatmul.mubr.msk.f32.gmra.mrb[132].mxu0 %vm664_vm3, %v7286_v51 }
0x172d   :  { %v7301_v47 = vpop.f32.mrb[122].mxu0 }
0x172e   :  { %v5073_v52 = vpop.f32.mrb[123].mxu0 }
0x172f   :  { %7316 = vmatprep.mubr.msk.f32.mxu1 %vm664_vm3, %v5073_v52  ;;  %v5508_v52 = vld [vmem:[%s9383_s13 + $0x10] sm:$0xff] }
0x1730   :  { %7317 = vmatmul.mubr.msk.f32.vlgmr.msra.gmra.mrb[96].mxu1 %vm664_vm3, %v7301_v47  ;;  %v5507_v47 = vld [vmem:[%s9383_s13 + $0x8] sm:$0xff] }
0x1731   :  { %v7304_v53 = vpop.f32.mrb[124].mxu0  ;;  %7875 = vmatpush3.bf16.msra.mxu1 %v8679_v13 }
0x1732   :  { %v5083_v59 = vpop.f32.mrb[125].mxu0  ;;  %7877 = vmatprep.subr.bf16.mxu1 %v8684_v14 }
0x1733   :  { %7319 = vmatprep.mubr.msk.f32.mxu1 %vm664_vm3, %v5083_v59  ;;  %v5509_v59 = vld [vmem:[%s9383_s13 + $0x18] sm:$0xff] }
0x1734   :  { %7320 = vmatmul.mubr.msk.f32.gmra.mrb[98].mxu1 %vm664_vm3, %v7304_v53  ;;  %v7888_v53 = vpack.c.bf16 %v5507_v47, %v5506_v44 }
0x1735   :  { %v7307_v21 = vpop.f32.mrb[126].mxu0  ;;  %7879 = vmatpush3.bf16.msra.mxu1 %v8684_v14 }
0x1736   :  { %v5093_v60 = vpop.f32.mrb[127].mxu0  ;;  %7881 = vmatprep.subr.bf16.mxu1 %v8695_v22  ;;  %7889 = vmatprep.subr.bf16.mxu0 %v7888_v53 }
0x1737   :  { %7322 = vmatprep.mubr.msk.f32.mxu1 %vm664_vm3, %v5093_v60  ;;  %v5510_v60 = vld [vmem:[%s9383_s13 + $0x20] sm:$0xff]  ;;  %7891 = vmatpush3.bf16.msra.mxu0 %v7888_v53 }
0x1738   :  { %7323 = vmatmul.mubr.msk.f32.gmra.mrb[100].mxu1 %vm664_vm3, %v7307_v21  ;;  %v7892_v21 = vpack.c.bf16 %v5509_v59, %v5508_v52 }
0x1739   :  { %7883 = vmatpush3.bf16.msra.mxu1 %v8695_v22 }
0x173a   :  { %7885 = vmatprep.subr.bf16.mxu1 %v8706_v28  ;;  %7893 = vmatprep.subr.bf16.mxu0 %v7892_v21 }
0x173b   :  { %7895 = vmatpush3.bf16.msra.mxu0 %v7892_v21 }
0x173d   :  { %7887 = vmatpush3.bf16.msra.mxu1 %v8706_v28 }
0x17f7   :  { %v7335_v13 = vpop.f32.mrb[128].mxu0 }
0x17f8   :  { %v5295_v56 = vpop.f32.mrb[129].mxu0  ;;  %v5511_v13 = vld [vmem:[%s9383_s13 + $0x28] sm:$0xff] }
0x17f9   :  { %v7896_v56 = vpack.c.bf16 %v5511_v13, %v5510_v60 }
0x17fb   :  { %v7338_v29 = vpop.f32.mrb[130].mxu0  ;;  %7897 = vmatprep.subr.bf16.mxu0 %v7896_v56 }
0x17fc   :  { %v5303_v6 = vpop.f32.mrb[131].mxu0  ;;  %v5512_v29 = vld [vmem:[%s9383_s13 + $0x30] sm:$0xff]  ;;  %7899 = vmatpush3.bf16.msra.mxu0 %v7896_v56 }
0x17ff   :  { %v7341_v30 = vpop.f32.mrb[132].mxu0 }
0x1800   :  { %v5312_v25 = vpop.f32.mrb[133].mxu0 }
0x1803   :  { %v7318_v14 = vpop.f32.mrb[96].mxu1 }
0x1804   :  { %v5186_v31 = vpop.f32.mrb[97].mxu1 }
0x1805   :  { %v5514_v31 = vld [vmem:[%s9383_s13 + $0x40] sm:$0xff] }
0x1807   :  { %v7321_v33 = vpop.f32.mrb[98].mxu1 }
0x1808   :  { %v5194_v46 = vpop.f32.mrb[99].mxu1  ;;  %v5515_v33 = vld [vmem:[%s9383_s13 + $0x48] sm:$0xff] }
0x1809   :  { %v5304_v32 = vadd.f32 %v5303_v6, %v5194_v46  ;;  %v5513_v6 = vld [vmem:[%s9383_s13 + $0x38] sm:$0xff]  ;;  %v7904_v46 = vpack.c.bf16 %v5515_v33, %v5514_v31 }
0x180b   :  { %v5320_v22 = vadd.f32 %v8029_v7, %v5304_v32  ;;  %v7324_v35 = vpop.f32.mrb[100].mxu1  ;;  %v5516_v32 = vld [vmem:[%s9383_s13 + $0x50] sm:$0xff] }
0x180c   :  { %v5317_v63 = vadd.f32 %v7341_v30, %v7324_v35  ;;  %v5203_v27 = vpop.f32.mrb[101].mxu1  ;;  %v7900_v30 = vpack.c.bf16 %v5513_v6, %v5512_v29  ;;  %v5518_v35 = vld [vmem:[%s9383_s13 + $0x60] sm:$0xff] }
0x180d   :  { %v5322_v28 = vmax.f32 %v5320_v22, 0.0 }
0x180e   :  { %v5321_v34 = vadd.f32 %v8029_v7, %v5317_v63  ;;  %7901 = vmatprep.subr.bf16.mxu0 %v7900_v30  ;;  %v5517_v7 = vld [vmem:[%s9383_s13 + $0x58] sm:$0xff]  ;;  %v5519_v63 = vld [vmem:[%s9383_s13 + $0x68] sm:$0xff] }
0x180f   :  { %5326 = vrot.lane.b32.xlu0 %v5322_v28, %s8132_s29  ;;  %7903 = vmatpush3.bf16.msra.mxu0 %v7900_v30  ;;  %v7908_v22 = vpack.c.bf16 %v5517_v7, %v5516_v32  ;;  %v7912_v27 = vpack.c.bf16 %v5519_v63, %v5518_v35  ;;  %v5520_v28 = vld [vmem:[%s9383_s13 + $0x70] sm:$0xff] }
0x1810   :  { %v5323_v55 = vmax.f32 %v5321_v34, 0.0  ;;  %7905 = vmatprep.subr.bf16.mxu0 %v7904_v46  ;;  %v5521_v34 = vld [vmem:[%s9383_s13 + $0x78] sm:$0xff] }
0x1811   :  { %v7916_v54 = vpack.c.bf16 %v5521_v34, %v5520_v28 }
0x1812   :  { %5328 = vrot.lane.b32.xlu1 %v5323_v55, %s8132_s29 }
0x1813   :  { %7907 = vmatpush3.bf16.msra.mxu0 %v7904_v46 }
0x1814   :  { %7909 = vmatprep.subr.bf16.mxu0 %v7908_v22 }
0x1817   :  { %7911 = vmatpush3.bf16.msra.mxu0 %v7908_v22 }
0x1818   :  { %7913 = vmatprep.subr.bf16.mxu0 %v7912_v27 }
0x181b   :  { %7915 = vmatpush3.bf16.msra.mxu0 %v7912_v27 }
0x181c   :  { %7917 = vmatprep.subr.bf16.mxu0 %v7916_v54 }
0x181f   :  { %7919 = vmatpush3.bf16.msra.mxu0 %v7916_v54 }
0x1881   :  { %v5327_v50 = vpop.permute.xlu0 %5326 }
0x1882   :  { %v5332_v15 = vsel %vm664_vm3, %v4708_v45, %v5327_v50  ;;  %v5906_v45 = vld [vmem:[#allocation2] ss:$0 sm:$0xff] }
0x1883   :  { %7358 = vmatprep.mubr.msk.f32.mxu1 %vm2005_vm4, %v5332_v15 }
0x1884   :  { %v5329_v2 = vpop.permute.xlu1 %5328 }
0x1885   :  { %v5333_v9 = vsel %vm664_vm3, %v4709_v61, %v5329_v2 }
0x1886   :  { %7359 = vmatmul.mubr.msk.f32.vlgmr.msra.gmra.mrb[70].mxu1 %vm2005_vm4, %v5333_v9 }
0x1959   :  { %v7360_v37 = vpop.f32.mrb[70].mxu1 }
0x195a   :  { %v7931_v5 = vadd.f32 %v9032_v57, %v7360_v37  ;;  %v5406_v0 = vpop.f32.mrb[71].mxu1 }
0x195b   :  { %v7933_v20 = vadd.f32 %v9036_v62, %v5406_v0 }
0x195c   :  { %v5418_v4 = vsel %vm664_vm3, %v7931_v5, 0.0 }
0x195d   :  { %v5417_v1 = vsel %vm664_vm3, %v7933_v20, 0.0 }
0x195e   :  { %v5419_v8 = vadd.f32 %v5418_v4, %v5417_v1 }
0x1960   :  { %5420 = vadd.xlane.f32.xlu0 %v5419_v8  ;;  %v5905_v8 = vld [vmem:[%s9382_s12] ss:$0 sm:$0xff] }
0x19ed   :  { %v5421_v10 = vpop.xlane.xlu0 %5420 }
0x19ee   :  { %v5422_v19 = vrot.slane %v5421_v10, 4 }
0x19f0   :  { %v5423_v12 = vadd.f32 %v5422_v19, %v5421_v10 }
0x19f2   :  { %v5424_v43 = vrot.slane %v5423_v12, 2 }
0x19f4   :  { %v5425_v18 = vadd.f32 %v5424_v43, %v5423_v12 }
0x19f6   :  { %v5426_v16 = vrot.slane %v5425_v18, 1 }
0x19f8   :  { %v5427_v40 = vadd.f32 %v5426_v16, %v5425_v18 }
0x19fa   :  { %7988 = vpush %v5427_v40 }
0x1a2b   :  { %s7989_s6 = spop %7988 }
0x1a2c   :  { %s5431_s20 = smul.f32 0.001953125, %s7989_s6 }
0x1a2e   :  { %v5432_v57 = vstv %s5431_s20 }
0x1a2f   :  { %v9290_v41 = vsub.f32 %v7933_v20, %v5432_v57  ;;  %v9292_v62 = vsub.f32 %v7931_v5, %v5432_v57  ;;  %v5904_v5 = vld [vmem:[%s9381_s11] ss:$0 sm:$0xff] }
0x1a31   :  { %v5435_v36 = vmul.f32 %v9290_v41, %v9290_v41  ;;  %v5436_v39 = vmul.f32 %v9292_v62, %v9292_v62 }
0x1a33   :  { %v5437_v17 = vsel %vm664_vm3, %v5435_v36, 0.0  ;;  %v5438_v26 = vsel %vm664_vm3, %v5436_v39, 0.0 }
0x1a34   :  { %v5439_v38 = vadd.f32 %v5438_v26, %v5437_v17 }
0x1a36   :  { %5440 = vadd.xlane.f32.xlu1 %v5439_v38 }
0x1ac3   :  { %v5441_v24 = vpop.xlane.xlu1 %5440 }
0x1ac4   :  { %v5442_v3 = vrot.slane %v5441_v24, 4 }
0x1ac6   :  { %v5443_v23 = vadd.f32 %v5442_v3, %v5441_v24 }
0x1ac8   :  { %v5444_v48 = vrot.slane %v5443_v23, 2 }
0x1aca   :  { %v5445_v42 = vadd.f32 %v5444_v48, %v5443_v23 }
0x1acc   :  { %v5446_v49 = vrot.slane %v5445_v42, 1 }
0x1ace   :  { %v5447_v51 = vadd.f32 %v5446_v49, %v5445_v42 }
0x1ad0   :  { %7990 = vpush %v5447_v51 }
0x1b01   :  { %s7991_s2 = spop %7990 }
0x1b02   :  { %s5451_s19 = smul.f32 0.001953125, %s7991_s2 }
0x1b04   :  { %s5452_s1 = sadd.f32 1e-05, %s5451_s19 }
0x1b06   :  { %v5453_v25 = vstv %s5452_s1 }
0x1b07   :  { %8010 = vrsqrt.f32 %v5453_v25 }
0x1b11   :  { %v8011_v14 = vpop.eup %8010 }
0x1b12   :  { %7992 = vpush %v8011_v14 }
0x1b43   :  { %s7993_s5 = spop %7992 }
0x1b44   :  { %v5456_v55 = vstv %s7993_s5 }
0x1b45   :  { %v5457_v58 = vmul.f32 %v5456_v55, %v9290_v41  ;;  %v5458_v11 = vmul.f32 %v5456_v55, %v9292_v62 }
0x1b47   :  { %5463 = vrot.lane.b32.xlu1 %v5458_v11, %s8132_s29  ;;  %5461 = vrot.lane.b32.xlu0 %v5457_v58, %s8132_s29 }
0x1b4b   :  { %5469 = vrot.lane.b32.xlu1 %v5458_v11, %s8133_s3  ;;  %5467 = vrot.lane.b32.xlu0 %v5457_v58, %s8133_s3 }
0x1b4f   :  { %5475 = vrot.lane.b32.xlu1 %v5458_v11, %s8134_s23  ;;  %5473 = vrot.lane.b32.xlu0 %v5457_v58, %s8134_s23 }
0x1b53   :  { %5529 = vperm.xlu0 %8005, %v5906_v45  }
0x1bb9   :  { %v5464_v50 = vpop.permute.xlu1 %5463  ;;  %v5462_v15 = vpop.permute.xlu0 %5461 }
0x1bba   :  { %v5480_v9 = vsel %vm664_vm3, %v5458_v11, %v5464_v50  ;;  %v5479_v37 = vsel %vm664_vm3, %v5457_v58, %v5462_v15 }
0x1bbd   :  { %v5470_v61 = vpop.permute.xlu1 %5469  ;;  %v5468_v2 = vpop.permute.xlu0 %5467 }
0x1bbe   :  { %v5482_v0 = vsel %vm2005_vm4, %v5480_v9, %v5470_v61  ;;  %v5481_v20 = vsel %vm2005_vm4, %v5479_v37, %v5468_v2 }
0x1bc1   :  { %v5476_v4 = vpop.permute.xlu1 %5475  ;;  %v5474_v1 = vpop.permute.xlu0 %5473 }
0x1bc2   :  { %v5485_v10 = vsel %vm5483_vm5, %v5482_v0, %v5476_v4  ;;  %v5484_v19 = vsel %vm5483_vm5, %v5481_v20, %v5474_v1 }
0x1bc3   :  { %v5494_v12 = vmul.f32 %v5904_v5, %v5485_v10  ;;  %v5493_v43 = vmul.f32 %v5904_v5, %v5484_v19 }
0x1bc5   :  { %v5503_v18 = vadd.f32 %v5905_v8, %v5494_v12  ;;  %v5502_v16 = vadd.f32 %v5905_v8, %v5493_v43 }
0x1bc7   :  { %v5505_v40 = vmax.f32 %v5503_v18, 0.0  ;;  %v5504_v57 = vmax.f32 %v5502_v16, 0.0 }
0x1bc9   :  { %7393 = vmatprep.mubr.f32.mxu0 %v5504_v57 }
0x1bca   :  { %7394 = vmatmul.mubr.f32.vlgmr.msra.gmra.mrb[134].mxu0 %v5505_v40 }
0x1bd2   :  { %v5530_v41 = vpop.permute.xlu0 %5529 }
0x1c9d   :  { %v7395_v62 = vpop.f32.mrb[134].mxu0 }
0x1c9e   :  { %v5604_v36 = vadd.f32 %v7395_v62, %v5530_v41  ;;  %v5598_v39 = vpop.f32.mrb[135].mxu0 }
0x1c9f   :  { %v5599_v17 = vadd.f32 %v5598_v39, %v5530_v41 }
0x1ca0   :  { %5608 = vst.msk [vmem:[%s9385_s15 + $0x8] sm:$0xff] %vm129_vm1, %v5604_v36 }
0x1ca1   :  { %5607 = vst.msk [vmem:[%s9385_s15] sm:$0xff] %vm129_vm1, %v5599_v17 }
0x1ca2   :  { %5613 = vsyncpa [#allocation4], 1 }
0x1ca3   :  { %5614 = vsyncpa [#allocation6], 1 }
0x1ca4   :  { %5615 = vsyncpa [#allocation9], 1 }

</bundles_post_ra>
